<compile_context>
chip_gen: v5e
topology: v5e:2x2
jax: 0.10.0
libtpu: 0.0.40
codegen_flags: <defaults>
</compile_context>

<pallas_src>
import functools
import math

import jax
import jax.numpy as jnp
from jax import lax
from jax.experimental import pallas as pl
from jax.experimental.pallas import tpu as pltpu


_BN_EPS = 1e-5


def _round_up(x, m):
    return (x + m - 1) // m * m


# ----------------------------- Pallas kernels --------------------------------

def _matmul_bias_act_kernel(x_ref, w_ref, b_ref, o_ref, *, act):
    acc = jnp.dot(x_ref[...], w_ref[...], preferred_element_type=jnp.float32)
    acc = acc + b_ref[...]
    if act == "relu6":
        acc = jnp.minimum(jnp.maximum(acc, 0.0), 6.0)
    elif act == "gelu":  # exact (erf) GELU, matching nn.GELU() default
        acc = 0.5 * acc * (1.0 + lax.erf(acc * 0.7071067811865476))
    o_ref[...] = acc


def matmul_bias_act(x, w, b=None, act="none", block_m=512):
    """x: (M, K) f32, w: (K0, N0) f32 (possibly already zero-padded).
    Operands are cast to bf16 (f32 accumulation on the MXU); K/N padded to multiples of
    128 (lane-dense); M tiled over a "parallel" grid axis.
    Returns the PADDED (Mp, Np) f32 result; callers slice [:M, :n] when needed."""
    M, K = x.shape
    K0, N0 = w.shape
    Kp = _round_up(max(K, K0), 128)
    Np = _round_up(N0, 128)
    ru8 = _round_up(M, 8)
    bm = min(block_m, ru8)
    if bm == ru8 and bm >= 32:          # split into >=2 row tiles (v7x megacore)
        bm = _round_up(bm // 2, 16)
    Mp = _round_up(M, bm)

    xb = jnp.pad(x.astype(jnp.float32), ((0, Mp - M), (0, Kp - K))).astype(jnp.bfloat16)
    wb = jnp.pad(w.astype(jnp.float32), ((0, Kp - K0), (0, Np - N0))).astype(jnp.bfloat16)
    if b is None:
        bb = jnp.zeros((1, Np), jnp.float32)
    else:
        bb = jnp.pad(b.astype(jnp.float32), (0, Np - b.shape[0])).reshape(1, Np)

    return pl.pallas_call(
        functools.partial(_matmul_bias_act_kernel, act=act),
        out_shape=jax.ShapeDtypeStruct((Mp, Np), jnp.float32),
        grid=(Mp // bm,),
        in_specs=[
            pl.BlockSpec((bm, Kp), lambda i: (i, 0)),
            pl.BlockSpec((Kp, Np), lambda i: (0, 0)),
            pl.BlockSpec((1, Np), lambda i: (0, 0)),
        ],
        out_specs=pl.BlockSpec((bm, Np), lambda i: (i, 0)),
        compiler_params=pltpu.CompilerParams(dimension_semantics=("parallel",)),
    )(xb, wb, bb)


def _causal_dwconv_silu_kernel(xp_ref, w_ref, b_ref, o_ref, *, d_conv):
    L = o_ref.shape[1]
    acc = jnp.zeros(o_ref.shape[1:], jnp.float32) + b_ref[...]       # (L, Dp)
    for k in range(d_conv):
        acc = acc + xp_ref[0, k:k + L, :] * w_ref[k:k + 1, :]
    acc = acc * pl.reciprocal(1.0 + jnp.exp(-acc), approx=True)      # SiLU (EUP recip)
    o_ref[0, :, :] = acc


def causal_dwconv_silu(x, w, b):
    """Causal depthwise conv1d (padding=d_conv-1, keep first L) + SiLU.
    x: (B, L, Dp); w: (d_conv, Dp); b: (Dp,).  Dp is a multiple of 128."""
    B, L, Dp = x.shape
    d_conv = w.shape[0]
    xp = jnp.pad(x, ((0, 0), (d_conv - 1, 0), (0, 0)))
    Lp = L + d_conv - 1
    return pl.pallas_call(
        functools.partial(_causal_dwconv_silu_kernel, d_conv=d_conv),
        out_shape=jax.ShapeDtypeStruct((B, L, Dp), jnp.float32),
        grid=(B,),
        in_specs=[
            pl.BlockSpec((1, Lp, Dp), lambda i: (i, 0, 0)),
            pl.BlockSpec((d_conv, Dp), lambda i: (0, 0)),
            pl.BlockSpec((1, Dp), lambda i: (0, 0)),
        ],
        out_specs=pl.BlockSpec((1, L, Dp), lambda i: (i, 0, 0)),
        compiler_params=pltpu.CompilerParams(dimension_semantics=("parallel",)),
    )(xp, w, b.reshape(1, Dp))


def _selective_scan_kernel(xdbl_ref, dt_ref, u_ref, z_ref, a_ref, d_ref, o_ref,
                           *, d_state, dt_rank, chunk):
    L = o_ref.shape[1]
    Dp = o_ref.shape[2]
    A = a_ref[...]                       # (d_state, Dp); row n = -exp(A_log)[:, n] (pad 0)
    Dv = d_ref[...]                      # (1, Dp)
    nchunks = L // chunk

    def body(c, h):                      # h: (d_state, Dp) carried SSM state
        start = pl.multiple_of(c * chunk, chunk)
        sl = pl.ds(start, chunk)
        dt_raw = dt_ref[0, sl, :]                                    # (T, Dp)
        # numerically-stable softplus
        dt_c = jnp.maximum(dt_raw, 0.0) + jnp.log(1.0 + jnp.exp(-jnp.abs(dt_raw)))
        u_c = u_ref[0, sl, :]
        z_c = z_ref[0, sl, :]
        bc = xdbl_ref[0, sl, :]                                      # (T, Xp)
        du = dt_c * u_c
        y = u_c * Dv
        h_rows = []
        for n in range(d_state):         # states evolve independently; tiny static loop
            dA_n = jnp.exp(dt_c * A[n:n + 1, :])                     # (T, Dp)
            inj_n = du * bc[:, dt_rank + n:dt_rank + n + 1]          # (T, Dp) lane-bcast
            c_n = bc[:, dt_rank + d_state + n:dt_rank + d_state + n + 1]   # (T, 1)
            h_n = h[n:n + 1, :]
            hs = []
            for t in range(chunk):       # static unroll over the time chunk
                h_n = dA_n[t:t + 1, :] * h_n + inj_n[t:t + 1, :]
                hs.append(h_n)
            y = y + jnp.concatenate(hs, axis=0) * c_n
            h_rows.append(h_n)
        gate = z_c * pl.reciprocal(1.0 + jnp.exp(-z_c), approx=True)  # * SiLU(z)
        o_ref[0, sl, :] = y * gate
        return jnp.concatenate(h_rows, axis=0)

    lax.fori_loop(0, nchunks, body, jnp.zeros((d_state, Dp), jnp.float32))


def selective_scan(xdbl, dt, u, z, A_t, Dv, *, d_state, dt_rank, chunk=8):
    """xdbl: (B,L,Xp) x_proj slab (B at cols [dt_rank..), C next); dt/u/z: (B,L,Dp);
    A_t: (d_state,Dp); Dv: (1,Dp).  Returns the gated scan output (B,L,Dp)."""
    B, L, Dp = u.shape
    Xp = xdbl.shape[2]
    while L % chunk:
        chunk //= 2
    return pl.pallas_call(
        functools.partial(_selective_scan_kernel, d_state=d_state,
                          dt_rank=dt_rank, chunk=chunk),
        out_shape=jax.ShapeDtypeStruct((B, L, Dp), jnp.float32),
        grid=(B,),
        in_specs=[
            pl.BlockSpec((1, L, Xp), lambda b: (b, 0, 0)),
            pl.BlockSpec((1, L, Dp), lambda b: (b, 0, 0)),
            pl.BlockSpec((1, L, Dp), lambda b: (b, 0, 0)),
            pl.BlockSpec((1, L, Dp), lambda b: (b, 0, 0)),
            pl.BlockSpec((d_state, Dp), lambda b: (0, 0)),
            pl.BlockSpec((1, Dp), lambda b: (0, 0)),
        ],
        out_specs=pl.BlockSpec((1, L, Dp), lambda b: (b, 0, 0)),
        compiler_params=pltpu.CompilerParams(dimension_semantics=("parallel",)),
    )(xdbl, dt, u, z, A_t, Dv)


def _conv_ffn_kernel(xf_ref, wc_ref, bc_ref, w1_ref, w2_ref, o_ref, *, Wp, Cin_p):
    Mr = o_ref.shape[1]
    Cout_p = wc_ref.shape[1]
    acc = jnp.zeros((Mr, Cout_p), jnp.float32) + bc_ref[...]
    for kh in range(3):                  # 3x3 conv = 9 shifted matmuls on the flat image
        for kw in range(3):
            off = kh * Wp + kw
            xs = xf_ref[0, off:off + Mr, :]
            wk = wc_ref[(kh * 3 + kw) * Cin_p:(kh * 3 + kw + 1) * Cin_p, :]
            acc = acc + jnp.dot(xs, wk, preferred_element_type=jnp.float32)
    acc = jnp.minimum(jnp.maximum(acc, 0.0), 6.0)                        # BN folded + ReLU6
    h1 = jnp.dot(acc.astype(jnp.bfloat16), w1_ref[...],
                 preferred_element_type=jnp.float32)
    h1 = 0.5 * h1 * (1.0 + lax.erf(h1 * 0.7071067811865476))             # GELU (exact)
    out = jnp.dot(h1.astype(jnp.bfloat16), w2_ref[...],
                  preferred_element_type=jnp.float32)
    o_ref[0, :, :] = out


def conv_ffn_fused(x, prep, out_ch):
    """Fused ConvFFN: 3x3 conv (pad=1, no bias) + BN + ReLU6 -> 1x1 GELU -> 1x1.
    x: (B, H, W, C) NHWC.  Dropout = identity (eval mode)."""
    B, H, W, C = x.shape
    Cin_p = prep["ffn_wc"].shape[0] // 9
    Cout_p = prep["ffn_wc"].shape[1]
    hid_p = prep["ffn_w1"].shape[1]
    out_p = prep["ffn_w2"].shape[1]
    Wp = W + 2
    xp = jnp.pad(x, ((0, 0), (1, 1), (1, 1), (0, Cin_p - C)))
    xf = xp.reshape(B, (H + 2) * Wp, Cin_p)
    Mr = _round_up(H * Wp, 8)                       # output rows with stride Wp (tail trimmed)
    need = 2 * Wp + 2 + Mr                          # furthest tap offset + row count
    Lf = max((H + 2) * Wp, _round_up(need, 8))
    if Lf > (H + 2) * Wp:
        xf = jnp.pad(xf, ((0, 0), (0, Lf - (H + 2) * Wp), (0, 0)))
    xf = xf.astype(jnp.bfloat16)
    out = pl.pallas_call(
        functools.partial(_conv_ffn_kernel, Wp=Wp, Cin_p=Cin_p),
        out_shape=jax.ShapeDtypeStruct((B, Mr, out_p), jnp.float32),
        grid=(B,),
        in_specs=[
            pl.BlockSpec((1, Lf, Cin_p), lambda i: (i, 0, 0)),
            pl.BlockSpec((9 * Cin_p, Cout_p), lambda i: (0, 0)),
            pl.BlockSpec((1, Cout_p), lambda i: (0, 0)),
            pl.BlockSpec((Cout_p, hid_p), lambda i: (0, 0)),
            pl.BlockSpec((hid_p, out_p), lambda i: (0, 0)),
        ],
        out_specs=pl.BlockSpec((1, Mr, out_p), lambda i: (i, 0, 0)),
        compiler_params=pltpu.CompilerParams(dimension_semantics=("parallel",)),
    )(xf, prep["ffn_wc"].astype(jnp.bfloat16), prep["ffn_bc"],
      prep["ffn_w1"].astype(jnp.bfloat16), prep["ffn_w2"].astype(jnp.bfloat16))
    return out[:, :H * Wp, :out_ch].reshape(B, H, Wp, out_ch)[:, :, :W, :]


# ----------------------------- JAX glue (tiny layout ops) --------------------

def adaptive_avg_pool_nhwc(x, out_size):
    """Matches nn.AdaptiveAvgPool2d(out_size) on NHWC input (tiny PPM maps)."""
    def pool_axis(arr, axis, in_size, out):
        pieces = []
        for i in range(out):
            start = (i * in_size) // out
            end = -((-(i + 1) * in_size) // out)
            sl = [slice(None)] * arr.ndim
            sl[axis] = slice(start, end)
            pieces.append(jnp.mean(arr[tuple(sl)], axis=axis, keepdims=True))
        return jnp.concatenate(pieces, axis=axis)
    B, H, W, C = x.shape
    x = pool_axis(x, 1, H, out_size)
    x = pool_axis(x, 2, W, out_size)
    return x


def bilinear_resize_nhwc(x, out_h, out_w):
    """Matches F.interpolate(mode='bilinear', align_corners=False) on NHWC input."""
    B, in_h, in_w, C = x.shape

    def src_coords(out_size, in_size):
        o = jnp.arange(out_size, dtype=jnp.float32)
        src = (o + 0.5) * (in_size / out_size) - 0.5
        src = jnp.maximum(src, 0.0)
        i0 = jnp.minimum(jnp.floor(src).astype(jnp.int32), in_size - 1)
        i1 = jnp.minimum(i0 + 1, in_size - 1)
        w1 = src - i0.astype(jnp.float32)
        return i0, i1, 1.0 - w1, w1

    h0, h1, wh0, wh1 = src_coords(out_h, in_h)
    v0, v1, wv0, wv1 = src_coords(out_w, in_w)
    top = (x[:, h0, :, :] * wh0[None, :, None, None]
           + x[:, h1, :, :] * wh1[None, :, None, None])
    out = (top[:, :, v0, :] * wv0[None, None, :, None]
           + top[:, :, v1, :] * wv1[None, None, :, None])
    return out


# ----------------------------- dims / weight prep -----------------------------

def derive_dims(cfg):
    Cc = cfg["in_chs"] + 2                           # in_pc_chs = 0
    pool_len = len(cfg["pool_scales"])
    d_model = cfg["dim"] * pool_len + Cc
    d_inner = cfg["expand"] * d_model
    dt_rank = math.ceil(d_model / 16)
    return dict(Cc=Cc, d_model=d_model, d_inner=d_inner, d_state=cfg["d_state"],
                dt_rank=dt_rank, Dp=_round_up(d_inner, 128),
                Kp=_round_up(d_model, 128),
                Xp=_round_up(dt_rank + 2 * cfg["d_state"], 128))


def prepare_params(params, cfg):
    """One-time weight prep: fold eval-mode BN, fuse dt_proj into x_proj, transpose to
    (K, N) matmul layout and zero-pad every feature dim to a multiple of 128 lanes."""
    dims = derive_dims(cfg)
    d_model, d_inner = dims["d_model"], dims["d_inner"]
    d_state, dt_rank = dims["d_state"], dims["dt_rank"]
    Dp, Kp, Xp = dims["Dp"], dims["Kp"], dims["Xp"]
    d_conv = cfg["d_conv"]
    prep = {}

    def fold_bn(w, gamma):               # BN with running mean=0, var=1 (eval, fresh stats)
        return w * (gamma / jnp.sqrt(1.0 + _BN_EPS))[:, None]

    prep["pool"] = [dict(w=fold_bn(p["w"], p["gamma"]).T, b=p["beta"])
                    for p in params["pool"]]

    m = params["mamba"]
    # in_proj: one lane-dense slab, x-half at cols [0,Dp), z-half at [Dp, 2Dp)
    w_in_t = m["in_proj_w"].T                                     # (d_model, 2*d_inner)
    w_in = jnp.zeros((Kp, 2 * Dp), jnp.float32)
    w_in = w_in.at[:d_model, :d_inner].set(w_in_t[:, :d_inner])
    w_in = w_in.at[:d_model, Dp:Dp + d_inner].set(w_in_t[:, d_inner:])
    prep["w_in"] = w_in

    prep["w_conv"] = jnp.zeros((d_conv, Dp), jnp.float32).at[:, :d_inner].set(m["conv1d_w"].T)
    prep["b_conv"] = jnp.zeros((Dp,), jnp.float32).at[:d_inner].set(m["conv1d_b"])

    # x_proj with dt_proj folded in: out cols [0,Xp) = x_dbl, [Xp,Xp+Dp) = dt (pre-softplus)
    w_xp_t = m["x_proj_w"].T                                      # (d_inner, dt_rank+2*d_state)
    w_dt = w_xp_t[:, :dt_rank] @ m["dt_proj_w"].T                 # (d_inner, d_inner)
    w_xpdt = jnp.zeros((Dp, Xp + Dp), jnp.float32)
    w_xpdt = w_xpdt.at[:d_inner, :dt_rank + 2 * d_state].set(w_xp_t)
    w_xpdt = w_xpdt.at[:d_inner, Xp:Xp + d_inner].set(w_dt)
    prep["w_xpdt"] = w_xpdt
    prep["b_xpdt"] = jnp.zeros((Xp + Dp,), jnp.float32).at[Xp:Xp + d_inner].set(m["dt_proj_b"])

    prep["A_t"] = jnp.zeros((d_state, Dp), jnp.float32).at[:, :d_inner].set(-jnp.exp(m["A_log"]).T)
    prep["Dvec"] = jnp.zeros((1, Dp), jnp.float32).at[:, :d_inner].set(m["D"][None, :])
    prep["w_out"] = jnp.zeros((Dp, Kp), jnp.float32).at[:d_inner, :d_model].set(m["out_proj_w"].T)

    # ConvFFN: BN-folded 3x3 weights as 9 stacked (Cin_p, Cout_p) tap blocks + 1x1 fcs
    f = params["ffn"]
    ffn_in = f["conv_w"].shape[0]
    hidden_ch = f["fc1_w"].shape[0]
    out_ch = f["fc2_w"].shape[0]
    Cin_p = _round_up(ffn_in, 128)
    hid_p = _round_up(hidden_ch, 128)
    out_p = _round_up(out_ch, 128)
    scale = f["conv_gamma"] / jnp.sqrt(1.0 + _BN_EPS)
    wc4 = jnp.transpose(f["conv_w"] * scale[:, None, None, None], (2, 3, 1, 0))   # (3,3,Cin,Cout)
    wc4 = jnp.pad(wc4, ((0, 0), (0, 0), (0, Cin_p - ffn_in), (0, Cin_p - ffn_in)))
    prep["ffn_wc"] = wc4.reshape(9 * Cin_p, Cin_p)
    prep["ffn_bc"] = jnp.pad(f["conv_beta"], (0, Cin_p - ffn_in)).reshape(1, Cin_p)
    prep["ffn_w1"] = jnp.pad(f["fc1_w"].T, ((0, Cin_p - ffn_in), (0, hid_p - hidden_ch)))
    prep["ffn_w2"] = jnp.pad(f["fc2_w"].T, ((0, hid_p - hidden_ch), (0, out_p - out_ch)))
    return prep


# ----------------------------- Mamba forward ---------------------------------

def mamba_forward(seq, prep, dims):
    """seq: (B, L, d_model) -> (B, L, d_model).  Mamba(d_model, d_state, d_conv, expand)."""
    B, L, d_model = seq.shape
    Dp, Xp = dims["Dp"], dims["Xp"]

    xz = matmul_bias_act(seq.reshape(B * L, d_model), prep["w_in"])[:B * L]   # (B*L, 2*Dp)
    xs = xz[:, :Dp].reshape(B, L, Dp)
    z = xz[:, Dp:2 * Dp].reshape(B, L, Dp)

    xc = causal_dwconv_silu(xs, prep["w_conv"], prep["b_conv"])               # (B, L, Dp)

    proj = matmul_bias_act(xc.reshape(B * L, Dp), prep["w_xpdt"], prep["b_xpdt"])[:B * L]
    xdbl = proj[:, :Xp].reshape(B, L, Xp)                                     # [dt_raw|B|C|pad]
    dt = proj[:, Xp:Xp + Dp].reshape(B, L, Dp)                                # dt_proj output

    y = selective_scan(xdbl, dt, xc, z, prep["A_t"], prep["Dvec"],
                       d_state=dims["d_state"], dt_rank=dims["dt_rank"])      # (B, L, Dp)

    out = matmul_bias_act(y.reshape(B * L, Dp), prep["w_out"])[:B * L, :d_model]
    return out.reshape(B, L, d_model)


# ----------------------------- MambaBlock forward -----------------------------

def mamba_block_forward(x_nchw, prep, cfg):
    dims = derive_dims(cfg)
    B, Cin, H, W = x_nchw.shape
    lfs = cfg["last_feat_size"]
    dim = cfg["dim"]
    assert H == lfs and W == lfs
    x = jnp.transpose(x_nchw, (0, 2, 3, 1))                    # NHWC from here on

    # MambaFusion grid channels (reference uses np.meshgrid, default indexing='xy')
    xx = jnp.linspace(-0.3, 0.3, lfs, dtype=jnp.float32)
    gx, gy = jnp.meshgrid(xx, xx, indexing="xy")
    grid = jnp.stack([gx, gy], axis=-1)                        # (lfs, lfs, 2)
    grid_b = jnp.broadcast_to(grid[None], (B, H, W, 2))
    # TODO(synk): in_pc_chs=0, so the pc_emb branch contributes no channels here.
    combined = jnp.concatenate([x, grid_b], axis=-1)           # (B, H, W, Cc)
    Cc = combined.shape[-1]

    ppm = [combined]
    # pool branch 0: ConvBNReLU(1x1) -> AdaptiveAvgPool2d(1) -> upsample (= broadcast)
    p0 = prep["pool"][0]
    y0 = matmul_bias_act(combined.reshape(B * H * W, Cc), p0["w"], p0["b"], act="relu6")
    y0 = y0[:B * H * W, :dim].reshape(B, H, W, dim)
    y0 = jnp.mean(y0, axis=(1, 2), keepdims=True)
    ppm.append(jnp.broadcast_to(y0, (B, H, W, dim)))
    # remaining branches: AdaptiveAvgPool2d(s) -> ConvBNReLU(1x1) -> bilinear upsample
    for s, pp in zip(cfg["pool_scales"][1:], prep["pool"][1:]):
        pooled = adaptive_avg_pool_nhwc(combined, s)
        ys = matmul_bias_act(pooled.reshape(B * s * s, Cc), pp["w"], pp["b"], act="relu6")
        ys = ys[:B * s * s, :dim].reshape(B, s, s, dim)
        ppm.append(bilinear_resize_nhwc(ys, H, W))

    xcat = jnp.concatenate(ppm, axis=-1)                       # (B, H, W, d_model)
    assert xcat.shape[-1] == dims["d_model"]
    seq = xcat.reshape(B, H * W, dims["d_model"])              # 'b c h w -> b (h w) c' (free)
    seq = mamba_forward(seq, prep, dims)
    xm = seq.reshape(B, H, W, dims["d_model"])

    out = conv_ffn_fused(xm, prep, cfg["out_ch"])              # Dropout = identity (eval)
    return jnp.transpose(out, (0, 3, 1, 2))                    # NCHW only at the boundary


# ----------------------------- parameter init --------------------------------

def init_params(key, cfg):
    in_chs, dim = cfg["in_chs"], cfg["dim"]
    hidden_ch, out_ch = cfg["hidden_ch"], cfg["out_ch"]
    d_state, d_conv, expand = cfg["d_state"], cfg["d_conv"], cfg["expand"]
    lfs = cfg["last_feat_size"]

    Cc = in_chs + 0 + 2                                  # combined_in_chs (in_pc_chs=0)
    pool_scales = list(range(1, lfs, lfs // 4))
    pool_len = len(pool_scales)
    d_model = dim * pool_len + Cc
    d_inner = expand * d_model
    dt_rank = math.ceil(d_model / 16)

    keys = iter(jax.random.split(key, 64))

    def nrm(shape, scale):
        return scale * jax.random.normal(next(keys), shape, dtype=jnp.float32)

    pool = []
    for _ in range(pool_len):
        pool.append(dict(
            w=nrm((dim, Cc), 1.0 / math.sqrt(Cc)),
            gamma=jnp.ones((dim,), jnp.float32),
            beta=jnp.zeros((dim,), jnp.float32)))

    mamba = dict(
        in_proj_w=nrm((2 * d_inner, d_model), 1.0 / math.sqrt(d_model)),
        conv1d_w=nrm((d_inner, d_conv), 1.0 / math.sqrt(d_conv)),
        conv1d_b=nrm((d_inner,), 0.05),
        x_proj_w=nrm((dt_rank + 2 * d_state, d_inner), 1.0 / math.sqrt(d_inner)),
        dt_proj_w=nrm((d_inner, dt_rank), 1.0 / math.sqrt(dt_rank)),
        dt_proj_b=nrm((d_inner,), 0.1),
        A_log=jnp.log(jnp.broadcast_to(
            jnp.arange(1, d_state + 1, dtype=jnp.float32), (d_inner, d_state))),
        D=jnp.ones((d_inner,), jnp.float32),
        out_proj_w=nrm((d_model, d_inner), 1.0 / math.sqrt(d_inner)),
    )

    ffn_in = d_model
    ffn = dict(
        conv_w=nrm((ffn_in, ffn_in, 3, 3), 1.0 / math.sqrt(ffn_in * 9)),
        conv_gamma=jnp.ones((ffn_in,), jnp.float32),
        conv_beta=jnp.zeros((ffn_in,), jnp.float32),
        fc1_w=nrm((hidden_ch, ffn_in), 1.0 / math.sqrt(ffn_in)),
        fc2_w=nrm((out_ch, hidden_ch), 1.0 / math.sqrt(hidden_ch)),
    )

    cfg_out = dict(cfg)
    cfg_out["pool_scales"] = pool_scales
    return dict(pool=pool, mamba=mamba, ffn=ffn), cfg_out


# ----------------------------- main -------------------------------------------

if __name__ == "__main__":
    cfg = dict(in_chs=8, dim=8, hidden_ch=16, out_ch=8,
               d_state=4, d_conv=4, expand=2, last_feat_size=8)
    key = jax.random.PRNGKey(0)
    pkey, xkey = jax.random.split(key)
    params, cfg = init_params(pkey, cfg)
    prep = prepare_params(params, cfg)

    B = 2
    H = cfg["last_feat_size"]
    x = jax.random.normal(xkey, (B, cfg["in_chs"], H, H), dtype=jnp.float32)

    fwd = jax.jit(lambda x_, p_: mamba_block_forward(x_, p_, cfg))
    out = fwd(x, prep)
    jax.block_until_ready(out)
    assert out.shape == (B, cfg["out_ch"], H, H), out.shape
    assert bool(jnp.all(jnp.isfinite(out)))
    print("KERNEL_OK")
</pallas_src>

<mosaic_0001>
module attributes {stable_mosaic.version = 11 : i64} {
  func.func @_matmul_bias_act_kernel(%arg0: i32, %arg1: memref<64x128xbf16, #tpu.memory_space<vmem>>, %arg2: memref<128x128xbf16, #tpu.memory_space<vmem>>, %arg3: memref<1x128xf32, #tpu.memory_space<vmem>>, %arg4: memref<64x128xf32, #tpu.memory_space<vmem>>) attributes {dimension_semantics = [#tpu.dimension_semantics<parallel>], iteration_bounds = array<i64: 2>, scalar_prefetch = 0 : i64, scratch_operands = 0 : i64, tpu.core_type = #tpu.core_type<tc>, window_params = [{transform_indices = @transform_0, window_bounds = array<i64: 64, 128>}, {pipeline_mode = #tpu.pipeline_mode<synchronous>, transform_indices = @transform_1, window_bounds = array<i64: 128, 128>}, {pipeline_mode = #tpu.pipeline_mode<synchronous>, transform_indices = @transform_2, window_bounds = array<i64: 1, 128>}, {transform_indices = @transform_3, window_bounds = array<i64: 64, 128>}]} {
    %c0 = arith.constant 0 : index
    %c0_0 = arith.constant 0 : index
    %0 = vector.load %arg1[%c0, %c0_0] : memref<64x128xbf16, #tpu.memory_space<vmem>>, vector<64x128xbf16>
    %c0_1 = arith.constant 0 : index
    %c0_2 = arith.constant 0 : index
    %1 = vector.load %arg2[%c0_1, %c0_2] : memref<128x128xbf16, #tpu.memory_space<vmem>>, vector<128x128xbf16>
    %cst = arith.constant dense<0.000000e+00> : vector<64x128xf32>
    %2 = tpu.matmul %0, %1, %cst {dimension_numbers = #tpu.dot_dimension_numbers<[1], [0], [0], [1], [0, 0, 1, 1], [], []>} : vector<64x128xbf16>, vector<128x128xbf16>, vector<64x128xf32> -> vector<64x128xf32>
    %c0_3 = arith.constant 0 : index
    %c0_4 = arith.constant 0 : index
    %3 = vector.load %arg3[%c0_3, %c0_4] : memref<1x128xf32, #tpu.memory_space<vmem>>, vector<1x128xf32>
    %4 = vector.broadcast %3 : vector<1x128xf32> to vector<64x128xf32>
    %5 = arith.addf %2, %4 : vector<64x128xf32>
    %cst_5 = arith.constant 0.000000e+00 : f32
    %6 = vector.broadcast %cst_5 : f32 to vector<64x128xf32>
    %7 = arith.maximumf %5, %6 : vector<64x128xf32>
    %cst_6 = arith.constant 6.000000e+00 : f32
    %8 = vector.broadcast %cst_6 : f32 to vector<64x128xf32>
    %9 = arith.minimumf %7, %8 : vector<64x128xf32>
    %c0_7 = arith.constant 0 : index
    %c0_8 = arith.constant 0 : index
    %10 = vector.load %arg4[%c0_7, %c0_8] : memref<64x128xf32, #tpu.memory_space<vmem>>, vector<64x128xf32>
    tpu.vector_store %arg4[%c0_7, %c0_8], %9 {strides = array<i32>} : memref<64x128xf32, #tpu.memory_space<vmem>>, vector<64x128xf32>,
    return
  }
  func.func @transform_0(%arg0: i32) -> (i32, i32) {
    %c0_i32 = arith.constant 0 : i32
    %c0_i32_0 = arith.constant 0 : i32
    return %arg0, %c0_i32 : i32, i32
  }
  func.func @transform_1(%arg0: i32) -> (i32, i32) {
    %c0_i32 = arith.constant 0 : i32
    %c0_i32_0 = arith.constant 0 : i32
    %c0_i32_1 = arith.constant 0 : i32
    return %c0_i32, %c0_i32_0 : i32, i32
  }
  func.func @transform_2(%arg0: i32) -> (i32, i32) {
    %c0_i32 = arith.constant 0 : i32
    %c0_i32_0 = arith.constant 0 : i32
    %c0_i32_1 = arith.constant 0 : i32
    return %c0_i32, %c0_i32_0 : i32, i32
  }
  func.func @transform_3(%arg0: i32) -> (i32, i32) {
    %c0_i32 = arith.constant 0 : i32
    %c0_i32_0 = arith.constant 0 : i32
    return %arg0, %c0_i32 : i32, i32
  }
}

module attributes {stable_mosaic.version = 11 : i64} {
  func.func @_matmul_bias_act_kernel(%arg0: i32, %arg1: memref<32x128xbf16, #tpu.memory_space<vmem>>, %arg2: memref<128x128xbf16, #tpu.memory_space<vmem>>, %arg3: memref<1x128xf32, #tpu.memory_space<vmem>>, %arg4: memref<32x128xf32, #tpu.memory_space<vmem>>) attributes {dimension_semantics = [#tpu.dimension_semantics<parallel>], iteration_bounds = array<i64: 2>, scalar_prefetch = 0 : i64, scratch_operands = 0 : i64, tpu.core_type = #tpu.core_type<tc>, window_params = [{transform_indices = @transform_0, window_bounds = array<i64: 32, 128>}, {pipeline_mode = #tpu.pipeline_mode<synchronous>, transform_indices = @transform_1, window_bounds = array<i64: 128, 128>}, {pipeline_mode = #tpu.pipeline_mode<synchronous>, transform_indices = @transform_2, window_bounds = array<i64: 1, 128>}, {transform_indices = @transform_3, window_bounds = array<i64: 32, 128>}]} {
    %c0 = arith.constant 0 : index
    %c0_0 = arith.constant 0 : index
    %0 = vector.load %arg1[%c0, %c0_0] : memref<32x128xbf16, #tpu.memory_space<vmem>>, vector<32x128xbf16>
    %c0_1 = arith.constant 0 : index
    %c0_2 = arith.constant 0 : index
    %1 = vector.load %arg2[%c0_1, %c0_2] : memref<128x128xbf16, #tpu.memory_space<vmem>>, vector<128x128xbf16>
    %cst = arith.constant dense<0.000000e+00> : vector<32x128xf32>
    %2 = tpu.matmul %0, %1, %cst {dimension_numbers = #tpu.dot_dimension_numbers<[1], [0], [0], [1], [0, 0, 1, 1], [], []>} : vector<32x128xbf16>, vector<128x128xbf16>, vector<32x128xf32> -> vector<32x128xf32>
    %c0_3 = arith.constant 0 : index
    %c0_4 = arith.constant 0 : index
    %3 = vector.load %arg3[%c0_3, %c0_4] : memref<1x128xf32, #tpu.memory_space<vmem>>, vector<1x128xf32>
    %4 = vector.broadcast %3 : vector<1x128xf32> to vector<32x128xf32>
    %5 = arith.addf %2, %4 : vector<32x128xf32>
    %cst_5 = arith.constant 0.000000e+00 : f32
    %6 = vector.broadcast %cst_5 : f32 to vector<32x128xf32>
    %7 = arith.maximumf %5, %6 : vector<32x128xf32>
    %cst_6 = arith.constant 6.000000e+00 : f32
    %8 = vector.broadcast %cst_6 : f32 to vector<32x128xf32>
    %9 = arith.minimumf %7, %8 : vector<32x128xf32>
    %c0_7 = arith.constant 0 : index
    %c0_8 = arith.constant 0 : index
    %10 = vector.load %arg4[%c0_7, %c0_8] : memref<32x128xf32, #tpu.memory_space<vmem>>, vector<32x128xf32>
    tpu.vector_store %arg4[%c0_7, %c0_8], %9 {strides = array<i32>} : memref<32x128xf32, #tpu.memory_space<vmem>>, vector<32x128xf32>,
    return
  }
  func.func @transform_0(%arg0: i32) -> (i32, i32) {
    %c0_i32 = arith.constant 0 : i32
    %c0_i32_0 = arith.constant 0 : i32
    return %arg0, %c0_i32 : i32, i32
  }
  func.func @transform_1(%arg0: i32) -> (i32, i32) {
    %c0_i32 = arith.constant 0 : i32
    %c0_i32_0 = arith.constant 0 : i32
    %c0_i32_1 = arith.constant 0 : i32
    return %c0_i32, %c0_i32_0 : i32, i32
  }
  func.func @transform_2(%arg0: i32) -> (i32, i32) {
    %c0_i32 = arith.constant 0 : i32
    %c0_i32_0 = arith.constant 0 : i32
    %c0_i32_1 = arith.constant 0 : i32
    return %c0_i32, %c0_i32_0 : i32, i32
  }
  func.func @transform_3(%arg0: i32) -> (i32, i32) {
    %c0_i32 = arith.constant 0 : i32
    %c0_i32_0 = arith.constant 0 : i32
    return %arg0, %c0_i32 : i32, i32
  }
}

module attributes {stable_mosaic.version = 11 : i64} {
  func.func @_matmul_bias_act_kernel(%arg0: i32, %arg1: memref<24x128xbf16, #tpu.memory_space<vmem>>, %arg2: memref<128x128xbf16, #tpu.memory_space<vmem>>, %arg3: memref<1x128xf32, #tpu.memory_space<vmem>>, %arg4: memref<24x128xf32, #tpu.memory_space<vmem>>) attributes {dimension_semantics = [#tpu.dimension_semantics<parallel>], iteration_bounds = array<i64: 1>, scalar_prefetch = 0 : i64, scratch_operands = 0 : i64, tpu.core_type = #tpu.core_type<tc>, window_params = [{transform_indices = @transform_0, window_bounds = array<i64: 24, 128>}, {pipeline_mode = #tpu.pipeline_mode<synchronous>, transform_indices = @transform_1, window_bounds = array<i64: 128, 128>}, {pipeline_mode = #tpu.pipeline_mode<synchronous>, transform_indices = @transform_2, window_bounds = array<i64: 1, 128>}, {transform_indices = @transform_3, window_bounds = array<i64: 24, 128>}]} {
    %c0 = arith.constant 0 : index
    %c0_0 = arith.constant 0 : index
    %0 = vector.load %arg1[%c0, %c0_0] : memref<24x128xbf16, #tpu.memory_space<vmem>>, vector<24x128xbf16>
    %c0_1 = arith.constant 0 : index
    %c0_2 = arith.constant 0 : index
    %1 = vector.load %arg2[%c0_1, %c0_2] : memref<128x128xbf16, #tpu.memory_space<vmem>>, vector<128x128xbf16>
    %cst = arith.constant dense<0.000000e+00> : vector<24x128xf32>
    %2 = tpu.matmul %0, %1, %cst {dimension_numbers = #tpu.dot_dimension_numbers<[1], [0], [0], [1], [0, 0, 1, 1], [], []>} : vector<24x128xbf16>, vector<128x128xbf16>, vector<24x128xf32> -> vector<24x128xf32>
    %c0_3 = arith.constant 0 : index
    %c0_4 = arith.constant 0 : index
    %3 = vector.load %arg3[%c0_3, %c0_4] : memref<1x128xf32, #tpu.memory_space<vmem>>, vector<1x128xf32>
    %4 = vector.broadcast %3 : vector<1x128xf32> to vector<24x128xf32>
    %5 = arith.addf %2, %4 : vector<24x128xf32>
    %cst_5 = arith.constant 0.000000e+00 : f32
    %6 = vector.broadcast %cst_5 : f32 to vector<24x128xf32>
    %7 = arith.maximumf %5, %6 : vector<24x128xf32>
    %cst_6 = arith.constant 6.000000e+00 : f32
    %8 = vector.broadcast %cst_6 : f32 to vector<24x128xf32>
    %9 = arith.minimumf %7, %8 : vector<24x128xf32>
    %c0_7 = arith.constant 0 : index
    %c0_8 = arith.constant 0 : index
    %10 = vector.load %arg4[%c0_7, %c0_8] : memref<24x128xf32, #tpu.memory_space<vmem>>, vector<24x128xf32>
    tpu.vector_store %arg4[%c0_7, %c0_8], %9 {strides = array<i32>} : memref<24x128xf32, #tpu.memory_space<vmem>>, vector<24x128xf32>,
    return
  }
  func.func @transform_0(%arg0: i32) -> (i32, i32) {
    %c0_i32 = arith.constant 0 : i32
    %c0_i32_0 = arith.constant 0 : i32
    return %arg0, %c0_i32 : i32, i32
  }
  func.func @transform_1(%arg0: i32) -> (i32, i32) {
    %c0_i32 = arith.constant 0 : i32
    %c0_i32_0 = arith.constant 0 : i32
    %c0_i32_1 = arith.constant 0 : i32
    return %c0_i32, %c0_i32_0 : i32, i32
  }
  func.func @transform_2(%arg0: i32) -> (i32, i32) {
    %c0_i32 = arith.constant 0 : i32
    %c0_i32_0 = arith.constant 0 : i32
    %c0_i32_1 = arith.constant 0 : i32
    return %c0_i32, %c0_i32_0 : i32, i32
  }
  func.func @transform_3(%arg0: i32) -> (i32, i32) {
    %c0_i32 = arith.constant 0 : i32
    %c0_i32_0 = arith.constant 0 : i32
    return %arg0, %c0_i32 : i32, i32
  }
}

module attributes {stable_mosaic.version = 11 : i64} {
  func.func @_matmul_bias_act_kernel(%arg0: i32, %arg1: memref<64x128xbf16, #tpu.memory_space<vmem>>, %arg2: memref<128x256xbf16, #tpu.memory_space<vmem>>, %arg3: memref<1x256xf32, #tpu.memory_space<vmem>>, %arg4: memref<64x256xf32, #tpu.memory_space<vmem>>) attributes {dimension_semantics = [#tpu.dimension_semantics<parallel>], iteration_bounds = array<i64: 2>, scalar_prefetch = 0 : i64, scratch_operands = 0 : i64, tpu.core_type = #tpu.core_type<tc>, window_params = [{transform_indices = @transform_0, window_bounds = array<i64: 64, 128>}, {pipeline_mode = #tpu.pipeline_mode<synchronous>, transform_indices = @transform_1, window_bounds = array<i64: 128, 256>}, {pipeline_mode = #tpu.pipeline_mode<synchronous>, transform_indices = @transform_2, window_bounds = array<i64: 1, 256>}, {transform_indices = @transform_3, window_bounds = array<i64: 64, 256>}]} {
    %c0 = arith.constant 0 : index
    %c0_0 = arith.constant 0 : index
    %0 = vector.load %arg1[%c0, %c0_0] : memref<64x128xbf16, #tpu.memory_space<vmem>>, vector<64x128xbf16>
    %c0_1 = arith.constant 0 : index
    %c0_2 = arith.constant 0 : index
    %1 = vector.load %arg2[%c0_1, %c0_2] : memref<128x256xbf16, #tpu.memory_space<vmem>>, vector<128x256xbf16>
    %cst = arith.constant dense<0.000000e+00> : vector<64x256xf32>
    %2 = tpu.matmul %0, %1, %cst {dimension_numbers = #tpu.dot_dimension_numbers<[1], [0], [0], [1], [0, 0, 1, 1], [], []>} : vector<64x128xbf16>, vector<128x256xbf16>, vector<64x256xf32> -> vector<64x256xf32>
    %c0_3 = arith.constant 0 : index
    %c0_4 = arith.constant 0 : index
    %3 = vector.load %arg3[%c0_3, %c0_4] : memref<1x256xf32, #tpu.memory_space<vmem>>, vector<1x256xf32>
    %4 = vector.broadcast %3 : vector<1x256xf32> to vector<64x256xf32>
    %5 = arith.addf %2, %4 : vector<64x256xf32>
    %c0_5 = arith.constant 0 : index
    %c0_6 = arith.constant 0 : index
    %6 = vector.load %arg4[%c0_5, %c0_6] : memref<64x256xf32, #tpu.memory_space<vmem>>, vector<64x256xf32>
    tpu.vector_store %arg4[%c0_5, %c0_6], %5 {strides = array<i32>} : memref<64x256xf32, #tpu.memory_space<vmem>>, vector<64x256xf32>,
    return
  }
  func.func @transform_0(%arg0: i32) -> (i32, i32) {
    %c0_i32 = arith.constant 0 : i32
    %c0_i32_0 = arith.constant 0 : i32
    return %arg0, %c0_i32 : i32, i32
  }
  func.func @transform_1(%arg0: i32) -> (i32, i32) {
    %c0_i32 = arith.constant 0 : i32
    %c0_i32_0 = arith.constant 0 : i32
    %c0_i32_1 = arith.constant 0 : i32
    return %c0_i32, %c0_i32_0 : i32, i32
  }
  func.func @transform_2(%arg0: i32) -> (i32, i32) {
    %c0_i32 = arith.constant 0 : i32
    %c0_i32_0 = arith.constant 0 : i32
    %c0_i32_1 = arith.constant 0 : i32
    return %c0_i32, %c0_i32_0 : i32, i32
  }
  func.func @transform_3(%arg0: i32) -> (i32, i32) {
    %c0_i32 = arith.constant 0 : i32
    %c0_i32_0 = arith.constant 0 : i32
    return %arg0, %c0_i32 : i32, i32
  }
}

module attributes {stable_mosaic.version = 11 : i64} {
  func.func @_selective_scan_kernel(%arg0: i32, %arg1: memref<1x64x128xf32, #tpu.memory_space<vmem>>, %arg2: memref<1x64x128xf32, #tpu.memory_space<vmem>>, %arg3: memref<1x64x128xf32, #tpu.memory_space<vmem>>, %arg4: memref<1x64x128xf32, #tpu.memory_space<vmem>>, %arg5: memref<4x128xf32, #tpu.memory_space<vmem>>, %arg6: memref<1x128xf32, #tpu.memory_space<vmem>>, %arg7: memref<1x64x128xf32, #tpu.memory_space<vmem>>) attributes {dimension_semantics = [#tpu.dimension_semantics<parallel>], iteration_bounds = array<i64: 2>, scalar_prefetch = 0 : i64, scratch_operands = 0 : i64, tpu.core_type = #tpu.core_type<tc>, window_params = [{transform_indices = @transform_0, window_bounds = array<i64: 1, 64, 128>}, {transform_indices = @transform_1, window_bounds = array<i64: 1, 64, 128>}, {transform_indices = @transform_2, window_bounds = array<i64: 1, 64, 128>}, {transform_indices = @transform_3, window_bounds = array<i64: 1, 64, 128>}, {pipeline_mode = #tpu.pipeline_mode<synchronous>, transform_indices = @transform_4, window_bounds = array<i64: 4, 128>}, {pipeline_mode = #tpu.pipeline_mode<synchronous>, transform_indices = @transform_5, window_bounds = array<i64: 1, 128>}, {transform_indices = @transform_6, window_bounds = array<i64: 1, 64, 128>}]} {
    %c0 = arith.constant 0 : index
    %c0_0 = arith.constant 0 : index
    %0 = vector.load %arg5[%c0, %c0_0] : memref<4x128xf32, #tpu.memory_space<vmem>>, vector<4x128xf32>
    %c0_1 = arith.constant 0 : index
    %c0_2 = arith.constant 0 : index
    %1 = vector.load %arg6[%c0_1, %c0_2] : memref<1x128xf32, #tpu.memory_space<vmem>>, vector<1x128xf32>
    %cst = arith.constant 0.000000e+00 : f32
    %2 = vector.broadcast %cst : f32 to vector<4x128xf32>
    %c0_i32 = arith.constant 0 : i32
    %c8_i32 = arith.constant 8 : i32
    %3 = arith.addi %c0_i32, %c8_i32 : i32
    %c1_i32 = arith.constant 1 : i32
    %4 = scf.for %arg8 = %c0_i32 to %3 step %c1_i32 iter_args(%arg9 = %2) -> (vector<4x128xf32>)  : i32 {
      %c8_i32_4 = arith.constant 8 : i32
      %5 = arith.muli %arg8, %c8_i32_4 : i32
      %6 = tpu.assume_multiple %5, 8 : i32
      %c0_5 = arith.constant 0 : index
      %7 = arith.index_cast %6 : i32 to index
      %c0_6 = arith.constant 0 : index
      %8 = vector.load %arg2[%c0_5, %7, %c0_6] : memref<1x64x128xf32, #tpu.memory_space<vmem>>, vector<1x8x128xf32>
      %9 = vector.shape_cast %8 : vector<1x8x128xf32> to vector<8x128xf32>
      %cst_7 = arith.constant 0.000000e+00 : f32
      %10 = vector.broadcast %cst_7 : f32 to vector<8x128xf32>
      %11 = arith.maximumf %9, %10 : vector<8x128xf32>
      %12 = math.absf %9 : vector<8x128xf32>
      %cst_8 = arith.constant 0.000000e+00 : f32
      %13 = vector.broadcast %cst_8 : f32 to vector<8x128xf32>
      %14 = arith.subf %13, %12 : vector<8x128xf32>
      %15 = math.exp %14 : vector<8x128xf32>
      %cst_9 = arith.constant 1.000000e+00 : f32
      %16 = vector.broadcast %cst_9 : f32 to vector<8x128xf32>
      %17 = arith.addf %16, %15 : vector<8x128xf32>
      %18 = math.log %17 : vector<8x128xf32>
      %19 = arith.addf %11, %18 : vector<8x128xf32>
      %c0_10 = arith.constant 0 : index
      %20 = arith.index_cast %6 : i32 to index
      %c0_11 = arith.constant 0 : index
      %21 = vector.load %arg3[%c0_10, %20, %c0_11] : memref<1x64x128xf32, #tpu.memory_space<vmem>>, vector<1x8x128xf32>
      %22 = vector.shape_cast %21 : vector<1x8x128xf32> to vector<8x128xf32>
      %c0_12 = arith.constant 0 : index
      %23 = arith.index_cast %6 : i32 to index
      %c0_13 = arith.constant 0 : index
      %24 = vector.load %arg4[%c0_12, %23, %c0_13] : memref<1x64x128xf32, #tpu.memory_space<vmem>>, vector<1x8x128xf32>
      %25 = vector.shape_cast %24 : vector<1x8x128xf32> to vector<8x128xf32>
      %c0_14 = arith.constant 0 : index
      %26 = arith.index_cast %6 : i32 to index
      %c0_15 = arith.constant 0 : index
      %27 = vector.load %arg1[%c0_14, %26, %c0_15] : memref<1x64x128xf32, #tpu.memory_space<vmem>>, vector<1x8x128xf32>
      %28 = vector.shape_cast %27 : vector<1x8x128xf32> to vector<8x128xf32>
      %29 = arith.mulf %19, %22 : vector<8x128xf32>
      %30 = vector.broadcast %1 : vector<1x128xf32> to vector<8x128xf32>
      %31 = arith.mulf %22, %30 : vector<8x128xf32>
      %32 = vector.extract_strided_slice %0 {offsets = [0, 0], sizes = [1, 128], strides = [1, 1]} : vector<4x128xf32> to vector<1x128xf32>
      %33 = vector.broadcast %32 : vector<1x128xf32> to vector<8x128xf32>
      %34 = arith.mulf %19, %33 : vector<8x128xf32>
      %35 = math.exp %34 : vector<8x128xf32>
      %36 = vector.extract_strided_slice %28 {offsets = [0, 3], sizes = [8, 1], strides = [1, 1]} : vector<8x128xf32> to vector<8x1xf32>
      %37 = vector.broadcast %36 : vector<8x1xf32> to vector<8x128xf32>
      %38 = arith.mulf %29, %37 : vector<8x128xf32>
      %39 = vector.extract_strided_slice %28 {offsets = [0, 7], sizes = [8, 1], strides = [1, 1]} : vector<8x128xf32> to vector<8x1xf32>
      %40 = vector.extract_strided_slice %arg9 {offsets = [0, 0], sizes = [1, 128], strides = [1, 1]} : vector<4x128xf32> to vector<1x128xf32>
      %41 = vector.extract_strided_slice %35 {offsets = [0, 0], sizes = [1, 128], strides = [1, 1]} : vector<8x128xf32> to vector<1x128xf32>
      %42 = arith.mulf %41, %40 : vector<1x128xf32>
      %43 = vector.extract_strided_slice %38 {offsets = [0, 0], sizes = [1, 128], strides = [1, 1]} : vector<8x128xf32> to vector<1x128xf32>
      %44 = arith.addf %42, %43 : vector<1x128xf32>
      %45 = vector.extract_strided_slice %35 {offsets = [1, 0], sizes = [1, 128], strides = [1, 1]} : vector<8x128xf32> to vector<1x128xf32>
      %46 = arith.mulf %45, %44 : vector<1x128xf32>
      %47 = vector.extract_strided_slice %38 {offsets = [1, 0], sizes = [1, 128], strides = [1, 1]} : vector<8x128xf32> to vector<1x128xf32>
      %48 = arith.addf %46, %47 : vector<1x128xf32>
      %49 = vector.extract_strided_slice %35 {offsets = [2, 0], sizes = [1, 128], strides = [1, 1]} : vector<8x128xf32> to vector<1x128xf32>
      %50 = arith.mulf %49, %48 : vector<1x128xf32>
      %51 = vector.extract_strided_slice %38 {offsets = [2, 0], sizes = [1, 128], strides = [1, 1]} : vector<8x128xf32> to vector<1x128xf32>
      %52 = arith.addf %50, %51 : vector<1x128xf32>
      %53 = vector.extract_strided_slice %35 {offsets = [3, 0], sizes = [1, 128], strides = [1, 1]} : vector<8x128xf32> to vector<1x128xf32>
      %54 = arith.mulf %53, %52 : vector<1x128xf32>
      %55 = vector.extract_strided_slice %38 {offsets = [3, 0], sizes = [1, 128], strides = [1, 1]} : vector<8x128xf32> to vector<1x128xf32>
      %56 = arith.addf %54, %55 : vector<1x128xf32>
      %57 = vector.extract_strided_slice %35 {offsets = [4, 0], sizes = [1, 128], strides = [1, 1]} : vector<8x128xf32> to vector<1x128xf32>
      %58 = arith.mulf %57, %56 : vector<1x128xf32>
      %59 = vector.extract_strided_slice %38 {offsets = [4, 0], sizes = [1, 128], strides = [1, 1]} : vector<8x128xf32> to vector<1x128xf32>
      %60 = arith.addf %58, %59 : vector<1x128xf32>
      %61 = vector.extract_strided_slice %35 {offsets = [5, 0], sizes = [1, 128], strides = [1, 1]} : vector<8x128xf32> to vector<1x128xf32>
      %62 = arith.mulf %61, %60 : vector<1x128xf32>
      %63 = vector.extract_strided_slice %38 {offsets = [5, 0], sizes = [1, 128], strides = [1, 1]} : vector<8x128xf32> to vector<1x128xf32>
      %64 = arith.addf %62, %63 : vector<1x128xf32>
      %65 = vector.extract_strided_slice %35 {offsets = [6, 0], sizes = [1, 128], strides = [1, 1]} : vector<8x128xf32> to vector<1x128xf32>
      %66 = arith.mulf %65, %64 : vector<1x128xf32>
      %67 = vector.extract_strided_slice %38 {offsets = [6, 0], sizes = [1, 128], strides = [1, 1]} : vector<8x128xf32> to vector<1x128xf32>
      %68 = arith.addf %66, %67 : vector<1x128xf32>
      %69 = vector.extract_strided_slice %35 {offsets = [7, 0], sizes = [1, 128], strides = [1, 1]} : vector<8x128xf32> to vector<1x128xf32>
      %70 = arith.mulf %69, %68 : vector<1x128xf32>
      %71 = vector.extract_strided_slice %38 {offsets = [7, 0], sizes = [1, 128], strides = [1, 1]} : vector<8x128xf32> to vector<1x128xf32>
      %72 = arith.addf %70, %71 : vector<1x128xf32>
      %73 = tpu.concatenate %44, %48, %52, %56, %60, %64, %68, %72 in 0 : vector<1x128xf32>, vector<1x128xf32>, vector<1x128xf32>, vector<1x128xf32>, vector<1x128xf32>, vector<1x128xf32>, vector<1x128xf32>, vector<1x128xf32> -> vector<8x128xf32>
      %74 = vector.broadcast %39 : vector<8x1xf32> to vector<8x128xf32>
      %75 = arith.mulf %73, %74 : vector<8x128xf32>
      %76 = arith.addf %31, %75 : vector<8x128xf32>
      %77 = vector.extract_strided_slice %0 {offsets = [1, 0], sizes = [1, 128], strides = [1, 1]} : vector<4x128xf32> to vector<1x128xf32>
      %78 = vector.broadcast %77 : vector<1x128xf32> to vector<8x128xf32>
      %79 = arith.mulf %19, %78 : vector<8x128xf32>
      %80 = math.exp %79 : vector<8x128xf32>
      %81 = vector.extract_strided_slice %28 {offsets = [0, 4], sizes = [8, 1], strides = [1, 1]} : vector<8x128xf32> to vector<8x1xf32>
      %82 = vector.broadcast %81 : vector<8x1xf32> to vector<8x128xf32>
      %83 = arith.mulf %29, %82 : vector<8x128xf32>
      %84 = vector.extract_strided_slice %28 {offsets = [0, 8], sizes = [8, 1], strides = [1, 1]} : vector<8x128xf32> to vector<8x1xf32>
      %85 = vector.extract_strided_slice %arg9 {offsets = [1, 0], sizes = [1, 128], strides = [1, 1]} : vector<4x128xf32> to vector<1x128xf32>
      %86 = vector.extract_strided_slice %80 {offsets = [0, 0], sizes = [1, 128], strides = [1, 1]} : vector<8x128xf32> to vector<1x128xf32>
      %87 = arith.mulf %86, %85 : vector<1x128xf32>
      %88 = vector.extract_strided_slice %83 {offsets = [0, 0], sizes = [1, 128], strides = [1, 1]} : vector<8x128xf32> to vector<1x128xf32>
      %89 = arith.addf %87, %88 : vector<1x128xf32>
      %90 = vector.extract_strided_slice %80 {offsets = [1, 0], sizes = [1, 128], strides = [1, 1]} : vector<8x128xf32> to vector<1x128xf32>
      %91 = arith.mulf %90, %89 : vector<1x128xf32>
      %92 = vector.extract_strided_slice %83 {offsets = [1, 0], sizes = [1, 128], strides = [1, 1]} : vector<8x128xf32> to vector<1x128xf32>
      %93 = arith.addf %91, %92 : vector<1x128xf32>
      %94 = vector.extract_strided_slice %80 {offsets = [2, 0], sizes = [1, 128], strides = [1, 1]} : vector<8x128xf32> to vector<1x128xf32>
      %95 = arith.mulf %94, %93 : vector<1x128xf32>
      %96 = vector.extract_strided_slice %83 {offsets = [2, 0], sizes = [1, 128], strides = [1, 1]} : vector<8x128xf32> to vector<1x128xf32>
      %97 = arith.addf %95, %96 : vector<1x128xf32>
      %98 = vector.extract_strided_slice %80 {offsets = [3, 0], sizes = [1, 128], strides = [1, 1]} : vector<8x128xf32> to vector<1x128xf32>
      %99 = arith.mulf %98, %97 : vector<1x128xf32>
      %100 = vector.extract_strided_slice %83 {offsets = [3, 0], sizes = [1, 128], strides = [1, 1]} : vector<8x128xf32> to vector<1x128xf32>
      %101 = arith.addf %99, %100 : vector<1x128xf32>
      %102 = vector.extract_strided_slice %80 {offsets = [4, 0], sizes = [1, 128], strides = [1, 1]} : vector<8x128xf32> to vector<1x128xf32>
      %103 = arith.mulf %102, %101 : vector<1x128xf32>
      %104 = vector.extract_strided_slice %83 {offsets = [4, 0], sizes = [1, 128], strides = [1, 1]} : vector<8x128xf32> to vector<1x128xf32>
      %105 = arith.addf %103, %104 : vector<1x128xf32>
      %106 = vector.extract_strided_slice %80 {offsets = [5, 0], sizes = [1, 128], strides = [1, 1]} : vector<8x128xf32> to vector<1x128xf32>
      %107 = arith.mulf %106, %105 : vector<1x128xf32>
      %108 = vector.extract_strided_slice %83 {offsets = [5, 0], sizes = [1, 128], strides = [1, 1]} : vector<8x128xf32> to vector<1x128xf32>
      %109 = arith.addf %107, %108 : vector<1x128xf32>
      %110 = vector.extract_strided_slice %80 {offsets = [6, 0], sizes = [1, 128], strides = [1, 1]} : vector<8x128xf32> to vector<1x128xf32>
      %111 = arith.mulf %110, %109 : vector<1x128xf32>
      %112 = vector.extract_strided_slice %83 {offsets = [6, 0], sizes = [1, 128], strides = [1, 1]} : vector<8x128xf32> to vector<1x128xf32>
      %113 = arith.addf %111, %112 : vector<1x128xf32>
      %114 = vector.extract_strided_slice %80 {offsets = [7, 0], sizes = [1, 128], strides = [1, 1]} : vector<8x128xf32> to vector<1x128xf32>
      %115 = arith.mulf %114, %113 : vector<1x128xf32>
      %116 = vector.extract_strided_slice %83 {offsets = [7, 0], sizes = [1, 128], strides = [1, 1]} : vector<8x128xf32> to vector<1x128xf32>
      %117 = arith.addf %115, %116 : vector<1x128xf32>
      %118 = tpu.concatenate %89, %93, %97, %101, %105, %109, %113, %117 in 0 : vector<1x128xf32>, vector<1x128xf32>, vector<1x128xf32>, vector<1x128xf32>, vector<1x128xf32>, vector<1x128xf32>, vector<1x128xf32>, vector<1x128xf32> -> vector<8x128xf32>
      %119 = vector.broadcast %84 : vector<8x1xf32> to vector<8x128xf32>
      %120 = arith.mulf %118, %119 : vector<8x128xf32>
      %121 = arith.addf %76, %120 : vector<8x128xf32>
      %122 = vector.extract_strided_slice %0 {offsets = [2, 0], sizes = [1, 128], strides = [1, 1]} : vector<4x128xf32> to vector<1x128xf32>
      %123 = vector.broadcast %122 : vector<1x128xf32> to vector<8x128xf32>
      %124 = arith.mulf %19, %123 : vector<8x128xf32>
      %125 = math.exp %124 : vector<8x128xf32>
      %126 = vector.extract_strided_slice %28 {offsets = [0, 5], sizes = [8, 1], strides = [1, 1]} : vector<8x128xf32> to vector<8x1xf32>
      %127 = vector.broadcast %126 : vector<8x1xf32> to vector<8x128xf32>
      %128 = arith.mulf %29, %127 : vector<8x128xf32>
      %129 = vector.extract_strided_slice %28 {offsets = [0, 9], sizes = [8, 1], strides = [1, 1]} : vector<8x128xf32> to vector<8x1xf32>
      %130 = vector.extract_strided_slice %arg9 {offsets = [2, 0], sizes = [1, 128], strides = [1, 1]} : vector<4x128xf32> to vector<1x128xf32>
      %131 = vector.extract_strided_slice %125 {offsets = [0, 0], sizes = [1, 128], strides = [1, 1]} : vector<8x128xf32> to vector<1x128xf32>
      %132 = arith.mulf %131, %130 : vector<1x128xf32>
      %133 = vector.extract_strided_slice %128 {offsets = [0, 0], sizes = [1, 128], strides = [1, 1]} : vector<8x128xf32> to vector<1x128xf32>
      %134 = arith.addf %132, %133 : vector<1x128xf32>
      %135 = vector.extract_strided_slice %125 {offsets = [1, 0], sizes = [1, 128], strides = [1, 1]} : vector<8x128xf32> to vector<1x128xf32>
      %136 = arith.mulf %135, %134 : vector<1x128xf32>
      %137 = vector.extract_strided_slice %128 {offsets = [1, 0], sizes = [1, 128], strides = [1, 1]} : vector<8x128xf32> to vector<1x128xf32>
      %138 = arith.addf %136, %137 : vector<1x128xf32>
      %139 = vector.extract_strided_slice %125 {offsets = [2, 0], sizes = [1, 128], strides = [1, 1]} : vector<8x128xf32> to vector<1x128xf32>
      %140 = arith.mulf %139, %138 : vector<1x128xf32>
      %141 = vector.extract_strided_slice %128 {offsets = [2, 0], sizes = [1, 128], strides = [1, 1]} : vector<8x128xf32> to vector<1x128xf32>
      %142 = arith.addf %140, %141 : vector<1x128xf32>
      %143 = vector.extract_strided_slice %125 {offsets = [3, 0], sizes = [1, 128], strides = [1, 1]} : vector<8x128xf32> to vector<1x128xf32>
      %144 = arith.mulf %143, %142 : vector<1x128xf32>
      %145 = vector.extract_strided_slice %128 {offsets = [3, 0], sizes = [1, 128], strides = [1, 1]} : vector<8x128xf32> to vector<1x128xf32>
      %146 = arith.addf %144, %145 : vector<1x128xf32>
      %147 = vector.extract_strided_slice %125 {offsets = [4, 0], sizes = [1, 128], strides = [1, 1]} : vector<8x128xf32> to vector<1x128xf32>
      %148 = arith.mulf %147, %146 : vector<1x128xf32>
      %149 = vector.extract_strided_slice %128 {offsets = [4, 0], sizes = [1, 128], strides = [1, 1]} : vector<8x128xf32> to vector<1x128xf32>
      %150 = arith.addf %148, %149 : vector<1x128xf32>
      %151 = vector.extract_strided_slice %125 {offsets = [5, 0], sizes = [1, 128], strides = [1, 1]} : vector<8x128xf32> to vector<1x128xf32>
      %152 = arith.mulf %151, %150 : vector<1x128xf32>
      %153 = vector.extract_strided_slice %128 {offsets = [5, 0], sizes = [1, 128], strides = [1, 1]} : vector<8x128xf32> to vector<1x128xf32>
      %154 = arith.addf %152, %153 : vector<1x128xf32>
      %155 = vector.extract_strided_slice %125 {offsets = [6, 0], sizes = [1, 128], strides = [1, 1]} : vector<8x128xf32> to vector<1x128xf32>
      %156 = arith.mulf %155, %154 : vector<1x128xf32>
      %157 = vector.extract_strided_slice %128 {offsets = [6, 0], sizes = [1, 128], strides = [1, 1]} : vector<8x128xf32> to vector<1x128xf32>
      %158 = arith.addf %156, %157 : vector<1x128xf32>
      %159 = vector.extract_strided_slice %125 {offsets = [7, 0], sizes = [1, 128], strides = [1, 1]} : vector<8x128xf32> to vector<1x128xf32>
      %160 = arith.mulf %159, %158 : vector<1x128xf32>
      %161 = vector.extract_strided_slice %128 {offsets = [7, 0], sizes = [1, 128], strides = [1, 1]} : vector<8x128xf32> to vector<1x128xf32>
      %162 = arith.addf %160, %161 : vector<1x128xf32>
      %163 = tpu.concatenate %134, %138, %142, %146, %150, %154, %158, %162 in 0 : vector<1x128xf32>, vector<1x128xf32>, vector<1x128xf32>, vector<1x128xf32>, vector<1x128xf32>, vector<1x128xf32>, vector<1x128xf32>, vector<1x128xf32> -> vector<8x128xf32>
      %164 = vector.broadcast %129 : vector<8x1xf32> to vector<8x128xf32>
      %165 = arith.mulf %163, %164 : vector<8x128xf32>
      %166 = arith.addf %121, %165 : vector<8x128xf32>
      %167 = vector.extract_strided_slice %0 {offsets = [3, 0], sizes = [1, 128], strides = [1, 1]} : vector<4x128xf32> to vector<1x128xf32>
      %168 = vector.broadcast %167 : vector<1x128xf32> to vector<8x128xf32>
      %169 = arith.mulf %19, %168 : vector<8x128xf32>
      %170 = math.exp %169 : vector<8x128xf32>
      %171 = vector.extract_strided_slice %28 {offsets = [0, 6], sizes = [8, 1], strides = [1, 1]} : vector<8x128xf32> to vector<8x1xf32>
      %172 = vector.broadcast %171 : vector<8x1xf32> to vector<8x128xf32>
      %173 = arith.mulf %29, %172 : vector<8x128xf32>
      %174 = vector.extract_strided_slice %28 {offsets = [0, 10], sizes = [8, 1], strides = [1, 1]} : vector<8x128xf32> to vector<8x1xf32>
      %175 = vector.extract_strided_slice %arg9 {offsets = [3, 0], sizes = [1, 128], strides = [1, 1]} : vector<4x128xf32> to vector<1x128xf32>
      %176 = vector.extract_strided_slice %170 {offsets = [0, 0], sizes = [1, 128], strides = [1, 1]} : vector<8x128xf32> to vector<1x128xf32>
      %177 = arith.mulf %176, %175 : vector<1x128xf32>
      %178 = vector.extract_strided_slice %173 {offsets = [0, 0], sizes = [1, 128], strides = [1, 1]} : vector<8x128xf32> to vector<1x128xf32>
      %179 = arith.addf %177, %178 : vector<1x128xf32>
      %180 = vector.extract_strided_slice %170 {offsets = [1, 0], sizes = [1, 128], strides = [1, 1]} : vector<8x128xf32> to vector<1x128xf32>
      %181 = arith.mulf %180, %179 : vector<1x128xf32>
      %182 = vector.extract_strided_slice %173 {offsets = [1, 0], sizes = [1, 128], strides = [1, 1]} : vector<8x128xf32> to vector<1x128xf32>
      %183 = arith.addf %181, %182 : vector<1x128xf32>
      %184 = vector.extract_strided_slice %170 {offsets = [2, 0], sizes = [1, 128], strides = [1, 1]} : vector<8x128xf32> to vector<1x128xf32>
      %185 = arith.mulf %184, %183 : vector<1x128xf32>
      %186 = vector.extract_strided_slice %173 {offsets = [2, 0], sizes = [1, 128], strides = [1, 1]} : vector<8x128xf32> to vector<1x128xf32>
      %187 = arith.addf %185, %186 : vector<1x128xf32>
      %188 = vector.extract_strided_slice %170 {offsets = [3, 0], sizes = [1, 128], strides = [1, 1]} : vector<8x128xf32> to vector<1x128xf32>
      %189 = arith.mulf %188, %187 : vector<1x128xf32>
      %190 = vector.extract_strided_slice %173 {offsets = [3, 0], sizes = [1, 128], strides = [1, 1]} : vector<8x128xf32> to vector<1x128xf32>
      %191 = arith.addf %189, %190 : vector<1x128xf32>
      %192 = vector.extract_strided_slice %170 {offsets = [4, 0], sizes = [1, 128], strides = [1, 1]} : vector<8x128xf32> to vector<1x128xf32>
      %193 = arith.mulf %192, %191 : vector<1x128xf32>
      %194 = vector.extract_strided_slice %173 {offsets = [4, 0], sizes = [1, 128], strides = [1, 1]} : vector<8x128xf32> to vector<1x128xf32>
      %195 = arith.addf %193, %194 : vector<1x128xf32>
      %196 = vector.extract_strided_slice %170 {offsets = [5, 0], sizes = [1, 128], strides = [1, 1]} : vector<8x128xf32> to vector<1x128xf32>
      %197 = arith.mulf %196, %195 : vector<1x128xf32>
      %198 = vector.extract_strided_slice %173 {offsets = [5, 0], sizes = [1, 128], strides = [1, 1]} : vector<8x128xf32> to vector<1x128xf32>
      %199 = arith.addf %197, %198 : vector<1x128xf32>
      %200 = vector.extract_strided_slice %170 {offsets = [6, 0], sizes = [1, 128], strides = [1, 1]} : vector<8x128xf32> to vector<1x128xf32>
      %201 = arith.mulf %200, %199 : vector<1x128xf32>
      %202 = vector.extract_strided_slice %173 {offsets = [6, 0], sizes = [1, 128], strides = [1, 1]} : vector<8x128xf32> to vector<1x128xf32>
      %203 = arith.addf %201, %202 : vector<1x128xf32>
      %204 = vector.extract_strided_slice %170 {offsets = [7, 0], sizes = [1, 128], strides = [1, 1]} : vector<8x128xf32> to vector<1x128xf32>
      %205 = arith.mulf %204, %203 : vector<1x128xf32>
      %206 = vector.extract_strided_slice %173 {offsets = [7, 0], sizes = [1, 128], strides = [1, 1]} : vector<8x128xf32> to vector<1x128xf32>
      %207 = arith.addf %205, %206 : vector<1x128xf32>
      %208 = tpu.concatenate %179, %183, %187, %191, %195, %199, %203, %207 in 0 : vector<1x128xf32>, vector<1x128xf32>, vector<1x128xf32>, vector<1x128xf32>, vector<1x128xf32>, vector<1x128xf32>, vector<1x128xf32>, vector<1x128xf32> -> vector<8x128xf32>
      %209 = vector.broadcast %174 : vector<8x1xf32> to vector<8x128xf32>
      %210 = arith.mulf %208, %209 : vector<8x128xf32>
      %211 = arith.addf %166, %210 : vector<8x128xf32>
      %cst_16 = arith.constant 0.000000e+00 : f32
      %212 = vector.broadcast %cst_16 : f32 to vector<8x128xf32>
      %213 = arith.subf %212, %25 : vector<8x128xf32>
      %214 = math.exp %213 : vector<8x128xf32>
      %cst_17 = arith.constant 1.000000e+00 : f32
      %215 = vector.broadcast %cst_17 : f32 to vector<8x128xf32>
      %216 = arith.addf %215, %214 : vector<8x128xf32>
      %217 = tpu.reciprocal %216 {approx = true} : vector<8x128xf32> -> vector<8x128xf32>
      %218 = arith.mulf %25, %217 : vector<8x128xf32>
      %219 = arith.mulf %211, %218 : vector<8x128xf32>
      %c0_18 = arith.constant 0 : index
      %220 = arith.index_cast %6 : i32 to index
      %c0_19 = arith.constant 0 : index
      %221 = vector.load %arg7[%c0_18, %220, %c0_19] : memref<1x64x128xf32, #tpu.memory_space<vmem>>, vector<1x8x128xf32>
      %222 = vector.shape_cast %221 : vector<1x8x128xf32> to vector<8x128xf32>
      %223 = vector.shape_cast %219 : vector<8x128xf32> to vector<1x8x128xf32>
      tpu.vector_store %arg7[%c0_18, %220, %c0_19], %223 {strides = array<i32>} : memref<1x64x128xf32, #tpu.memory_space<vmem>>, vector<1x8x128xf32>,
      %224 = tpu.concatenate %72, %117, %162, %207 in 0 : vector<1x128xf32>, vector<1x128xf32>, vector<1x128xf32>, vector<1x128xf32> -> vector<4x128xf32>
      scf.yield %224 : vector<4x128xf32>
    }
    %c8_i32_3 = arith.constant 8 : i32
    return
  }
  func.func @transform_0(%arg0: i32) -> (i32, i32, i32) {
    %c0_i32 = arith.constant 0 : i32
    %c0_i32_0 = arith.constant 0 : i32
    %c0_i32_1 = arith.constant 0 : i32
    return %arg0, %c0_i32, %c0_i32_0 : i32, i32, i32
  }
  func.func @transform_1(%arg0: i32) -> (i32, i32, i32) {
    %c0_i32 = arith.constant 0 : i32
    %c0_i32_0 = arith.constant 0 : i32
    %c0_i32_1 = arith.constant 0 : i32
    return %arg0, %c0_i32, %c0_i32_0 : i32, i32, i32
  }
  func.func @transform_2(%arg0: i32) -> (i32, i32, i32) {
    %c0_i32 = arith.constant 0 : i32
    %c0_i32_0 = arith.constant 0 : i32
    %c0_i32_1 = arith.constant 0 : i32
    return %arg0, %c0_i32, %c0_i32_0 : i32, i32, i32
  }
  func.func @transform_3(%arg0: i32) -> (i32, i32, i32) {
    %c0_i32 = arith.constant 0 : i32
    %c0_i32_0 = arith.constant 0 : i32
    %c0_i32_1 = arith.constant 0 : i32
    return %arg0, %c0_i32, %c0_i32_0 : i32, i32, i32
  }
  func.func @transform_4(%arg0: i32) -> (i32, i32) {
    %c0_i32 = arith.constant 0 : i32
    %c0_i32_0 = arith.constant 0 : i32
    %c0_i32_1 = arith.constant 0 : i32
    return %c0_i32, %c0_i32_0 : i32, i32
  }
  func.func @transform_5(%arg0: i32) -> (i32, i32) {
    %c0_i32 = arith.constant 0 : i32
    %c0_i32_0 = arith.constant 0 : i32
    %c0_i32_1 = arith.constant 0 : i32
    return %c0_i32, %c0_i32_0 : i32, i32
  }
  func.func @transform_6(%arg0: i32) -> (i32, i32, i32) {
    %c0_i32 = arith.constant 0 : i32
    %c0_i32_0 = arith.constant 0 : i32
    %c0_i32_1 = arith.constant 0 : i32
    return %arg0, %c0_i32, %c0_i32_0 : i32, i32, i32
  }
}

module attributes {stable_mosaic.version = 11 : i64} {
  func.func @_causal_dwconv_silu_kernel(%arg0: i32, %arg1: memref<1x67x128xf32, #tpu.memory_space<vmem>>, %arg2: memref<4x128xf32, #tpu.memory_space<vmem>>, %arg3: memref<1x128xf32, #tpu.memory_space<vmem>>, %arg4: memref<1x64x128xf32, #tpu.memory_space<vmem>>) attributes {dimension_semantics = [#tpu.dimension_semantics<parallel>], iteration_bounds = array<i64: 2>, scalar_prefetch = 0 : i64, scratch_operands = 0 : i64, tpu.core_type = #tpu.core_type<tc>, window_params = [{transform_indices = @transform_0, window_bounds = array<i64: 1, 67, 128>}, {pipeline_mode = #tpu.pipeline_mode<synchronous>, transform_indices = @transform_1, window_bounds = array<i64: 4, 128>}, {pipeline_mode = #tpu.pipeline_mode<synchronous>, transform_indices = @transform_2, window_bounds = array<i64: 1, 128>}, {transform_indices = @transform_3, window_bounds = array<i64: 1, 64, 128>}]} {
    %cst = arith.constant 0.000000e+00 : f32
    %0 = vector.broadcast %cst : f32 to vector<64x128xf32>
    %c0 = arith.constant 0 : index
    %c0_0 = arith.constant 0 : index
    %1 = vector.load %arg3[%c0, %c0_0] : memref<1x128xf32, #tpu.memory_space<vmem>>, vector<1x128xf32>
    %2 = vector.broadcast %1 : vector<1x128xf32> to vector<64x128xf32>
    %3 = arith.addf %0, %2 : vector<64x128xf32>
    %c0_1 = arith.constant 0 : index
    %c0_2 = arith.constant 0 : index
    %c0_3 = arith.constant 0 : index
    %4 = vector.load %arg1[%c0_1, %c0_2, %c0_3] : memref<1x67x128xf32, #tpu.memory_space<vmem>>, vector<1x64x128xf32>
    %5 = vector.shape_cast %4 : vector<1x64x128xf32> to vector<64x128xf32>
    %c0_4 = arith.constant 0 : index
    %c0_5 = arith.constant 0 : index
    %6 = vector.load %arg2[%c0_4, %c0_5] : memref<4x128xf32, #tpu.memory_space<vmem>>, vector<1x128xf32>
    %7 = vector.broadcast %6 : vector<1x128xf32> to vector<64x128xf32>
    %8 = arith.mulf %5, %7 : vector<64x128xf32>
    %9 = arith.addf %3, %8 : vector<64x128xf32>
    %c0_6 = arith.constant 0 : index
    %c1 = arith.constant 1 : index
    %c0_7 = arith.constant 0 : index
    %10 = vector.load %arg1[%c0_6, %c1, %c0_7] : memref<1x67x128xf32, #tpu.memory_space<vmem>>, vector<1x64x128xf32>
    %11 = vector.shape_cast %10 : vector<1x64x128xf32> to vector<64x128xf32>
    %c1_8 = arith.constant 1 : index
    %c0_9 = arith.constant 0 : index
    %12 = vector.load %arg2[%c1_8, %c0_9] : memref<4x128xf32, #tpu.memory_space<vmem>>, vector<1x128xf32>
    %13 = vector.broadcast %12 : vector<1x128xf32> to vector<64x128xf32>
    %14 = arith.mulf %11, %13 : vector<64x128xf32>
    %15 = arith.addf %9, %14 : vector<64x128xf32>
    %c0_10 = arith.constant 0 : index
    %c2 = arith.constant 2 : index
    %c0_11 = arith.constant 0 : index
    %16 = vector.load %arg1[%c0_10, %c2, %c0_11] : memref<1x67x128xf32, #tpu.memory_space<vmem>>, vector<1x64x128xf32>
    %17 = vector.shape_cast %16 : vector<1x64x128xf32> to vector<64x128xf32>
    %c2_12 = arith.constant 2 : index
    %c0_13 = arith.constant 0 : index
    %18 = vector.load %arg2[%c2_12, %c0_13] : memref<4x128xf32, #tpu.memory_space<vmem>>, vector<1x128xf32>
    %19 = vector.broadcast %18 : vector<1x128xf32> to vector<64x128xf32>
    %20 = arith.mulf %17, %19 : vector<64x128xf32>
    %21 = arith.addf %15, %20 : vector<64x128xf32>
    %c0_14 = arith.constant 0 : index
    %c3 = arith.constant 3 : index
    %c0_15 = arith.constant 0 : index
    %22 = vector.load %arg1[%c0_14, %c3, %c0_15] : memref<1x67x128xf32, #tpu.memory_space<vmem>>, vector<1x64x128xf32>
    %23 = vector.shape_cast %22 : vector<1x64x128xf32> to vector<64x128xf32>
    %c3_16 = arith.constant 3 : index
    %c0_17 = arith.constant 0 : index
    %24 = vector.load %arg2[%c3_16, %c0_17] : memref<4x128xf32, #tpu.memory_space<vmem>>, vector<1x128xf32>
    %25 = vector.broadcast %24 : vector<1x128xf32> to vector<64x128xf32>
    %26 = arith.mulf %23, %25 : vector<64x128xf32>
    %27 = arith.addf %21, %26 : vector<64x128xf32>
    %cst_18 = arith.constant 0.000000e+00 : f32
    %28 = vector.broadcast %cst_18 : f32 to vector<64x128xf32>
    %29 = arith.subf %28, %27 : vector<64x128xf32>
    %30 = math.exp %29 : vector<64x128xf32>
    %cst_19 = arith.constant 1.000000e+00 : f32
    %31 = vector.broadcast %cst_19 : f32 to vector<64x128xf32>
    %32 = arith.addf %31, %30 : vector<64x128xf32>
    %33 = tpu.reciprocal %32 {approx = true} : vector<64x128xf32> -> vector<64x128xf32>
    %34 = arith.mulf %27, %33 : vector<64x128xf32>
    %c0_20 = arith.constant 0 : index
    %c0_21 = arith.constant 0 : index
    %c0_22 = arith.constant 0 : index
    %35 = vector.load %arg4[%c0_20, %c0_21, %c0_22] : memref<1x64x128xf32, #tpu.memory_space<vmem>>, vector<1x64x128xf32>
    %36 = vector.shape_cast %35 : vector<1x64x128xf32> to vector<64x128xf32>
    %37 = vector.shape_cast %34 : vector<64x128xf32> to vector<1x64x128xf32>
    tpu.vector_store %arg4[%c0_20, %c0_21, %c0_22], %37 {strides = array<i32>} : memref<1x64x128xf32, #tpu.memory_space<vmem>>, vector<1x64x128xf32>,
    return
  }
  func.func @transform_0(%arg0: i32) -> (i32, i32, i32) {
    %c0_i32 = arith.constant 0 : i32
    %c0_i32_0 = arith.constant 0 : i32
    %c0_i32_1 = arith.constant 0 : i32
    return %arg0, %c0_i32, %c0_i32_0 : i32, i32, i32
  }
  func.func @transform_1(%arg0: i32) -> (i32, i32) {
    %c0_i32 = arith.constant 0 : i32
    %c0_i32_0 = arith.constant 0 : i32
    %c0_i32_1 = arith.constant 0 : i32
    return %c0_i32, %c0_i32_0 : i32, i32
  }
  func.func @transform_2(%arg0: i32) -> (i32, i32) {
    %c0_i32 = arith.constant 0 : i32
    %c0_i32_0 = arith.constant 0 : i32
    %c0_i32_1 = arith.constant 0 : i32
    return %c0_i32, %c0_i32_0 : i32, i32
  }
  func.func @transform_3(%arg0: i32) -> (i32, i32, i32) {
    %c0_i32 = arith.constant 0 : i32
    %c0_i32_0 = arith.constant 0 : i32
    %c0_i32_1 = arith.constant 0 : i32
    return %arg0, %c0_i32, %c0_i32_0 : i32, i32, i32
  }
}

module attributes {stable_mosaic.version = 11 : i64} {
  func.func @_matmul_bias_act_kernel(%arg0: i32, %arg1: memref<64x128xbf16, #tpu.memory_space<vmem>>, %arg2: memref<128x128xbf16, #tpu.memory_space<vmem>>, %arg3: memref<1x128xf32, #tpu.memory_space<vmem>>, %arg4: memref<64x128xf32, #tpu.memory_space<vmem>>) attributes {dimension_semantics = [#tpu.dimension_semantics<parallel>], iteration_bounds = array<i64: 2>, scalar_prefetch = 0 : i64, scratch_operands = 0 : i64, tpu.core_type = #tpu.core_type<tc>, window_params = [{transform_indices = @transform_0, window_bounds = array<i64: 64, 128>}, {pipeline_mode = #tpu.pipeline_mode<synchronous>, transform_indices = @transform_1, window_bounds = array<i64: 128, 128>}, {pipeline_mode = #tpu.pipeline_mode<synchronous>, transform_indices = @transform_2, window_bounds = array<i64: 1, 128>}, {transform_indices = @transform_3, window_bounds = array<i64: 64, 128>}]} {
    %c0 = arith.constant 0 : index
    %c0_0 = arith.constant 0 : index
    %0 = vector.load %arg1[%c0, %c0_0] : memref<64x128xbf16, #tpu.memory_space<vmem>>, vector<64x128xbf16>
    %c0_1 = arith.constant 0 : index
    %c0_2 = arith.constant 0 : index
    %1 = vector.load %arg2[%c0_1, %c0_2] : memref<128x128xbf16, #tpu.memory_space<vmem>>, vector<128x128xbf16>
    %cst = arith.constant dense<0.000000e+00> : vector<64x128xf32>
    %2 = tpu.matmul %0, %1, %cst {dimension_numbers = #tpu.dot_dimension_numbers<[1], [0], [0], [1], [0, 0, 1, 1], [], []>} : vector<64x128xbf16>, vector<128x128xbf16>, vector<64x128xf32> -> vector<64x128xf32>
    %c0_3 = arith.constant 0 : index
    %c0_4 = arith.constant 0 : index
    %3 = vector.load %arg3[%c0_3, %c0_4] : memref<1x128xf32, #tpu.memory_space<vmem>>, vector<1x128xf32>
    %4 = vector.broadcast %3 : vector<1x128xf32> to vector<64x128xf32>
    %5 = arith.addf %2, %4 : vector<64x128xf32>
    %c0_5 = arith.constant 0 : index
    %c0_6 = arith.constant 0 : index
    %6 = vector.load %arg4[%c0_5, %c0_6] : memref<64x128xf32, #tpu.memory_space<vmem>>, vector<64x128xf32>
    tpu.vector_store %arg4[%c0_5, %c0_6], %5 {strides = array<i32>} : memref<64x128xf32, #tpu.memory_space<vmem>>, vector<64x128xf32>,
    return
  }
  func.func @transform_0(%arg0: i32) -> (i32, i32) {
    %c0_i32 = arith.constant 0 : i32
    %c0_i32_0 = arith.constant 0 : i32
    return %arg0, %c0_i32 : i32, i32
  }
  func.func @transform_1(%arg0: i32) -> (i32, i32) {
    %c0_i32 = arith.constant 0 : i32
    %c0_i32_0 = arith.constant 0 : i32
    %c0_i32_1 = arith.constant 0 : i32
    return %c0_i32, %c0_i32_0 : i32, i32
  }
  func.func @transform_2(%arg0: i32) -> (i32, i32) {
    %c0_i32 = arith.constant 0 : i32
    %c0_i32_0 = arith.constant 0 : i32
    %c0_i32_1 = arith.constant 0 : i32
    return %c0_i32, %c0_i32_0 : i32, i32
  }
  func.func @transform_3(%arg0: i32) -> (i32, i32) {
    %c0_i32 = arith.constant 0 : i32
    %c0_i32_0 = arith.constant 0 : i32
    return %arg0, %c0_i32 : i32, i32
  }
}

module attributes {stable_mosaic.version = 11 : i64} {
  func.func @_conv_ffn_kernel(%arg0: i32, %arg1: memref<1x104x128xbf16, #tpu.memory_space<vmem>>, %arg2: memref<1152x128xbf16, #tpu.memory_space<vmem>>, %arg3: memref<1x128xf32, #tpu.memory_space<vmem>>, %arg4: memref<128x128xbf16, #tpu.memory_space<vmem>>, %arg5: memref<128x128xbf16, #tpu.memory_space<vmem>>, %arg6: memref<1x80x128xf32, #tpu.memory_space<vmem>>) attributes {dimension_semantics = [#tpu.dimension_semantics<parallel>], iteration_bounds = array<i64: 2>, scalar_prefetch = 0 : i64, scratch_operands = 0 : i64, tpu.core_type = #tpu.core_type<tc>, window_params = [{transform_indices = @transform_0, window_bounds = array<i64: 1, 104, 128>}, {pipeline_mode = #tpu.pipeline_mode<synchronous>, transform_indices = @transform_1, window_bounds = array<i64: 1152, 128>}, {pipeline_mode = #tpu.pipeline_mode<synchronous>, transform_indices = @transform_2, window_bounds = array<i64: 1, 128>}, {pipeline_mode = #tpu.pipeline_mode<synchronous>, transform_indices = @transform_3, window_bounds = array<i64: 128, 128>}, {pipeline_mode = #tpu.pipeline_mode<synchronous>, transform_indices = @transform_4, window_bounds = array<i64: 128, 128>}, {transform_indices = @transform_5, window_bounds = array<i64: 1, 80, 128>}]} {
    %cst = arith.constant 0.000000e+00 : f32
    %0 = vector.broadcast %cst : f32 to vector<80x128xf32>
    %c0 = arith.constant 0 : index
    %c0_0 = arith.constant 0 : index
    %1 = vector.load %arg3[%c0, %c0_0] : memref<1x128xf32, #tpu.memory_space<vmem>>, vector<1x128xf32>
    %2 = vector.broadcast %1 : vector<1x128xf32> to vector<80x128xf32>
    %3 = arith.addf %0, %2 : vector<80x128xf32>
    %c0_1 = arith.constant 0 : index
    %c0_2 = arith.constant 0 : index
    %c0_3 = arith.constant 0 : index
    %4 = vector.load %arg1[%c0_1, %c0_2, %c0_3] : memref<1x104x128xbf16, #tpu.memory_space<vmem>>, vector<1x80x128xbf16>
    %5 = vector.shape_cast %4 : vector<1x80x128xbf16> to vector<80x128xbf16>
    %c0_4 = arith.constant 0 : index
    %c0_5 = arith.constant 0 : index
    %6 = vector.load %arg2[%c0_4, %c0_5] : memref<1152x128xbf16, #tpu.memory_space<vmem>>, vector<128x128xbf16>
    %cst_6 = arith.constant dense<0.000000e+00> : vector<80x128xf32>
    %7 = tpu.matmul %5, %6, %cst_6 {dimension_numbers = #tpu.dot_dimension_numbers<[1], [0], [0], [1], [0, 0, 1, 1], [], []>} : vector<80x128xbf16>, vector<128x128xbf16>, vector<80x128xf32> -> vector<80x128xf32>
    %8 = arith.addf %3, %7 : vector<80x128xf32>
    %c0_7 = arith.constant 0 : index
    %c1 = arith.constant 1 : index
    %c0_8 = arith.constant 0 : index
    %9 = vector.load %arg1[%c0_7, %c1, %c0_8] : memref<1x104x128xbf16, #tpu.memory_space<vmem>>, vector<1x80x128xbf16>
    %10 = vector.shape_cast %9 : vector<1x80x128xbf16> to vector<80x128xbf16>
    %c128 = arith.constant 128 : index
    %c0_9 = arith.constant 0 : index
    %11 = vector.load %arg2[%c128, %c0_9] : memref<1152x128xbf16, #tpu.memory_space<vmem>>, vector<128x128xbf16>
    %cst_10 = arith.constant dense<0.000000e+00> : vector<80x128xf32>
    %12 = tpu.matmul %10, %11, %cst_10 {dimension_numbers = #tpu.dot_dimension_numbers<[1], [0], [0], [1], [0, 0, 1, 1], [], []>} : vector<80x128xbf16>, vector<128x128xbf16>, vector<80x128xf32> -> vector<80x128xf32>
    %13 = arith.addf %8, %12 : vector<80x128xf32>
    %c0_11 = arith.constant 0 : index
    %c2 = arith.constant 2 : index
    %c0_12 = arith.constant 0 : index
    %14 = vector.load %arg1[%c0_11, %c2, %c0_12] : memref<1x104x128xbf16, #tpu.memory_space<vmem>>, vector<1x80x128xbf16>
    %15 = vector.shape_cast %14 : vector<1x80x128xbf16> to vector<80x128xbf16>
    %c256 = arith.constant 256 : index
    %c0_13 = arith.constant 0 : index
    %16 = vector.load %arg2[%c256, %c0_13] : memref<1152x128xbf16, #tpu.memory_space<vmem>>, vector<128x128xbf16>
    %cst_14 = arith.constant dense<0.000000e+00> : vector<80x128xf32>
    %17 = tpu.matmul %15, %16, %cst_14 {dimension_numbers = #tpu.dot_dimension_numbers<[1], [0], [0], [1], [0, 0, 1, 1], [], []>} : vector<80x128xbf16>, vector<128x128xbf16>, vector<80x128xf32> -> vector<80x128xf32>
    %18 = arith.addf %13, %17 : vector<80x128xf32>
    %c0_15 = arith.constant 0 : index
    %c10 = arith.constant 10 : index
    %c0_16 = arith.constant 0 : index
    %19 = vector.load %arg1[%c0_15, %c10, %c0_16] : memref<1x104x128xbf16, #tpu.memory_space<vmem>>, vector<1x80x128xbf16>
    %20 = vector.shape_cast %19 : vector<1x80x128xbf16> to vector<80x128xbf16>
    %c384 = arith.constant 384 : index
    %c0_17 = arith.constant 0 : index
    %21 = vector.load %arg2[%c384, %c0_17] : memref<1152x128xbf16, #tpu.memory_space<vmem>>, vector<128x128xbf16>
    %cst_18 = arith.constant dense<0.000000e+00> : vector<80x128xf32>
    %22 = tpu.matmul %20, %21, %cst_18 {dimension_numbers = #tpu.dot_dimension_numbers<[1], [0], [0], [1], [0, 0, 1, 1], [], []>} : vector<80x128xbf16>, vector<128x128xbf16>, vector<80x128xf32> -> vector<80x128xf32>
    %23 = arith.addf %18, %22 : vector<80x128xf32>
    %c0_19 = arith.constant 0 : index
    %c11 = arith.constant 11 : index
    %c0_20 = arith.constant 0 : index
    %24 = vector.load %arg1[%c0_19, %c11, %c0_20] : memref<1x104x128xbf16, #tpu.memory_space<vmem>>, vector<1x80x128xbf16>
    %25 = vector.shape_cast %24 : vector<1x80x128xbf16> to vector<80x128xbf16>
    %c512 = arith.constant 512 : index
    %c0_21 = arith.constant 0 : index
    %26 = vector.load %arg2[%c512, %c0_21] : memref<1152x128xbf16, #tpu.memory_space<vmem>>, vector<128x128xbf16>
    %cst_22 = arith.constant dense<0.000000e+00> : vector<80x128xf32>
    %27 = tpu.matmul %25, %26, %cst_22 {dimension_numbers = #tpu.dot_dimension_numbers<[1], [0], [0], [1], [0, 0, 1, 1], [], []>} : vector<80x128xbf16>, vector<128x128xbf16>, vector<80x128xf32> -> vector<80x128xf32>
    %28 = arith.addf %23, %27 : vector<80x128xf32>
    %c0_23 = arith.constant 0 : index
    %c12 = arith.constant 12 : index
    %c0_24 = arith.constant 0 : index
    %29 = vector.load %arg1[%c0_23, %c12, %c0_24] : memref<1x104x128xbf16, #tpu.memory_space<vmem>>, vector<1x80x128xbf16>
    %30 = vector.shape_cast %29 : vector<1x80x128xbf16> to vector<80x128xbf16>
    %c640 = arith.constant 640 : index
    %c0_25 = arith.constant 0 : index
    %31 = vector.load %arg2[%c640, %c0_25] : memref<1152x128xbf16, #tpu.memory_space<vmem>>, vector<128x128xbf16>
    %cst_26 = arith.constant dense<0.000000e+00> : vector<80x128xf32>
    %32 = tpu.matmul %30, %31, %cst_26 {dimension_numbers = #tpu.dot_dimension_numbers<[1], [0], [0], [1], [0, 0, 1, 1], [], []>} : vector<80x128xbf16>, vector<128x128xbf16>, vector<80x128xf32> -> vector<80x128xf32>
    %33 = arith.addf %28, %32 : vector<80x128xf32>
    %c0_27 = arith.constant 0 : index
    %c20 = arith.constant 20 : index
    %c0_28 = arith.constant 0 : index
    %34 = vector.load %arg1[%c0_27, %c20, %c0_28] : memref<1x104x128xbf16, #tpu.memory_space<vmem>>, vector<1x80x128xbf16>
    %35 = vector.shape_cast %34 : vector<1x80x128xbf16> to vector<80x128xbf16>
    %c768 = arith.constant 768 : index
    %c0_29 = arith.constant 0 : index
    %36 = vector.load %arg2[%c768, %c0_29] : memref<1152x128xbf16, #tpu.memory_space<vmem>>, vector<128x128xbf16>
    %cst_30 = arith.constant dense<0.000000e+00> : vector<80x128xf32>
    %37 = tpu.matmul %35, %36, %cst_30 {dimension_numbers = #tpu.dot_dimension_numbers<[1], [0], [0], [1], [0, 0, 1, 1], [], []>} : vector<80x128xbf16>, vector<128x128xbf16>, vector<80x128xf32> -> vector<80x128xf32>
    %38 = arith.addf %33, %37 : vector<80x128xf32>
    %c0_31 = arith.constant 0 : index
    %c21 = arith.constant 21 : index
    %c0_32 = arith.constant 0 : index
    %39 = vector.load %arg1[%c0_31, %c21, %c0_32] : memref<1x104x128xbf16, #tpu.memory_space<vmem>>, vector<1x80x128xbf16>
    %40 = vector.shape_cast %39 : vector<1x80x128xbf16> to vector<80x128xbf16>
    %c896 = arith.constant 896 : index
    %c0_33 = arith.constant 0 : index
    %41 = vector.load %arg2[%c896, %c0_33] : memref<1152x128xbf16, #tpu.memory_space<vmem>>, vector<128x128xbf16>
    %cst_34 = arith.constant dense<0.000000e+00> : vector<80x128xf32>
    %42 = tpu.matmul %40, %41, %cst_34 {dimension_numbers = #tpu.dot_dimension_numbers<[1], [0], [0], [1], [0, 0, 1, 1], [], []>} : vector<80x128xbf16>, vector<128x128xbf16>, vector<80x128xf32> -> vector<80x128xf32>
    %43 = arith.addf %38, %42 : vector<80x128xf32>
    %c0_35 = arith.constant 0 : index
    %c22 = arith.constant 22 : index
    %c0_36 = arith.constant 0 : index
    %44 = vector.load %arg1[%c0_35, %c22, %c0_36] : memref<1x104x128xbf16, #tpu.memory_space<vmem>>, vector<1x80x128xbf16>
    %45 = vector.shape_cast %44 : vector<1x80x128xbf16> to vector<80x128xbf16>
    %c1024 = arith.constant 1024 : index
    %c0_37 = arith.constant 0 : index
    %46 = vector.load %arg2[%c1024, %c0_37] : memref<1152x128xbf16, #tpu.memory_space<vmem>>, vector<128x128xbf16>
    %cst_38 = arith.constant dense<0.000000e+00> : vector<80x128xf32>
    %47 = tpu.matmul %45, %46, %cst_38 {dimension_numbers = #tpu.dot_dimension_numbers<[1], [0], [0], [1], [0, 0, 1, 1], [], []>} : vector<80x128xbf16>, vector<128x128xbf16>, vector<80x128xf32> -> vector<80x128xf32>
    %48 = arith.addf %43, %47 : vector<80x128xf32>
    %cst_39 = arith.constant 0.000000e+00 : f32
    %49 = vector.broadcast %cst_39 : f32 to vector<80x128xf32>
    %50 = arith.maximumf %48, %49 : vector<80x128xf32>
    %cst_40 = arith.constant 6.000000e+00 : f32
    %51 = vector.broadcast %cst_40 : f32 to vector<80x128xf32>
    %52 = arith.minimumf %50, %51 : vector<80x128xf32>
    %53 = arith.truncf %52 : vector<80x128xf32> to vector<80x128xbf16>
    %c0_41 = arith.constant 0 : index
    %c0_42 = arith.constant 0 : index
    %54 = vector.load %arg4[%c0_41, %c0_42] : memref<128x128xbf16, #tpu.memory_space<vmem>>, vector<128x128xbf16>
    %cst_43 = arith.constant dense<0.000000e+00> : vector<80x128xf32>
    %55 = tpu.matmul %53, %54, %cst_43 {dimension_numbers = #tpu.dot_dimension_numbers<[1], [0], [0], [1], [0, 0, 1, 1], [], []>} : vector<80x128xbf16>, vector<128x128xbf16>, vector<80x128xf32> -> vector<80x128xf32>
    %cst_44 = arith.constant 5.000000e-01 : f32
    %56 = vector.broadcast %cst_44 : f32 to vector<80x128xf32>
    %57 = arith.mulf %56, %55 : vector<80x128xf32>
    %cst_45 = arith.constant 0.707106769 : f32
    %58 = vector.broadcast %cst_45 : f32 to vector<80x128xf32>
    %59 = arith.mulf %55, %58 : vector<80x128xf32>
    %60 = math.erf %59 : vector<80x128xf32>
    %cst_46 = arith.constant 1.000000e+00 : f32
    %61 = vector.broadcast %cst_46 : f32 to vector<80x128xf32>
    %62 = arith.addf %61, %60 : vector<80x128xf32>
    %63 = arith.mulf %57, %62 : vector<80x128xf32>
    %64 = arith.truncf %63 : vector<80x128xf32> to vector<80x128xbf16>
    %c0_47 = arith.constant 0 : index
    %c0_48 = arith.constant 0 : index
    %65 = vector.load %arg5[%c0_47, %c0_48] : memref<128x128xbf16, #tpu.memory_space<vmem>>, vector<128x128xbf16>
    %cst_49 = arith.constant dense<0.000000e+00> : vector<80x128xf32>
    %66 = tpu.matmul %64, %65, %cst_49 {dimension_numbers = #tpu.dot_dimension_numbers<[1], [0], [0], [1], [0, 0, 1, 1], [], []>} : vector<80x128xbf16>, vector<128x128xbf16>, vector<80x128xf32> -> vector<80x128xf32>
    %c0_50 = arith.constant 0 : index
    %c0_51 = arith.constant 0 : index
    %c0_52 = arith.constant 0 : index
    %67 = vector.load %arg6[%c0_50, %c0_51, %c0_52] : memref<1x80x128xf32, #tpu.memory_space<vmem>>, vector<1x80x128xf32>
    %68 = vector.shape_cast %67 : vector<1x80x128xf32> to vector<80x128xf32>
    %69 = vector.shape_cast %66 : vector<80x128xf32> to vector<1x80x128xf32>
    tpu.vector_store %arg6[%c0_50, %c0_51, %c0_52], %69 {strides = array<i32>} : memref<1x80x128xf32, #tpu.memory_space<vmem>>, vector<1x80x128xf32>,
    return
  }
  func.func @transform_0(%arg0: i32) -> (i32, i32, i32) {
    %c0_i32 = arith.constant 0 : i32
    %c0_i32_0 = arith.constant 0 : i32
    %c0_i32_1 = arith.constant 0 : i32
    return %arg0, %c0_i32, %c0_i32_0 : i32, i32, i32
  }
  func.func @transform_1(%arg0: i32) -> (i32, i32) {
    %c0_i32 = arith.constant 0 : i32
    %c0_i32_0 = arith.constant 0 : i32
    %c0_i32_1 = arith.constant 0 : i32
    return %c0_i32, %c0_i32_0 : i32, i32
  }
  func.func @transform_2(%arg0: i32) -> (i32, i32) {
    %c0_i32 = arith.constant 0 : i32
    %c0_i32_0 = arith.constant 0 : i32
    %c0_i32_1 = arith.constant 0 : i32
    return %c0_i32, %c0_i32_0 : i32, i32
  }
  func.func @transform_3(%arg0: i32) -> (i32, i32) {
    %c0_i32 = arith.constant 0 : i32
    %c0_i32_0 = arith.constant 0 : i32
    %c0_i32_1 = arith.constant 0 : i32
    return %c0_i32, %c0_i32_0 : i32, i32
  }
  func.func @transform_4(%arg0: i32) -> (i32, i32) {
    %c0_i32 = arith.constant 0 : i32
    %c0_i32_0 = arith.constant 0 : i32
    %c0_i32_1 = arith.constant 0 : i32
    return %c0_i32, %c0_i32_0 : i32, i32
  }
  func.func @transform_5(%arg0: i32) -> (i32, i32, i32) {
    %c0_i32 = arith.constant 0 : i32
    %c0_i32_0 = arith.constant 0 : i32
    %c0_i32_1 = arith.constant 0 : i32
    return %arg0, %c0_i32, %c0_i32_0 : i32, i32, i32
  }
}

</mosaic_0001>

<bundles_post_ra>
// kernel: _lambda_.13
= control target key start
LH: loop header
LB: loop body
LE: loop exit
PB: predicated region body
PF: predicated region fallthrough
CT: control target
= control target key end

     0   :  { %s515_s12 = smov 0   ;;  %s573_s0 = inlined_call_operand.vmem [shape: bf16[128,128], index: 0, kind: input, shape index: {}]   ;;  %s574_s1 = inlined_call_operand.vmem [shape: bf16[128,128], index: 1, kind: input, shape index: {}]   ;;  %s575_s2 = inlined_call_operand.vmem [shape: f32[1,128], index: 2, kind: input, shape index: {}]   ;;  %s576_s3 = inlined_call_operand.vmem [shape: f32[128,128], index: 3, kind: output, shape index: {}]  }
   0x1 LB: > { %s383_s13 = sadd.s32 4294967295, %s493_s12   ;;  %p387_p0 = scmp.ge.s32.totalorder %s493_s12, 1  ;;  %s493_s12 = sphi %s515_s12, %s13_s12  }
   0x2   : > { %p138_p1 = scmp.lt.s32.totalorder %s493_s12, 3 }
   0x4   : > { %p139_p2 = pnand %p387_p0, %p138_p1 }
   0x5   : > { %s388_s22 = sshll.u32 (!%p139_p2), %s383_s13, 3 }
   0x6   : > { %142 = sbr.rel (%p139_p2) target bundleno = 192 (0xc0), region = 32  ;;  %p163_p3 = scmp.lt.s32.totalorder (!%p139_p2), %s388_s22, 15 }
   0xb   : > { %v453_v0 = vld [vmem:[%s574_s1 + $0x38] sm:$0xff]  ;;  %v452_v1 = vld [vmem:[%s574_s1 + $0x30] sm:$0xff]  ;;  %v451_v2 = vld [vmem:[%s574_s1 + $0x28] sm:$0xff]  ;;  %s578_s22 = smov (!%p163_p3, %s388_s22), 15 }
   0xc   : > { %274 = vmatpush.bf16.msra.mxu0 %v453_v0  ;;  %454 = vmatpush.bf16.msra.mxu1 %v453_v0  ;;  %v450_v3 = vld [vmem:[%s574_s1 + $0x20] sm:$0xff]  ;;  %v449_v4 = vld [vmem:[%s574_s1 + $0x18] sm:$0xff]  ;;  %v448_v5 = vld [vmem:[%s574_s1 + $0x10] sm:$0xff]  ;;  %s389_s29 = sshll.u32 %s578_s22, 2  ;;  %s391_s10 = sshll.u32 %s578_s22, 3 }
   0xd   : > { %455 = vmatpush.bf16.msra.mxu2 %v453_v0  ;;  %456 = vmatpush.bf16.msra.mxu3 %v453_v0  ;;  %v447_v6 = vld [vmem:[%s574_s1 + $0x8] sm:$0xff]  ;;  %v446_v7 = vld [vmem:[%s574_s1] sm:$0xff]  ;;  %s166_s7 = scalar_lea.vmem %s573_s0, %s389_s29  ;;  %s560_s14 = scalar_lea.vmem %s576_s3, %s391_s10 }
   0xe   : > { %v442_v8 = vld [vmem:[%s166_s7] sm:$0xff]  ;;  %v443_v9 = vld [vmem:[%s166_s7 + $0x8] sm:$0xff]  ;;  %v444_v10 = vld [vmem:[%s166_s7 + $0x10] sm:$0xff] }
   0xf   : > { %v445_v11 = vld [vmem:[%s166_s7 + $0x18] sm:$0xff]  ;;  %v486_v12 = vld [vmem:[%s575_s2] ss:$0 sm:$0xff] }
  0x10   : > { %275 = vmatpush.bf16.msra.mxu0 %v452_v1  ;;  %457 = vmatpush.bf16.msra.mxu1 %v452_v1 }
  0x11   : > { %458 = vmatpush.bf16.msra.mxu2 %v452_v1  ;;  %459 = vmatpush.bf16.msra.mxu3 %v452_v1 }
  0x14   : > { %276 = vmatpush.bf16.msra.mxu0 %v451_v2  ;;  %460 = vmatpush.bf16.msra.mxu1 %v451_v2 }
  0x15   : > { %461 = vmatpush.bf16.msra.mxu2 %v451_v2  ;;  %462 = vmatpush.bf16.msra.mxu3 %v451_v2 }
  0x18   : > { %277 = vmatpush.bf16.msra.mxu0 %v450_v3  ;;  %463 = vmatpush.bf16.msra.mxu1 %v450_v3 }
  0x19   : > { %464 = vmatpush.bf16.msra.mxu2 %v450_v3  ;;  %465 = vmatpush.bf16.msra.mxu3 %v450_v3 }
  0x1c   : > { %278 = vmatpush.bf16.msra.mxu0 %v449_v4  ;;  %466 = vmatpush.bf16.msra.mxu1 %v449_v4 }
  0x1d   : > { %467 = vmatpush.bf16.msra.mxu2 %v449_v4  ;;  %468 = vmatpush.bf16.msra.mxu3 %v449_v4 }
  0x20   : > { %279 = vmatpush.bf16.msra.mxu0 %v448_v5  ;;  %469 = vmatpush.bf16.msra.mxu1 %v448_v5 }
  0x21   : > { %470 = vmatpush.bf16.msra.mxu2 %v448_v5  ;;  %471 = vmatpush.bf16.msra.mxu3 %v448_v5 }
  0x24   : > { %280 = vmatpush.bf16.msra.mxu0 %v447_v6  ;;  %472 = vmatpush.bf16.msra.mxu1 %v447_v6 }
  0x25   : > { %473 = vmatpush.bf16.msra.mxu2 %v447_v6  ;;  %474 = vmatpush.bf16.msra.mxu3 %v447_v6 }
  0x28   : > { %281 = vmatpush.bf16.msra.mxu0 %v446_v7  ;;  %475 = vmatpush.bf16.msra.mxu1 %v446_v7 }
  0x29   : > { %476 = vmatpush.bf16.msra.mxu2 %v446_v7  ;;  %477 = vmatpush.bf16.msra.mxu3 %v446_v7 }
  0x2b   : > { %282 = vmatmul.bf16.vlgmr.msra.gmra.mxu0 %v442_v8  ;;  %287 = vmatmul.bf16.vlgmr.msra.gmra.mxu1 %v443_v9 }
  0x2c   : > { %292 = vmatmul.bf16.vlgmr.msra.gmra.mxu2 %v444_v10  ;;  %297 = vmatmul.bf16.vlgmr.msra.gmra.mxu3 %v445_v11 }
  0xa8   : > { %v283_v13 = vpop.f32.mrf.mxu0  ;;  %v288_v14 = vpop.f32.mrf.mxu1 }
  0xa9   : > { %v284_v15 = vadd.f32 %v486_v12, %v283_v13  ;;  %v289_v16 = vadd.f32 %v486_v12, %v288_v14 }
  0xab   : > { %v303_v17 = vmax.f32 %v284_v15, 0.0  ;;  %v305_v18 = vmax.f32 %v289_v16, 0.0 }
  0xad   : > { %v311_v19 = vmin.f32 %v303_v17, 6.0  ;;  %v313_v20 = vmin.f32 %v305_v18, 6.0 }
  0xaf   : > { %319 = vst [vmem:[%s560_s14] sm:$0xff] %v311_v19  ;;  %v293_v21 = vpop.f32.mrf.mxu2  ;;  %v298_v22 = vpop.f32.mrf.mxu3 }
  0xb0   : > { %321 = vst [vmem:[%s560_s14 + $0x10] sm:$0xff] %v313_v20  ;;  %v294_v23 = vadd.f32 %v486_v12, %v293_v21  ;;  %v299_v24 = vadd.f32 %v486_v12, %v298_v22  ;;  %v285_v25 = vpop.f32.mrf.mxu0  ;;  %v290_v26 = vpop.f32.mrf.mxu1 }
  0xb1   : > { %v286_v27 = vadd.f32 %v486_v12, %v285_v25  ;;  %v291_v28 = vadd.f32 %v486_v12, %v290_v26 }
  0xb2   : > { %v307_v29 = vmax.f32 %v294_v23, 0.0  ;;  %v309_v30 = vmax.f32 %v299_v24, 0.0 }
  0xb3   : > { %v304_v31 = vmax.f32 %v286_v27, 0.0  ;;  %v306_v32 = vmax.f32 %v291_v28, 0.0 }
  0xb4   : > { %v315_v33 = vmin.f32 %v307_v29, 6.0  ;;  %v317_v34 = vmin.f32 %v309_v30, 6.0 }
  0xb5   : > { %v312_v35 = vmin.f32 %v304_v31, 6.0  ;;  %v314_v36 = vmin.f32 %v306_v32, 6.0 }
  0xb6   : > { %323 = vst [vmem:[%s560_s14 + $0x20] sm:$0xff] %v315_v33 }
  0xb7   : > { %325 = vst [vmem:[%s560_s14 + $0x30] sm:$0xff] %v317_v34  ;;  %v295_v37 = vpop.f32.mrf.mxu2  ;;  %v300_v38 = vpop.f32.mrf.mxu3 }
  0xb8   : > { %320 = vst [vmem:[%s560_s14 + $0x8] sm:$0xff] %v312_v35  ;;  %v296_v39 = vadd.f32 %v486_v12, %v295_v37  ;;  %v301_v40 = vadd.f32 %v486_v12, %v300_v38 }
  0xb9   : > { %322 = vst [vmem:[%s560_s14 + $0x18] sm:$0xff] %v314_v36 }
  0xba   : > { %v308_v41 = vmax.f32 %v296_v39, 0.0  ;;  %v310_v42 = vmax.f32 %v301_v40, 0.0 }
  0xbc   : > { %v316_v43 = vmin.f32 %v308_v41, 6.0  ;;  %v318_v44 = vmin.f32 %v310_v42, 6.0 }
  0xbe   : > { %324 = vst [vmem:[%s560_s14 + $0x28] sm:$0xff] %v316_v43 }
  0xbf   : > { %326 = vst [vmem:[%s560_s14 + $0x38] sm:$0xff] %v318_v44 }
  0xc0 PF: > { %s13_s12 = sadd.s32 1, %s493_s12  }
  0xc1   : > { %p10_p4 = scmp.ge.s32.totalorder %s13_s12, 4  }
  0xc3   :  { %12 = sbr.rel (!%p10_p4) target bundleno = 1 (0x1), region = 62 }

// kernel: _lambda_.12
= control target key start
LH: loop header
LB: loop body
LE: loop exit
PB: predicated region body
PF: predicated region fallthrough
CT: control target
= control target key end

     0   :  { %s451_s12 = smov 0   ;;  %s495_s0 = inlined_call_operand.vmem [shape: bf16[64,128], index: 0, kind: input, shape index: {}]   ;;  %s496_s1 = inlined_call_operand.vmem [shape: bf16[128,128], index: 1, kind: input, shape index: {}]   ;;  %s497_s2 = inlined_call_operand.vmem [shape: f32[1,128], index: 2, kind: input, shape index: {}]   ;;  %s498_s3 = inlined_call_operand.vmem [shape: f32[64,128], index: 3, kind: output, shape index: {}]  }
   0x1 LB: > { %s345_s13 = sadd.s32 4294967295, %s429_s12   ;;  %p349_p0 = scmp.ge.s32.totalorder %s429_s12, 1  ;;  %s429_s12 = sphi %s451_s12, %s13_s12  }
   0x2   : > { %p138_p1 = scmp.lt.s32.totalorder %s429_s12, 3 }
   0x4   : > { %p139_p2 = pnand %p349_p0, %p138_p1 }
   0x5   : > { %s350_s22 = sshll.u32 (!%p139_p2), %s345_s13, 2 }
   0x6   : > { %142 = sbr.rel (%p139_p2) target bundleno = 185 (0xb9), region = 32  ;;  %p163_p3 = scmp.lt.s32.totalorder (!%p139_p2), %s350_s22, 7 }
   0xb   : > { %v405_v0 = vld [vmem:[%s496_s1 + $0x38] sm:$0xff]  ;;  %v404_v1 = vld [vmem:[%s496_s1 + $0x30] sm:$0xff]  ;;  %v403_v2 = vld [vmem:[%s496_s1 + $0x28] sm:$0xff]  ;;  %s500_s22 = smov (!%p163_p3, %s350_s22), 7 }
   0xc   : > { %258 = vmatpush.bf16.msra.mxu0 %v405_v0  ;;  %406 = vmatpush.bf16.msra.mxu1 %v405_v0  ;;  %v402_v3 = vld [vmem:[%s496_s1 + $0x20] sm:$0xff]  ;;  %v401_v4 = vld [vmem:[%s496_s1 + $0x18] sm:$0xff]  ;;  %v400_v5 = vld [vmem:[%s496_s1 + $0x10] sm:$0xff]  ;;  %s351_s29 = sshll.u32 %s500_s22, 2  ;;  %s353_s10 = sshll.u32 %s500_s22, 3 }
   0xd   : > { %v399_v6 = vld [vmem:[%s496_s1 + $0x8] sm:$0xff]  ;;  %v398_v7 = vld [vmem:[%s496_s1] sm:$0xff]  ;;  %s166_s7 = scalar_lea.vmem %s495_s0, %s351_s29  ;;  %s172_s14 = scalar_lea.vmem %s498_s3, %s353_s10 }
   0xe   : > { %v396_v8 = vld [vmem:[%s166_s7] sm:$0xff]  ;;  %v397_v9 = vld [vmem:[%s166_s7 + $0x8] sm:$0xff] }
   0xf   : > { %v422_v10 = vld [vmem:[%s497_s2] ss:$0 sm:$0xff] }
  0x10   : > { %259 = vmatpush.bf16.msra.mxu0 %v404_v1  ;;  %407 = vmatpush.bf16.msra.mxu1 %v404_v1 }
  0x14   : > { %260 = vmatpush.bf16.msra.mxu0 %v403_v2  ;;  %408 = vmatpush.bf16.msra.mxu1 %v403_v2 }
  0x18   : > { %261 = vmatpush.bf16.msra.mxu0 %v402_v3  ;;  %409 = vmatpush.bf16.msra.mxu1 %v402_v3 }
  0x1c   : > { %262 = vmatpush.bf16.msra.mxu0 %v401_v4  ;;  %410 = vmatpush.bf16.msra.mxu1 %v401_v4 }
  0x20   : > { %263 = vmatpush.bf16.msra.mxu0 %v400_v5  ;;  %411 = vmatpush.bf16.msra.mxu1 %v400_v5 }
  0x24   : > { %264 = vmatpush.bf16.msra.mxu0 %v399_v6  ;;  %412 = vmatpush.bf16.msra.mxu1 %v399_v6 }
  0x28   : > { %265 = vmatpush.bf16.msra.mxu0 %v398_v7  ;;  %413 = vmatpush.bf16.msra.mxu1 %v398_v7 }
  0x2b   : > { %266 = vmatmul.bf16.vlgmr.msra.gmra.mxu0 %v396_v8  ;;  %271 = vmatmul.bf16.vlgmr.msra.gmra.mxu1 %v397_v9 }
  0xa8   : > { %v267_v11 = vpop.f32.mrf.mxu0  ;;  %v272_v12 = vpop.f32.mrf.mxu1 }
  0xa9   : > { %v268_v13 = vadd.f32 %v422_v10, %v267_v11  ;;  %v273_v16 = vadd.f32 %v422_v10, %v272_v12 }
  0xab   : > { %v277_v14 = vmax.f32 %v268_v13, 0.0  ;;  %v279_v21 = vmax.f32 %v273_v16, 0.0 }
  0xad   : > { %v281_v15 = vmin.f32 %v277_v14, 6.0  ;;  %v283_v25 = vmin.f32 %v279_v21, 6.0 }
  0xaf   : > { %285 = vst [vmem:[%s172_s14] sm:$0xff] %v281_v15 }
  0xb0   : > { %v269_v17 = vpop.f32.mrf.mxu0  ;;  %v274_v18 = vpop.f32.mrf.mxu1  ;;  %287 = vst [vmem:[%s172_s14 + $0x10] sm:$0xff] %v283_v25 }
  0xb1   : > { %v270_v19 = vadd.f32 %v422_v10, %v269_v17  ;;  %v275_v20 = vadd.f32 %v422_v10, %v274_v18 }
  0xb3   : > { %v278_v22 = vmax.f32 %v270_v19, 0.0  ;;  %v280_v23 = vmax.f32 %v275_v20, 0.0 }
  0xb5   : > { %v282_v24 = vmin.f32 %v278_v22, 6.0  ;;  %v284_v26 = vmin.f32 %v280_v23, 6.0 }
  0xb7   : > { %286 = vst [vmem:[%s172_s14 + $0x8] sm:$0xff] %v282_v24 }
  0xb8   : > { %288 = vst [vmem:[%s172_s14 + $0x18] sm:$0xff] %v284_v26 }
  0xb9 PF: > { %s13_s12 = sadd.s32 1, %s429_s12  }
  0xba   : > { %p10_p4 = scmp.ge.s32.totalorder %s13_s12, 4  }
  0xbc   :  { %12 = sbr.rel (!%p10_p4) target bundleno = 1 (0x1), region = 62 }

// kernel: _lambda_.11
= control target key start
LH: loop header
LB: loop body
LE: loop exit
PB: predicated region body
PF: predicated region fallthrough
CT: control target
= control target key end

     0   :  { %s242_s1 = inlined_call_operand.vmem [shape: bf16[128,128], index: 1, kind: input, shape index: {}]   ;;  %s243_s2 = inlined_call_operand.vmem [shape: f32[1,128], index: 2, kind: input, shape index: {}]   ;;  %s244_s0 = inlined_call_operand.vmem [shape: bf16[24,128], index: 0, kind: input, shape index: {}]   ;;  %s245_s3 = inlined_call_operand.vmem [shape: f32[24,128], index: 3, kind: output, shape index: {}]  }
   0x1   :  { %v170_v0 = vld [vmem:[%s242_s1 + $0x38] sm:$0xff]  ;;  %v169_v1 = vld [vmem:[%s242_s1 + $0x30] sm:$0xff]  ;;  %v168_v2 = vld [vmem:[%s242_s1 + $0x28] sm:$0xff] }
   0x2   :  { %95 = vmatpush.bf16.msra.mxu0 %v170_v0  ;;  %171 = vmatpush.bf16.msra.mxu1 %v170_v0  ;;  %v167_v3 = vld [vmem:[%s242_s1 + $0x20] sm:$0xff]  ;;  %v166_v4 = vld [vmem:[%s242_s1 + $0x18] sm:$0xff]  ;;  %v165_v5 = vld [vmem:[%s242_s1 + $0x10] sm:$0xff] }
   0x3   :  { %v164_v6 = vld [vmem:[%s242_s1 + $0x8] sm:$0xff]  ;;  %v163_v9 = vld [vmem:[%s242_s1] sm:$0xff] }
   0x4   :  { %v16_v7 = vld [vmem:[%s244_s0 + $0x8] sm:$0xf]  ;;  %v162_v10 = vld [vmem:[%s244_s0] sm:$0xff] }
   0x5   :  { %v42_v8 = vunpack.c.l.b16 %v16_v7  ;;  %v179_v12 = vld [vmem:[%s243_s2] ss:$0 sm:$0xff] }
   0x6   :  { %96 = vmatpush.bf16.msra.mxu0 %v169_v1  ;;  %172 = vmatpush.bf16.msra.mxu1 %v169_v1 }
   0x7   :  { %v44_v11 = vpack.c.b16 %v42_v8, %v42_v8 }
   0xa   :  { %97 = vmatpush.bf16.msra.mxu0 %v168_v2  ;;  %173 = vmatpush.bf16.msra.mxu1 %v168_v2 }
   0xe   :  { %98 = vmatpush.bf16.msra.mxu0 %v167_v3  ;;  %174 = vmatpush.bf16.msra.mxu1 %v167_v3 }
  0x12   :  { %99 = vmatpush.bf16.msra.mxu0 %v166_v4  ;;  %175 = vmatpush.bf16.msra.mxu1 %v166_v4 }
  0x16   :  { %100 = vmatpush.bf16.msra.mxu0 %v165_v5  ;;  %176 = vmatpush.bf16.msra.mxu1 %v165_v5 }
  0x1a   :  { %101 = vmatpush.bf16.msra.mxu0 %v164_v6  ;;  %177 = vmatpush.bf16.msra.mxu1 %v164_v6 }
  0x1e   :  { %102 = vmatpush.bf16.msra.mxu0 %v163_v9  ;;  %178 = vmatpush.bf16.msra.mxu1 %v163_v9 }
  0x21   :  { %103 = vmatmul.bf16.vlgmr.msra.gmra.mxu0 %v162_v10  ;;  %108 = vmatmul.bf16.vlgmr.msra.gmra.mxu1 %v44_v11 }
  0x9e   :  { %v104_v13 = vpop.f32.mrf.mxu0  ;;  %v109_v14 = vpop.f32.mrf.mxu1 }
  0x9f   :  { %v105_v15 = vadd.f32 %v179_v12, %v104_v13  ;;  %v110_v16 = vadd.f32 %v179_v12, %v109_v14 }
  0xa1   :  { %v113_v17 = vmax.f32 %v105_v15, 0.0  ;;  %v115_v18 = vmax.f32 %v110_v16, 0.0 }
  0xa3   :  { %v116_v19 = vmin.f32 %v113_v17, 6.0  ;;  %v118_v20 = vmin.f32 %v115_v18, 6.0 }
  0xa5   :  { %119 = vst [vmem:[%s245_s3] sm:$0xff] %v116_v19 }
  0xa6   :  { %121 = vst [vmem:[%s245_s3 + $0x10] sm:$0xff] %v118_v20  ;;  %v106_v21 = vpop.f32.mrf.mxu0  ;;  %v111_v22 = vpop.f32.mrf.mxu1 }
  0xa7   :  { %v107_v23 = vadd.f32 %v179_v12, %v106_v21 }
  0xa9   :  { %v114_v24 = vmax.f32 %v107_v23, 0.0 }
  0xab   :  { %v117_v25 = vmin.f32 %v114_v24, 6.0 }
  0xad   :  { %120 = vst [vmem:[%s245_s3 + $0x8] sm:$0xff] %v117_v25 }

// kernel: _lambda_.14
= control target key start
LH: loop header
LB: loop body
LE: loop exit
PB: predicated region body
PF: predicated region fallthrough
CT: control target
= control target key end

     0   :  { %s607_s12 = smov 0   ;;  %s747_s0 = inlined_call_operand.vmem [shape: bf16[128,128], index: 0, kind: input, shape index: {}]   ;;  %s748_s1 = inlined_call_operand.vmem [shape: bf16[128,256], index: 1, kind: input, shape index: {}]   ;;  %s749_s2 = inlined_call_operand.vmem [shape: f32[1,256], index: 2, kind: input, shape index: {}]   ;;  %s750_s3 = inlined_call_operand.vmem [shape: f32[128,256], index: 3, kind: output, shape index: {}]  }
   0x1 LB: > { %s442_s13 = sadd.s32 4294967295, %s585_s12   ;;  %p446_p0 = scmp.ge.s32.totalorder %s585_s12, 1  ;;  %s585_s12 = sphi %s607_s12, %s13_s12  }
   0x2   : > { %p138_p1 = scmp.lt.s32.totalorder %s585_s12, 3 }
   0x4   : > { %p139_p2 = pnand %p446_p0, %p138_p1 }
   0x5   : > { %s447_s29 = sshll.u32 (!%p139_p2), %s442_s13, 3 }
   0x6   : > { %142 = sbr.rel (%p139_p2) target bundleno = 205 (0xcd), region = 32  ;;  %p164_p3 = scmp.lt.s32.totalorder (!%p139_p2), %s447_s29, 15 }
   0xb   : > { %v526_v0 = vld [vmem:[%s748_s1 + $0x70] sm:$0xf]  ;;  %v554_v1 = vld [vmem:[%s748_s1 + $0x74] sm:$0xf0]  ;;  %v553_v2 = vld [vmem:[%s748_s1 + $0x74] sm:$0xf] }
   0xc   : > { %v527_v3 = vor.u32 %v554_v1, %v526_v0  ;;  %v528_v4 = vld [vmem:[%s748_s1 + $0x78] sm:$0xf0]  ;;  %v518_v5 = vld [vmem:[%s748_s1 + $0x60] sm:$0xf]  ;;  %v552_v6 = vld [vmem:[%s748_s1 + $0x64] sm:$0xf0] }
   0xd   : > { %v531_v7 = vor.u32 %v553_v2, %v528_v4  ;;  %v551_v8 = vld [vmem:[%s748_s1 + $0x64] sm:$0xf]  ;;  %v520_v9 = vld [vmem:[%s748_s1 + $0x68] sm:$0xf0]  ;;  %v519_v10 = vor.u32 %v552_v6, %v518_v5  ;;  %v510_v12 = vld [vmem:[%s748_s1 + $0x50] sm:$0xf] }
   0xe   : > { %310 = vmatpush.bf16.msra.mxu0 %v527_v3  ;;  %555 = vmatpush.bf16.msra.mxu2 %v527_v3  ;;  %v523_v11 = vor.u32 %v551_v8, %v520_v9  ;;  %v550_v13 = vld [vmem:[%s748_s1 + $0x54] sm:$0xf0]  ;;  %v549_v14 = vld [vmem:[%s748_s1 + $0x54] sm:$0xf]  ;;  %v512_v15 = vld [vmem:[%s748_s1 + $0x58] sm:$0xf0] }
   0xf   : > { %339 = vmatpush.bf16.msra.mxu1 %v531_v7  ;;  %563 = vmatpush.bf16.msra.mxu3 %v531_v7  ;;  %v511_v16 = vor.u32 %v550_v13, %v510_v12  ;;  %v515_v17 = vor.u32 %v549_v14, %v512_v15  ;;  %v502_v18 = vld [vmem:[%s748_s1 + $0x40] sm:$0xf]  ;;  %v548_v19 = vld [vmem:[%s748_s1 + $0x44] sm:$0xf0]  ;;  %v547_v20 = vld [vmem:[%s748_s1 + $0x44] sm:$0xf] }
  0x10   : > { %v504_v21 = vld [vmem:[%s748_s1 + $0x48] sm:$0xf0]  ;;  %v503_v22 = vor.u32 %v548_v19, %v502_v18  ;;  %v494_v24 = vld [vmem:[%s748_s1 + $0x30] sm:$0xf]  ;;  %v546_v25 = vld [vmem:[%s748_s1 + $0x34] sm:$0xf0] }
  0x11   : > { %v507_v23 = vor.u32 %v547_v20, %v504_v21  ;;  %v545_v26 = vld [vmem:[%s748_s1 + $0x34] sm:$0xf]  ;;  %v496_v27 = vld [vmem:[%s748_s1 + $0x38] sm:$0xf0]  ;;  %v495_v28 = vor.u32 %v546_v25, %v494_v24  ;;  %v486_v30 = vld [vmem:[%s748_s1 + $0x20] sm:$0xf] }
  0x12   : > { %311 = vmatpush.bf16.msra.mxu0 %v519_v10  ;;  %556 = vmatpush.bf16.msra.mxu2 %v519_v10  ;;  %v499_v29 = vor.u32 %v545_v26, %v496_v27  ;;  %v544_v31 = vld [vmem:[%s748_s1 + $0x24] sm:$0xf0]  ;;  %v543_v32 = vld [vmem:[%s748_s1 + $0x24] sm:$0xf]  ;;  %v488_v33 = vld [vmem:[%s748_s1 + $0x28] sm:$0xf0] }
  0x13   : > { %340 = vmatpush.bf16.msra.mxu1 %v523_v11  ;;  %564 = vmatpush.bf16.msra.mxu3 %v523_v11  ;;  %v487_v34 = vor.u32 %v544_v31, %v486_v30  ;;  %v491_v35 = vor.u32 %v543_v32, %v488_v33  ;;  %v478_v36 = vld [vmem:[%s748_s1 + $0x10] sm:$0xf]  ;;  %v542_v37 = vld [vmem:[%s748_s1 + $0x14] sm:$0xf0]  ;;  %s752_s29 = smov (!%p164_p3, %s447_s29), 15 }
  0x14   : > { %v541_v38 = vld [vmem:[%s748_s1 + $0x14] sm:$0xf]  ;;  %v480_v39 = vld [vmem:[%s748_s1 + $0x18] sm:$0xf0]  ;;  %v479_v40 = vor.u32 %v542_v37, %v478_v36  ;;  %v470_v42 = vld [vmem:[%s748_s1] sm:$0xf] }
  0x15   : > { %v483_v41 = vor.u32 %v541_v38, %v480_v39  ;;  %v540_v43 = vld [vmem:[%s748_s1 + $0x4] sm:$0xf0]  ;;  %s448_s24 = sshll.u32 %s752_s29, 2  ;;  %v539_v44 = vld [vmem:[%s748_s1 + $0x4] sm:$0xf]  ;;  %s534_s8 = sshll.u32 %s752_s29, 4 }
  0x16   : > { %312 = vmatpush.bf16.msra.mxu0 %v511_v16  ;;  %557 = vmatpush.bf16.msra.mxu2 %v511_v16  ;;  %v472_v45 = vld [vmem:[%s748_s1 + $0x8] sm:$0xf0]  ;;  %v471_v46 = vor.u32 %v540_v43, %v470_v42  ;;  %s167_s5 = scalar_lea.vmem %s747_s0, %s448_s24  ;;  %v200_v52 = vld [vmem:[%s749_s2] sm:$0x3]  ;;  %s726_s10 = scalar_lea.vmem %s750_s3, %s534_s8 }
  0x17   : > { %341 = vmatpush.bf16.msra.mxu1 %v515_v17  ;;  %565 = vmatpush.bf16.msra.mxu3 %v515_v17  ;;  %v475_v47 = vor.u32 %v539_v44, %v472_v45  ;;  %v535_v48 = vld [vmem:[%s167_s5] sm:$0xff]  ;;  %v537_v49 = vld [vmem:[%s167_s5 + $0x10] sm:$0xff]  ;;  %v536_v50 = vld [vmem:[%s167_s5 + $0x8] sm:$0xff]  ;;  %v202_v53 = vperm.slane %v200_v52, 0  ;;  %v203_v54 = vperm.slane %v200_v52, 1 }
  0x18   : > { %v538_v51 = vld [vmem:[%s167_s5 + $0x18] sm:$0xff] }
  0x1a   : > { %313 = vmatpush.bf16.msra.mxu0 %v503_v22  ;;  %558 = vmatpush.bf16.msra.mxu2 %v503_v22 }
  0x1b   : > { %342 = vmatpush.bf16.msra.mxu1 %v507_v23  ;;  %566 = vmatpush.bf16.msra.mxu3 %v507_v23 }
  0x1e   : > { %314 = vmatpush.bf16.msra.mxu0 %v495_v28  ;;  %559 = vmatpush.bf16.msra.mxu2 %v495_v28 }
  0x1f   : > { %343 = vmatpush.bf16.msra.mxu1 %v499_v29  ;;  %567 = vmatpush.bf16.msra.mxu3 %v499_v29 }
  0x22   : > { %315 = vmatpush.bf16.msra.mxu0 %v487_v34  ;;  %560 = vmatpush.bf16.msra.mxu2 %v487_v34 }
  0x23   : > { %344 = vmatpush.bf16.msra.mxu1 %v491_v35  ;;  %568 = vmatpush.bf16.msra.mxu3 %v491_v35 }
  0x26   : > { %316 = vmatpush.bf16.msra.mxu0 %v479_v40  ;;  %561 = vmatpush.bf16.msra.mxu2 %v479_v40 }
  0x27   : > { %345 = vmatpush.bf16.msra.mxu1 %v483_v41  ;;  %569 = vmatpush.bf16.msra.mxu3 %v483_v41 }
  0x2a   : > { %317 = vmatpush.bf16.msra.mxu0 %v471_v46  ;;  %562 = vmatpush.bf16.msra.mxu2 %v471_v46 }
  0x2b   : > { %346 = vmatpush.bf16.msra.mxu1 %v475_v47  ;;  %570 = vmatpush.bf16.msra.mxu3 %v475_v47 }
  0x2d   : > { %318 = vmatmul.bf16.vlgmr.msra.gmra.mxu0 %v535_v48  ;;  %328 = vmatmul.bf16.vlgmr.msra.gmra.mxu2 %v537_v49 }
  0x2e   : > { %347 = vmatmul.bf16.vlgmr.msra.gmra.mxu1 %v535_v48  ;;  %357 = vmatmul.bf16.vlgmr.msra.gmra.mxu3 %v537_v49 }
  0x3d   : > { %323 = vmatmul.bf16.gmra.mxu0 %v536_v50  ;;  %333 = vmatmul.bf16.gmra.mxu2 %v538_v51 }
  0x3e   : > { %352 = vmatmul.bf16.gmra.mxu1 %v536_v50  ;;  %362 = vmatmul.bf16.gmra.mxu3 %v538_v51 }
  0xaa   : > { %v319_v55 = vpop.f32.mrf.mxu0 }
  0xab   : > { %v320_v56 = vadd.f32 %v319_v55, %v202_v53  ;;  %v348_v57 = vpop.f32.mrf.mxu1 }
  0xac   : > { %v349_v58 = vadd.f32 %v348_v57, %v203_v54 }
  0xad   : > { %368 = vst [vmem:[%s726_s10] sm:$0xff] %v320_v56 }
  0xae   : > { %369 = vst [vmem:[%s726_s10 + $0x8] sm:$0xff] %v349_v58 }
  0xb0   : > { %v329_v59 = vpop.f32.mrf.mxu2 }
  0xb1   : > { %v330_v60 = vadd.f32 %v329_v59, %v202_v53  ;;  %v358_v61 = vpop.f32.mrf.mxu3 }
  0xb2   : > { %v359_v62 = vadd.f32 %v358_v61, %v203_v54  ;;  %v321_v63 = vpop.f32.mrf.mxu0 }
  0xb3   : > { %376 = vst [vmem:[%s726_s10 + $0x40] sm:$0xff] %v330_v60  ;;  %v322_v0 = vadd.f32 %v321_v63, %v202_v53  ;;  %v350_v1 = vpop.f32.mrf.mxu1 }
  0xb4   : > { %377 = vst [vmem:[%s726_s10 + $0x48] sm:$0xff] %v359_v62  ;;  %v351_v2 = vadd.f32 %v350_v1, %v203_v54 }
  0xb5   : > { %370 = vst [vmem:[%s726_s10 + $0x10] sm:$0xff] %v322_v0 }
  0xb6   : > { %371 = vst [vmem:[%s726_s10 + $0x18] sm:$0xff] %v351_v2 }
  0xb8   : > { %v331_v3 = vpop.f32.mrf.mxu2 }
  0xb9   : > { %v332_v4 = vadd.f32 %v331_v3, %v202_v53  ;;  %v360_v5 = vpop.f32.mrf.mxu3 }
  0xba   : > { %v361_v6 = vadd.f32 %v360_v5, %v203_v54  ;;  %v324_v7 = vpop.f32.mrf.mxu0 }
  0xbb   : > { %378 = vst [vmem:[%s726_s10 + $0x50] sm:$0xff] %v332_v4  ;;  %v325_v8 = vadd.f32 %v324_v7, %v202_v53  ;;  %v353_v9 = vpop.f32.mrf.mxu1 }
  0xbc   : > { %379 = vst [vmem:[%s726_s10 + $0x58] sm:$0xff] %v361_v6  ;;  %v354_v10 = vadd.f32 %v353_v9, %v203_v54 }
  0xbd   : > { %372 = vst [vmem:[%s726_s10 + $0x20] sm:$0xff] %v325_v8 }
  0xbe   : > { %373 = vst [vmem:[%s726_s10 + $0x28] sm:$0xff] %v354_v10 }
  0xc0   : > { %v334_v11 = vpop.f32.mrf.mxu2 }
  0xc1   : > { %v335_v12 = vadd.f32 %v334_v11, %v202_v53  ;;  %v363_v13 = vpop.f32.mrf.mxu3 }
  0xc2   : > { %v364_v14 = vadd.f32 %v363_v13, %v203_v54  ;;  %v326_v15 = vpop.f32.mrf.mxu0 }
  0xc3   : > { %380 = vst [vmem:[%s726_s10 + $0x60] sm:$0xff] %v335_v12  ;;  %v327_v16 = vadd.f32 %v326_v15, %v202_v53  ;;  %v355_v17 = vpop.f32.mrf.mxu1 }
  0xc4   : > { %381 = vst [vmem:[%s726_s10 + $0x68] sm:$0xff] %v364_v14  ;;  %v356_v18 = vadd.f32 %v355_v17, %v203_v54 }
  0xc5   : > { %374 = vst [vmem:[%s726_s10 + $0x30] sm:$0xff] %v327_v16 }
  0xc6   : > { %375 = vst [vmem:[%s726_s10 + $0x38] sm:$0xff] %v356_v18 }
  0xc8   : > { %v336_v19 = vpop.f32.mrf.mxu2 }
  0xc9   : > { %v337_v20 = vadd.f32 %v336_v19, %v202_v53  ;;  %v365_v21 = vpop.f32.mrf.mxu3 }
  0xca   : > { %v366_v22 = vadd.f32 %v365_v21, %v203_v54 }
  0xcb   : > { %382 = vst [vmem:[%s726_s10 + $0x70] sm:$0xff] %v337_v20 }
  0xcc   : > { %383 = vst [vmem:[%s726_s10 + $0x78] sm:$0xff] %v366_v22 }
  0xcd PF: > { %s13_s12 = sadd.s32 1, %s585_s12  }
  0xce   : > { %p10_p4 = scmp.ge.s32.totalorder %s13_s12, 4  }
  0xd0   :  { %12 = sbr.rel (!%p10_p4) target bundleno = 1 (0x1), region = 62 }

// kernel: _lambda_.18
= control target key start
LH: loop header
LB: loop body
LE: loop exit
PB: predicated region body
PF: predicated region fallthrough
CT: control target
= control target key end

     0   :  { %s499_s12 = smov 0   ;;  %s543_s0 = inlined_call_operand.vmem [shape: bf16[128,128], index: 0, kind: input, shape index: {}]   ;;  %s544_s1 = inlined_call_operand.vmem [shape: bf16[128,128], index: 1, kind: input, shape index: {}]   ;;  %s545_s2 = inlined_call_operand.vmem [shape: f32[1,128], index: 2, kind: input, shape index: {}]   ;;  %s546_s3 = inlined_call_operand.vmem [shape: f32[128,128], index: 3, kind: output, shape index: {}]  }
   0x1 LB: > { %s367_s13 = sadd.s32 4294967295, %s477_s12   ;;  %p371_p0 = scmp.ge.s32.totalorder %s477_s12, 1  ;;  %s477_s12 = sphi %s499_s12, %s13_s12  }
   0x2   : > { %p138_p1 = scmp.lt.s32.totalorder %s477_s12, 3 }
   0x4   : > { %p139_p2 = pnand %p371_p0, %p138_p1 }
   0x5   : > { %s372_s22 = sshll.u32 (!%p139_p2), %s367_s13, 3 }
   0x6   : > { %142 = sbr.rel (%p139_p2) target bundleno = 188 (0xbc), region = 32  ;;  %p163_p3 = scmp.lt.s32.totalorder (!%p139_p2), %s372_s22, 15 }
   0xb   : > { %v437_v0 = vld [vmem:[%s544_s1 + $0x38] sm:$0xff]  ;;  %v436_v1 = vld [vmem:[%s544_s1 + $0x30] sm:$0xff]  ;;  %v435_v2 = vld [vmem:[%s544_s1 + $0x28] sm:$0xff]  ;;  %s548_s22 = smov (!%p163_p3, %s372_s22), 15 }
   0xc   : > { %274 = vmatpush.bf16.msra.mxu0 %v437_v0  ;;  %438 = vmatpush.bf16.msra.mxu1 %v437_v0  ;;  %v434_v3 = vld [vmem:[%s544_s1 + $0x20] sm:$0xff]  ;;  %v433_v4 = vld [vmem:[%s544_s1 + $0x18] sm:$0xff]  ;;  %v432_v5 = vld [vmem:[%s544_s1 + $0x10] sm:$0xff]  ;;  %s373_s29 = sshll.u32 %s548_s22, 2  ;;  %s375_s8 = sshll.u32 %s548_s22, 3 }
   0xd   : > { %439 = vmatpush.bf16.msra.mxu2 %v437_v0  ;;  %440 = vmatpush.bf16.msra.mxu3 %v437_v0  ;;  %v431_v6 = vld [vmem:[%s544_s1 + $0x8] sm:$0xff]  ;;  %v430_v7 = vld [vmem:[%s544_s1] sm:$0xff]  ;;  %s166_s7 = scalar_lea.vmem %s543_s0, %s373_s29  ;;  %s172_s14 = scalar_lea.vmem %s546_s3, %s375_s8 }
   0xe   : > { %v426_v8 = vld [vmem:[%s166_s7] sm:$0xff]  ;;  %v427_v9 = vld [vmem:[%s166_s7 + $0x8] sm:$0xff]  ;;  %v428_v10 = vld [vmem:[%s166_s7 + $0x10] sm:$0xff] }
   0xf   : > { %v429_v11 = vld [vmem:[%s166_s7 + $0x18] sm:$0xff]  ;;  %v470_v12 = vld [vmem:[%s545_s2] ss:$0 sm:$0xff] }
  0x10   : > { %275 = vmatpush.bf16.msra.mxu0 %v436_v1  ;;  %441 = vmatpush.bf16.msra.mxu1 %v436_v1 }
  0x11   : > { %442 = vmatpush.bf16.msra.mxu2 %v436_v1  ;;  %443 = vmatpush.bf16.msra.mxu3 %v436_v1 }
  0x14   : > { %276 = vmatpush.bf16.msra.mxu0 %v435_v2  ;;  %444 = vmatpush.bf16.msra.mxu1 %v435_v2 }
  0x15   : > { %445 = vmatpush.bf16.msra.mxu2 %v435_v2  ;;  %446 = vmatpush.bf16.msra.mxu3 %v435_v2 }
  0x18   : > { %277 = vmatpush.bf16.msra.mxu0 %v434_v3  ;;  %447 = vmatpush.bf16.msra.mxu1 %v434_v3 }
  0x19   : > { %448 = vmatpush.bf16.msra.mxu2 %v434_v3  ;;  %449 = vmatpush.bf16.msra.mxu3 %v434_v3 }
  0x1c   : > { %278 = vmatpush.bf16.msra.mxu0 %v433_v4  ;;  %450 = vmatpush.bf16.msra.mxu1 %v433_v4 }
  0x1d   : > { %451 = vmatpush.bf16.msra.mxu2 %v433_v4  ;;  %452 = vmatpush.bf16.msra.mxu3 %v433_v4 }
  0x20   : > { %279 = vmatpush.bf16.msra.mxu0 %v432_v5  ;;  %453 = vmatpush.bf16.msra.mxu1 %v432_v5 }
  0x21   : > { %454 = vmatpush.bf16.msra.mxu2 %v432_v5  ;;  %455 = vmatpush.bf16.msra.mxu3 %v432_v5 }
  0x24   : > { %280 = vmatpush.bf16.msra.mxu0 %v431_v6  ;;  %456 = vmatpush.bf16.msra.mxu1 %v431_v6 }
  0x25   : > { %457 = vmatpush.bf16.msra.mxu2 %v431_v6  ;;  %458 = vmatpush.bf16.msra.mxu3 %v431_v6 }
  0x28   : > { %281 = vmatpush.bf16.msra.mxu0 %v430_v7  ;;  %459 = vmatpush.bf16.msra.mxu1 %v430_v7 }
  0x29   : > { %460 = vmatpush.bf16.msra.mxu2 %v430_v7  ;;  %461 = vmatpush.bf16.msra.mxu3 %v430_v7 }
  0x2b   : > { %282 = vmatmul.bf16.vlgmr.msra.gmra.mxu0 %v426_v8  ;;  %287 = vmatmul.bf16.vlgmr.msra.gmra.mxu1 %v427_v9 }
  0x2c   : > { %292 = vmatmul.bf16.vlgmr.msra.gmra.mxu2 %v428_v10  ;;  %297 = vmatmul.bf16.vlgmr.msra.gmra.mxu3 %v429_v11 }
  0xa8   : > { %v283_v13 = vpop.f32.mrf.mxu0  ;;  %v288_v14 = vpop.f32.mrf.mxu1 }
  0xa9   : > { %v284_v15 = vadd.f32 %v470_v12, %v283_v13  ;;  %v289_v16 = vadd.f32 %v470_v12, %v288_v14 }
  0xab   : > { %303 = vst [vmem:[%s172_s14] sm:$0xff] %v284_v15 }
  0xac   : > { %305 = vst [vmem:[%s172_s14 + $0x10] sm:$0xff] %v289_v16 }
  0xaf   : > { %v293_v17 = vpop.f32.mrf.mxu2  ;;  %v298_v18 = vpop.f32.mrf.mxu3 }
  0xb0   : > { %v294_v19 = vadd.f32 %v470_v12, %v293_v17  ;;  %v299_v20 = vadd.f32 %v470_v12, %v298_v18  ;;  %v285_v21 = vpop.f32.mrf.mxu0  ;;  %v290_v22 = vpop.f32.mrf.mxu1 }
  0xb1   : > { %v286_v23 = vadd.f32 %v470_v12, %v285_v21  ;;  %v291_v24 = vadd.f32 %v470_v12, %v290_v22 }
  0xb2   : > { %307 = vst [vmem:[%s172_s14 + $0x20] sm:$0xff] %v294_v19 }
  0xb3   : > { %309 = vst [vmem:[%s172_s14 + $0x30] sm:$0xff] %v299_v20 }
  0xb4   : > { %304 = vst [vmem:[%s172_s14 + $0x8] sm:$0xff] %v286_v23 }
  0xb5   : > { %306 = vst [vmem:[%s172_s14 + $0x18] sm:$0xff] %v291_v24 }
  0xb7   : > { %v295_v25 = vpop.f32.mrf.mxu2  ;;  %v300_v26 = vpop.f32.mrf.mxu3 }
  0xb8   : > { %v296_v27 = vadd.f32 %v470_v12, %v295_v25  ;;  %v301_v28 = vadd.f32 %v470_v12, %v300_v26 }
  0xba   : > { %308 = vst [vmem:[%s172_s14 + $0x28] sm:$0xff] %v296_v27 }
  0xbb   : > { %310 = vst [vmem:[%s172_s14 + $0x38] sm:$0xff] %v301_v28 }
  0xbc PF: > { %s13_s12 = sadd.s32 1, %s477_s12  }
  0xbd   : > { %p10_p4 = scmp.ge.s32.totalorder %s13_s12, 4  }
  0xbf   :  { %12 = sbr.rel (!%p10_p4) target bundleno = 1 (0x1), region = 62 }

// kernel: _lambda_.15
= control target key start
LH: loop header
LB: loop body
LE: loop exit
PB: predicated region body
PF: predicated region fallthrough
CT: control target
= control target key end

     0   :  { %s476_s12 = smov 0   ;;  %s630_s0 = inlined_call_operand.vmem [shape: f32[2,67,128], index: 0, kind: input, shape index: {}]   ;;  %s631_s1 = inlined_call_operand.vmem [shape: f32[4,128], index: 1, kind: input, shape index: {}]   ;;  %s632_s2 = inlined_call_operand.vmem [shape: f32[1,128], index: 2, kind: input, shape index: {}]   ;;  %s633_s3 = inlined_call_operand.vmem [shape: f32[2,64,128], index: 3, kind: output, shape index: {}]  }
   0x1 LB: > { %s391_s13 = sadd.s32 4294967295, %s454_s12   ;;  %p395_p0 = scmp.ge.s32.totalorder %s454_s12, 1  ;;  %s454_s12 = sphi %s476_s12, %s13_s12  }
   0x2   : > { %p137_p1 = scmp.lt.s32.totalorder %s454_s12, 3 }
   0x4   : > { %p138_p2 = pnand %p395_p0, %p137_p1 }
   0x5   : > { %p161_p3 = scmp.lt.s32.totalorder (!%p138_p2), %s391_s13, 1 }
   0x6   : > { %141 = sbr.rel (%p138_p2) target bundleno = 67 (0x43), region = 32 }
   0xb   : > { %s635_s13 = smov (!%p161_p3, %s391_s13), 1  ;;  %v490_v0 = vld [vmem:[%s631_s1] ss:$0 sm:$0xff]  ;;  %v495_v1 = vld [vmem:[%s631_s1 + $0x1] ss:$0 sm:$0xff] }
   0xc   : > { %s402_s14 = smul.u32 72, %s635_s13  ;;  %v500_v2 = vld [vmem:[%s631_s1 + $0x2] ss:$0 sm:$0xff]  ;;  %v505_v3 = vld [vmem:[%s631_s1 + $0x3] ss:$0 sm:$0xff]  ;;  %s401_s28 = sshll.u32 %s635_s13, 6 }
   0xd   : > { %v515_v4 = vld [vmem:[%s632_s2] ss:$0 sm:$0xff]  ;;  %s611_s4 = scalar_lea.vmem %s633_s3, %s401_s28 }
   0xe   : > { %s510_s25 = scalar_lea.vmem %s630_s0, %s402_s14 }
   0xf   : > { %v176_v5 = vld [vmem:[%s510_s25] sm:$0xff]  ;;  %v177_v11 = vld [vmem:[%s510_s25 + $0x8] sm:$0xff]  ;;  %v178_v19 = vld [vmem:[%s510_s25 + $0x10] sm:$0xff] }
  0x10   : > { %v202_v6 = vld [vmem:[%s510_s25 + $0x1] sm:$0xff]  ;;  %v186_v8 = vmul.f32 %v490_v0, %v176_v5  ;;  %v203_v12 = vld [vmem:[%s510_s25 + $0x9] sm:$0xff]  ;;  %v187_v15 = vmul.f32 %v490_v0, %v177_v11  ;;  %v188_v23 = vmul.f32 %v490_v0, %v178_v19  ;;  %v204_v24 = vld [vmem:[%s510_s25 + $0x11] sm:$0xff] }
  0x11   : > { %v228_v7 = vld [vmem:[%s510_s25 + $0x2] sm:$0xff]  ;;  %v212_v9 = vmul.f32 %v495_v1, %v202_v6  ;;  %v213_v16 = vmul.f32 %v495_v1, %v203_v12  ;;  %v229_v17 = vld [vmem:[%s510_s25 + $0xa] sm:$0xff]  ;;  %v230_v25 = vld [vmem:[%s510_s25 + $0x12] sm:$0xff]  ;;  %v214_v28 = vmul.f32 %v495_v1, %v204_v24 }
  0x12   : > { %v254_v10 = vld [vmem:[%s510_s25 + $0x3] sm:$0xff]  ;;  %v238_v13 = vmul.f32 %v500_v2, %v228_v7  ;;  %v255_v18 = vld [vmem:[%s510_s25 + $0xb] sm:$0xff]  ;;  %v194_v20 = vadd.f32 %v515_v4, %v186_v8  ;;  %v239_v21 = vmul.f32 %v500_v2, %v229_v17  ;;  %v256_v26 = vld [vmem:[%s510_s25 + $0x13] sm:$0xff]  ;;  %v195_v27 = vadd.f32 %v515_v4, %v187_v15 }
  0x13   : > { %v264_v14 = vmul.f32 %v505_v3, %v254_v10  ;;  %v265_v22 = vmul.f32 %v505_v3, %v255_v18  ;;  %v240_v29 = vmul.f32 %v500_v2, %v230_v25  ;;  %v266_v30 = vmul.f32 %v505_v3, %v256_v26  ;;  %v179_v31 = vld [vmem:[%s510_s25 + $0x18] sm:$0xff]  ;;  %v180_v39 = vld [vmem:[%s510_s25 + $0x20] sm:$0xff]  ;;  %v181_v47 = vld [vmem:[%s510_s25 + $0x28] sm:$0xff] }
  0x14   : > { %v205_v32 = vld [vmem:[%s510_s25 + $0x19] sm:$0xff]  ;;  %v220_v34 = vadd.f32 %v212_v9, %v194_v20  ;;  %v196_v35 = vadd.f32 %v515_v4, %v188_v23  ;;  %v189_v36 = vmul.f32 %v490_v0, %v179_v31  ;;  %v206_v40 = vld [vmem:[%s510_s25 + $0x21] sm:$0xff]  ;;  %v221_v41 = vadd.f32 %v213_v16, %v195_v27  ;;  %v207_v52 = vld [vmem:[%s510_s25 + $0x29] sm:$0xff] }
  0x15   : > { %v231_v33 = vld [vmem:[%s510_s25 + $0x1a] sm:$0xff]  ;;  %v215_v37 = vmul.f32 %v495_v1, %v205_v32  ;;  %v190_v44 = vmul.f32 %v490_v0, %v180_v39  ;;  %v232_v45 = vld [vmem:[%s510_s25 + $0x22] sm:$0xff]  ;;  %v216_v51 = vmul.f32 %v495_v1, %v206_v40  ;;  %v233_v53 = vld [vmem:[%s510_s25 + $0x2a] sm:$0xff]  ;;  %v191_v61 = vmul.f32 %v490_v0, %v181_v47 }
  0x16   : > { %v257_v38 = vld [vmem:[%s510_s25 + $0x1b] sm:$0xff]  ;;  %v241_v42 = vmul.f32 %v500_v2, %v231_v33  ;;  %v258_v46 = vld [vmem:[%s510_s25 + $0x23] sm:$0xff]  ;;  %v246_v48 = vadd.f32 %v238_v13, %v220_v34  ;;  %v222_v49 = vadd.f32 %v214_v28, %v196_v35  ;;  %v197_v50 = vadd.f32 %v515_v4, %v189_v36  ;;  %v259_v62 = vld [vmem:[%s510_s25 + $0x2b] sm:$0xff] }
  0x17   : > { %v267_v43 = vmul.f32 %v505_v3, %v257_v38  ;;  %v247_v54 = vadd.f32 %v239_v21, %v221_v41  ;;  %v198_v55 = vadd.f32 %v515_v4, %v190_v44  ;;  %v242_v56 = vmul.f32 %v500_v2, %v232_v45  ;;  %v182_v63 = vld [vmem:[%s510_s25 + $0x30] sm:$0xff]  ;;  %v183_v31 = vld [vmem:[%s510_s25 + $0x38] sm:$0xff] }
  0x18   : > { %v268_v57 = vmul.f32 %v505_v3, %v258_v46  ;;  %v565_v58 = vadd.f32 %v264_v14, %v246_v48  ;;  %v248_v59 = vadd.f32 %v240_v29, %v222_v49  ;;  %v223_v60 = vadd.f32 %v215_v37, %v197_v50  ;;  %v208_v13 = vld [vmem:[%s510_s25 + $0x31] sm:$0xff]  ;;  %v209_v32 = vld [vmem:[%s510_s25 + $0x39] sm:$0xff] }
  0x19   : > { %v570_v5 = vadd.f32 %v265_v22, %v247_v54  ;;  %v224_v6 = vadd.f32 %v216_v51, %v198_v55  ;;  %v217_v7 = vmul.f32 %v495_v1, %v207_v52  ;;  %v243_v8 = vmul.f32 %v500_v2, %v233_v53  ;;  %v234_v22 = vld [vmem:[%s510_s25 + $0x32] sm:$0xff]  ;;  %v235_v39 = vld [vmem:[%s510_s25 + $0x3a] sm:$0xff] }
  0x1a   : > { %v280_v9 = vsub.f32 0.0, %v565_v58  ;;  %v575_v10 = vadd.f32 %v266_v30, %v248_v59  ;;  %v249_v11 = vadd.f32 %v241_v42, %v223_v60  ;;  %v199_v12 = vadd.f32 %v515_v4, %v191_v61  ;;  %v260_v27 = vld [vmem:[%s510_s25 + $0x33] sm:$0xff]  ;;  %v261_v45 = vld [vmem:[%s510_s25 + $0x3b] sm:$0xff] }
  0x1b   : > { %v281_v14 = vsub.f32 0.0, %v570_v5  ;;  %v250_v15 = vadd.f32 %v242_v56, %v224_v6  ;;  %v269_v16 = vmul.f32 %v505_v3, %v259_v62  ;;  %v192_v17 = vmul.f32 %v490_v0, %v182_v63 }
  0x1c   : > { %v288_v18 = vmul.f32 1.442695, %v280_v9  ;;  %v282_v19 = vsub.f32 0.0, %v575_v10  ;;  %v583_v20 = vadd.f32 %v267_v43, %v249_v11  ;;  %v225_v21 = vadd.f32 %v217_v7, %v199_v12 }
  0x1d   : > { %v290_v23 = vmul.f32 1.442695, %v281_v14  ;;  %v586_v24 = vadd.f32 %v268_v57, %v250_v15  ;;  %v200_v25 = vadd.f32 %v515_v4, %v192_v17  ;;  %v218_v26 = vmul.f32 %v495_v1, %v208_v13 }
  0x1e   : > { %416 = vpow2.f32 %v288_v18  ;;  %v292_v28 = vmul.f32 1.442695, %v282_v19  ;;  %v283_v29 = vsub.f32 0.0, %v583_v20  ;;  %v251_v30 = vadd.f32 %v243_v8, %v225_v21 }
  0x1f   : > { %418 = vpow2.f32 %v290_v23  ;;  %v284_v33 = vsub.f32 0.0, %v586_v24  ;;  %v226_v34 = vadd.f32 %v218_v26, %v200_v25  ;;  %v244_v35 = vmul.f32 %v500_v2, %v234_v22 }
  0x20   : > { %420 = vpow2.f32 %v292_v28  ;;  %v294_v36 = vmul.f32 1.442695, %v283_v29  ;;  %v596_v37 = vadd.f32 %v269_v16, %v251_v30  ;;  %v270_v38 = vmul.f32 %v505_v3, %v260_v27 }
  0x21   : > { %v296_v40 = vmul.f32 1.442695, %v284_v33  ;;  %v252_v41 = vadd.f32 %v244_v35, %v226_v34  ;;  %v193_v42 = vmul.f32 %v490_v0, %v183_v31  ;;  %v219_v43 = vmul.f32 %v495_v1, %v209_v32 }
  0x22   : > { %422 = vpow2.f32 %v294_v36  ;;  %v285_v44 = vsub.f32 0.0, %v596_v37  ;;  %v245_v48 = vmul.f32 %v500_v2, %v235_v39  ;;  %v271_v0 = vmul.f32 %v505_v3, %v261_v45 }
  0x23   : > { %424 = vpow2.f32 %v296_v40  ;;  %v278_v46 = vadd.f32 %v270_v38, %v252_v41  ;;  %v201_v47 = vadd.f32 %v515_v4, %v193_v42 }
  0x24   : > { %v417_v49 = vpop.eup %416  ;;  %v298_v50 = vmul.f32 1.442695, %v285_v44 }
  0x25   : > { %v419_v51 = vpop.eup %418  ;;  %v304_v52 = vadd.f32 1.0, %v417_v49  ;;  %v286_v53 = vsub.f32 0.0, %v278_v46  ;;  %v227_v54 = vadd.f32 %v219_v43, %v201_v47 }
  0x26   : > { %v421_v1 = vpop.eup %420  ;;  %v305_v55 = vadd.f32 1.0, %v419_v51  ;;  %426 = vpow2.f32 %v298_v50 }
  0x27   : > { %428 = vrcp.f32 %v304_v52  ;;  %v306_v56 = vadd.f32 1.0, %v421_v1  ;;  %v300_v57 = vmul.f32 1.442695, %v286_v53  ;;  %v253_v59 = vadd.f32 %v245_v48, %v227_v54 }
  0x28   : > { %v423_v60 = vpop.eup %422  ;;  %430 = vrcp.f32 %v305_v55 }
  0x29   : > { %v425_v4 = vpop.eup %424  ;;  %432 = vrcp.f32 %v306_v56  ;;  %v307_v2 = vadd.f32 1.0, %v423_v60  ;;  %v279_v61 = vadd.f32 %v271_v0, %v253_v59 }
  0x2a   : > { %v308_v62 = vadd.f32 1.0, %v425_v4  ;;  %434 = vpow2.f32 %v300_v57 }
  0x2b   : > { %436 = vrcp.f32 %v307_v2  ;;  %v287_v63 = vsub.f32 0.0, %v279_v61 }
  0x2c   : > { %v427_v6 = vpop.eup %426  ;;  %438 = vrcp.f32 %v308_v62 }
  0x2d   : > { %v429_v3 = vpop.eup %428  ;;  %v309_v7 = vadd.f32 1.0, %v427_v6  ;;  %v302_v8 = vmul.f32 1.442695, %v287_v63 }
  0x2e   : > { %v431_v9 = vpop.eup %430  ;;  %v320_v11 = vmul.f32 %v429_v3, %v565_v58 }
  0x2f   : > { %v433_v12 = vpop.eup %432  ;;  %v321_v13 = vmul.f32 %v431_v9, %v570_v5  ;;  %440 = vrcp.f32 %v309_v7 }
  0x30   : > { %v435_v14 = vpop.eup %434  ;;  %328 = vst [vmem:[%s611_s4] sm:$0xff] %v320_v11  ;;  %v322_v15 = vmul.f32 %v433_v12, %v575_v10  ;;  %442 = vpow2.f32 %v302_v8 }
  0x31   : > { %v437_v16 = vpop.eup %436  ;;  %329 = vst [vmem:[%s611_s4 + $0x8] sm:$0xff] %v321_v13  ;;  %v310_v17 = vadd.f32 1.0, %v435_v14 }
  0x32   : > { %v439_v18 = vpop.eup %438  ;;  %330 = vst [vmem:[%s611_s4 + $0x10] sm:$0xff] %v322_v15  ;;  %v323_v58 = vmul.f32 %v437_v16, %v583_v20 }
  0x33   : > { %v324_v19 = vmul.f32 %v439_v18, %v586_v24  ;;  %444 = vrcp.f32 %v310_v17 }
  0x34   : > { %331 = vst [vmem:[%s611_s4 + $0x18] sm:$0xff] %v323_v58 }
  0x35   : > { %v441_v5 = vpop.eup %440  ;;  %332 = vst [vmem:[%s611_s4 + $0x20] sm:$0xff] %v324_v19 }
  0x36   : > { %v443_v21 = vpop.eup %442  ;;  %v325_v10 = vmul.f32 %v441_v5, %v596_v37 }
  0x37   : > { %v311_v22 = vadd.f32 1.0, %v443_v21 }
  0x38   : > { %333 = vst [vmem:[%s611_s4 + $0x28] sm:$0xff] %v325_v10 }
  0x39   : > { %v445_v23 = vpop.eup %444  ;;  %446 = vrcp.f32 %v311_v22 }
  0x3a   : > { %v326_v25 = vmul.f32 %v445_v23, %v278_v46 }
  0x3c   : > { %334 = vst [vmem:[%s611_s4 + $0x30] sm:$0xff] %v326_v25 }
  0x3f   : > { %v447_v26 = vpop.eup %446 }
  0x40   : > { %v327_v27 = vmul.f32 %v447_v26, %v279_v61 }
  0x42   : > { %335 = vst [vmem:[%s611_s4 + $0x38] sm:$0xff] %v327_v27 }
  0x43 PF: > { %s13_s12 = sadd.s32 1, %s454_s12  }
  0x44   : > { %p10_p4 = scmp.ge.s32.totalorder %s13_s12, 4  }
  0x46   :  { %12 = sbr.rel (!%p10_p4) target bundleno = 1 (0x1), region = 62 }

// kernel: _lambda_.17
= control target key start
LH: loop header
LB: loop body
LE: loop exit
PB: predicated region body
PF: predicated region fallthrough
CT: control target
= control target key end

     0   :  { %s875_s21 = smov 0   ;;  %s1170_s0 = inlined_call_operand.vmem [shape: f32[2,64,128], index: 0, kind: input, shape index: {}]   ;;  %s1171_s1 = inlined_call_operand.vmem [shape: f32[2,64,128], index: 1, kind: input, shape index: {}]   ;;  %s1172_s2 = inlined_call_operand.vmem [shape: f32[2,64,128], index: 2, kind: input, shape index: {}]   ;;  %s1173_s3 = inlined_call_operand.vmem [shape: f32[2,64,128], index: 3, kind: input, shape index: {}]   ;;  %s1174_s4 = inlined_call_operand.vmem [shape: f32[4,128], index: 4, kind: input, shape index: {}]   ;;  %s1175_s5 = inlined_call_operand.vmem [shape: f32[1,128], index: 5, kind: input, shape index: {}]   ;;  %s1176_s6 = inlined_call_operand.vmem [shape: f32[2,64,128], index: 6, kind: output, shape index: {}]  }
   0x1 LB: > { %s728_s22 = sadd.s32 4294967295, %s822_s21   ;;  %p732_p0 = scmp.ge.s32.totalorder %s822_s21, 1  ;;  %s822_s21 = sphi %s875_s21, %s16_s21  }
   0x2   : > { %p242_p1 = scmp.lt.s32.totalorder %s822_s21, 3 }
   0x4   : > { %p243_p2 = pnand %p732_p0, %p242_p1 }
   0x5   : > { %p287_p3 = scmp.lt.s32.totalorder (!%p243_p2), %s728_s22, 1  ;;  %s917_s19 = smov (!%p243_p2), 0  }
   0x6   : > { %246 = sbr.rel (%p243_p2) target bundleno = 201 (0xc9), region = 44 }
   0xb   : > { %v886_v0 = vld [vmem:[%s1174_s4] sm:$0xf]  ;;  %s1178_s22 = smov (!%p287_p3, %s728_s22), 1  ;;  %v915_v2 = vmov 0.0  }
   0xc   : > { %v891_v1 = vld [vmem:[%s1175_s5] sm:$0x1]  ;;  %s893_s27 = sshll.u32 %s1178_s22, 6 }
   0xd   : > { %s291_s30 = scalar_lea.vmem %s1170_s0, %s893_s27  ;;  %s296_s9 = scalar_lea.vmem %s1171_s1, %s893_s27 }
   0xe   : > { %s301_s12 = scalar_lea.vmem %s1172_s2, %s893_s27  ;;  %s306_s15 = scalar_lea.vmem %s1173_s3, %s893_s27 }
   0xf   : > { %s311_s18 = scalar_lea.vmem %s1176_s6, %s893_s27 }
  0x10 LB: >> { %v832_v3 = vmov 5   ;;  %v833_v4 = vmov 3   ;;  %s926_s20 = sshll.u32 %s830_s19, 3  ;;  %v834_v5 = vmov 7   ;;  %v835_v7 = vmov 6   ;;  %s319_s19 = sadd.s32 1, %s830_s19   ;;  %s830_s19 = sphi %s917_s19, %s319_s19   ;;  %v826_v2 = vphi %v915_v2, %v618_v2  }
  0x11   : >> { %785 = vset.pattern.permute.xlu1 %v832_v3  ;;  %783 = vset.pattern.permute.xlu0 %v833_v4  ;;  %s337_s24 = scalar_lea.vmem %s291_s30, %s926_s20  ;;  %v836_v8 = vmov 4   ;;  %v837_v9 = vmov 8   ;;  %v838_v10 = vmov 9   ;;  %v839_v11 = vmov 10   ;;  %s322_s28 = scalar_lea.vmem %s296_s9, %s926_s20 }
  0x12   : >> { %787 = vset.pattern.permute.xlu2 %v834_v5  ;;  %v338_v6 = vld [vmem:[%s337_s24] sm:$0xff]  ;;  %v344_v21 = vperm.slane %v886_v0, 0  ;;  %v473_v23 = vperm.slane %v886_v0, 2  ;;  %v411_v27 = vperm.slane %v886_v0, 1  ;;  %v534_v29 = vperm.slane %v886_v0, 3  ;;  %s333_s8 = scalar_lea.vmem %s301_s12, %s926_s20  ;;  %s335_s13 = scalar_lea.vmem %s306_s15, %s926_s20 }
  0x13   : >> { %478 = vperm.xlu1 %785, %v338_v6   ;;  %350 = vperm.xlu0 %783, %v338_v6   ;;  %v323_v12 = vld [vmem:[%s322_s28] sm:$0xff]  ;;  %v482_v36 = vrot.slane %v826_v2, 2  ;;  %v421_v48 = vrot.slane %v826_v2, 1  ;;  %v543_v49 = vrot.slane %v826_v2, 3  ;;  %vm391_vm0 = vcmask 1040384   ;;  %s602_s17 = scalar_lea.vmem %s311_s18, %s926_s20  ;;  %p316_p4 = scmp.ge.s32.totalorder %s319_s19, 8  }
  0x14   : >> { %406 = vperm.xlu2 %787, %v338_v6   ;;  %v325_v13 = vand.u32 2147483647, %v323_v12  ;;  %v324_v19 = vmax.f32 %v323_v12, 0.0  ;;  %v950_v32 = vld [vmem:[%s333_s8] sm:$0xff]  ;;  %vm393_vm1 = vcmask 1041408   ;;  %vm395_vm2 = vcmask 1042432  }
  0x15   : >> { %vm397_vm3 = vcmask 1043456   ;;  %vm399_vm4 = vcmask 1044480   ;;  %vm401_vm5 = vcmask 1045504   ;;  %vm403_vm6 = vcmask 1046528  }
  0x16   : >> { %v326_v14 = vsub.f32 0.0, %v325_v13 }
  0x18   : >> { %v327_v15 = vmul.f32 1.442695, %v326_v14 }
  0x1a   : >> { %792 = vpow2.f32 %v327_v15 }
  0x1b   : >> { %786 = vset.pattern.permute.xlu1 %v835_v7  ;;  %784 = vset.pattern.permute.xlu0 %v836_v8 }
  0x1c   : >> { %539 = vperm.xlu1 %786, %v338_v6   ;;  %416 = vperm.xlu0 %784, %v338_v6  }
  0x1d   : >> { %788 = vset.pattern.permute.xlu2 %v837_v9 }
  0x1e   : >> { %468 = vperm.xlu2 %788, %v338_v6  }
  0x20   : >> { %v793_v16 = vpop.eup %792 }
  0x21   : >> { %v329_v17 = vadd.f32 1.0, %v793_v16 }
  0x23   : >> { %794 = vlog2.f32 %v329_v17 }
  0x24   : >> { %789 = vset.pattern.permute.xlu1 %v838_v10  ;;  %791 = vset.pattern.permute.xlu0 %v839_v11 }
  0x25   : >> { %529 = vperm.xlu1 %789, %v338_v6  }
  0x26   : >> { %790 = vset.pattern.permute.xlu2 %v839_v11 }
  0x27   : >> { %590 = vperm.xlu2 %790, %v338_v6  }
  0x29   : >> { %v795_v18 = vpop.eup %794 }
  0x2a   : >> { %v331_v20 = vmul.f32 0.6931472, %v795_v18 }
  0x2c   : >> { %v332_v22 = vadd.f32 %v331_v20, %v324_v19 }
  0x2e   : >> { %v345_v24 = vmul.f32 %v344_v21, %v332_v22  ;;  %v474_v25 = vmul.f32 %v473_v23, %v332_v22  ;;  %v412_v30 = vmul.f32 %v411_v27, %v332_v22  ;;  %v535_v31 = vmul.f32 %v534_v29, %v332_v22 }
  0x2f   : >> { %v339_v38 = vmul.f32 %v950_v32, %v332_v22 }
  0x30   : >> { %v346_v26 = vmul.f32 1.442695, %v345_v24  ;;  %v475_v28 = vmul.f32 1.442695, %v474_v25  ;;  %v413_v33 = vmul.f32 1.442695, %v412_v30 }
  0x31   : >> { %v536_v35 = vmul.f32 1.442695, %v535_v31 }
  0x32   : >> { %796 = vpow2.f32 %v346_v26 }
  0x33   : >> { %798 = vpow2.f32 %v475_v28 }
  0x34   : >> { %800 = vpow2.f32 %v413_v33 }
  0x35   : >> { %802 = vpow2.f32 %v536_v35 }
  0x38   : >> { %v952_v34 = vpop.eup %796 }
  0x39   : >> { %v955_v37 = vpop.eup %798  ;;  %v354_v39 = vmul.f32 %v826_v2, %v952_v34 }
  0x3a   : >> { %v484_v40 = vmul.f32 %v955_v37, %v482_v36  ;;  %v971_v47 = vpop.eup %800 }
  0x3b   : >> { %v975_v50 = vpop.eup %802  ;;  %v423_v55 = vmul.f32 %v971_v47, %v421_v48 }
  0x3c   : >> { %v545_v56 = vmul.f32 %v975_v50, %v543_v49 }
  0x85   : >> { %v479_v41 = vpop.permute.xlu1 %478  ;;  %v351_v42 = vpop.permute.xlu0 %350 }
  0x86   : >> { %v961_v43 = vmul.f32 %v479_v41, %v339_v38  ;;  %v963_v44 = vmul.f32 %v351_v42, %v339_v38 }
  0x88   : >> { %v966_v45 = vadd.f32 %v354_v39, %v963_v44  ;;  %v969_v46 = vadd.f32 %v484_v40, %v961_v43 }
  0x8a   : >> { %v357_v51 = vrot.slane %v966_v45, 7  ;;  %v487_v52 = vrot.slane %v969_v46, 7 }
  0x8c   : >> { %v359_v53 = vmul.f32 %v952_v34, %v357_v51  ;;  %v489_v54 = vmul.f32 %v955_v37, %v487_v52 }
  0x8e   : >> { %v540_v57 = vpop.permute.xlu1 %539  ;;  %v417_v58 = vpop.permute.xlu0 %416  ;;  %v984_v59 = vadd.f32 %v359_v53, %v963_v44  ;;  %v987_v60 = vadd.f32 %v489_v54, %v961_v43 }
  0x8f   : >> { %v989_v61 = vmul.f32 %v540_v57, %v339_v38  ;;  %v991_v62 = vmul.f32 %v417_v58, %v339_v38  ;;  %v1055_v38 = vld [vmem:[%s335_s13] sm:$0xff] }
  0x90   : >> { %v362_v63 = vrot.slane %v984_v59, 7  ;;  %v492_v2 = vrot.slane %v987_v60, 7  ;;  %v595_v51 = vsub.f32 0.0, %v1055_v38 }
  0x91   : >> { %v996_v3 = vadd.f32 %v423_v55, %v991_v62  ;;  %v999_v4 = vadd.f32 %v545_v56, %v989_v61 }
  0x92   : >> { %v364_v5 = vmul.f32 %v952_v34, %v362_v63  ;;  %v494_v6 = vmul.f32 %v955_v37, %v492_v2  ;;  %v596_v2 = vmul.f32 1.442695, %v595_v51 }
  0x93   : >> { %v426_v7 = vrot.slane %v996_v3, 7  ;;  %v548_v8 = vrot.slane %v999_v4, 7 }
  0x94   : >> { %v1006_v9 = vadd.f32 %v364_v5, %v963_v44  ;;  %v1009_v10 = vadd.f32 %v494_v6, %v961_v43  ;;  %804 = vpow2.f32 %v596_v2 }
  0x95   : >> { %v428_v11 = vmul.f32 %v971_v47, %v426_v7  ;;  %v550_v12 = vmul.f32 %v975_v50, %v548_v8 }
  0x96   : >> { %v367_v13 = vrot.slane %v1006_v9, 7  ;;  %v497_v14 = vrot.slane %v1009_v10, 7 }
  0x97   : >> { %v1016_v15 = vadd.f32 %v428_v11, %v991_v62  ;;  %v1019_v16 = vadd.f32 %v550_v12, %v989_v61 }
  0x98   : >> { %v369_v17 = vmul.f32 %v952_v34, %v367_v13  ;;  %v499_v18 = vmul.f32 %v955_v37, %v497_v14  ;;  %v407_v13 = vpop.permute.xlu2 %406 }
  0x99   : >> { %v431_v19 = vrot.slane %v1016_v15, 7  ;;  %v553_v20 = vrot.slane %v1019_v16, 7 }
  0x9a   : >> { %v1026_v21 = vadd.f32 %v369_v17, %v963_v44  ;;  %v1029_v22 = vadd.f32 %v499_v18, %v961_v43 }
  0x9b   : >> { %v433_v23 = vmul.f32 %v971_v47, %v431_v19  ;;  %v555_v24 = vmul.f32 %v975_v50, %v553_v20 }
  0x9c   : >> { %v372_v25 = vrot.slane %v1026_v21, 7  ;;  %v502_v26 = vrot.slane %v1029_v22, 7 }
  0x9d   : >> { %v1036_v27 = vadd.f32 %v433_v23, %v991_v62  ;;  %v1045_v28 = vadd.f32 %v555_v24, %v989_v61 }
  0x9e   : >> { %v374_v29 = vmul.f32 %v952_v34, %v372_v25  ;;  %v504_v30 = vmul.f32 %v955_v37, %v502_v26 }
  0x9f   : >> { %v436_v31 = vrot.slane %v1036_v27, 7  ;;  %v558_v33 = vrot.slane %v1045_v28, 7 }
  0xa0   : >> { %v375_v35 = vadd.f32 %v374_v29, %v963_v44  ;;  %v1053_v36 = vadd.f32 %v504_v30, %v961_v43  ;;  %v341_v29 = vperm.slane %v891_v1, 0 }
  0xa1   : >> { %v438_v39 = vmul.f32 %v971_v47, %v436_v31  ;;  %v560_v40 = vmul.f32 %v975_v50, %v558_v33  ;;  %v805_v31 = vpop.eup %804  ;;  %v392_v33 = vsel %vm391_vm0, %v966_v45, %v984_v59 }
  0xa2   : >> { %v377_v41 = vrot.slane %v375_v35, 7  ;;  %v507_v42 = vrot.slane %v1053_v36, 7  ;;  %v343_v45 = vmul.f32 %v341_v29, %v950_v32 }
  0xa3   : >> { %v1061_v48 = vadd.f32 %v438_v39, %v991_v62  ;;  %v1064_v49 = vadd.f32 %v560_v40, %v989_v61 }
  0xa4   : >> { %v379_v52 = vmul.f32 %v952_v34, %v377_v41  ;;  %v509_v53 = vmul.f32 %v955_v37, %v507_v42  ;;  %v394_v42 = vsel %vm393_vm1, %v392_v33, %v1006_v9 }
  0xa5   : >> { %v441_v54 = vrot.slane %v1061_v48, 7  ;;  %v563_v55 = vrot.slane %v1064_v49, 7 }
  0xa6   : >> { %v380_v56 = vadd.f32 %v379_v52, %v963_v44  ;;  %v1073_v57 = vadd.f32 %v509_v53, %v961_v43  ;;  %v396_v52 = vsel %vm395_vm2, %v394_v42, %v1026_v21 }
  0xa7   : >> { %v443_v58 = vmul.f32 %v971_v47, %v441_v54  ;;  %v565_v63 = vmul.f32 %v975_v50, %v563_v55  ;;  %v398_v59 = vsel %vm397_vm3, %v396_v52, %v375_v35  ;;  %v521_v54 = vsel %vm391_vm0, %v969_v46, %v987_v60 }
  0xa8   : >> { %v382_v5 = vrot.slane %v380_v56, 7  ;;  %v512_v6 = vrot.slane %v1073_v57, 7  ;;  %v598_v55 = vadd.f32 1.0, %v805_v31  ;;  %v400_v9 = vsel %vm399_vm4, %v398_v59, %v380_v56 }
  0xa9   : >> { %v444_v7 = vadd.f32 %v443_v58, %v991_v62  ;;  %v1080_v8 = vadd.f32 %v565_v63, %v989_v61  ;;  %v469_v58 = vpop.permute.xlu2 %468  ;;  %v522_v32 = vsel %vm393_vm1, %v521_v54, %v1009_v10  ;;  %v460_v35 = vsel %vm391_vm0, %v996_v3, %v1016_v15 }
  0xaa   : >> { %v384_v11 = vmul.f32 %v952_v34, %v382_v5  ;;  %v514_v12 = vmul.f32 %v955_v37, %v512_v6  ;;  %v582_v46 = vsel %vm391_vm0, %v999_v4, %v1019_v16  ;;  %v523_v60 = vsel %vm395_vm2, %v522_v32, %v1029_v22 }
  0xab   : >> { %v446_v14 = vrot.slane %v444_v7, 7  ;;  %v568_v17 = vrot.slane %v1080_v8, 7  ;;  %v524_v6 = vsel %vm397_vm3, %v523_v60, %v1053_v36  ;;  %v461_v10 = vsel %vm393_vm1, %v460_v35, %v1036_v27 }
  0xac   : >> { %v385_v18 = vadd.f32 %v384_v11, %v963_v44  ;;  %v515_v19 = vadd.f32 %v514_v12, %v961_v43  ;;  %v583_v3 = vsel %vm393_vm1, %v582_v46, %v1045_v28  ;;  %806 = vrcp.f32 %v598_v55 }
  0xad   : >> { %v448_v20 = vmul.f32 %v971_v47, %v446_v14  ;;  %v570_v23 = vmul.f32 %v975_v50, %v568_v17  ;;  %v462_v16 = vsel %vm395_vm2, %v461_v10, %v1061_v48  ;;  %v525_v36 = vsel %vm399_vm4, %v524_v6, %v1073_v57 }
  0xae   : >> { %v387_v24 = vrot.slane %v385_v18, 7  ;;  %v517_v39 = vrot.slane %v515_v19, 7  ;;  %v402_v2 = vsel %vm401_vm5, %v400_v9, %v385_v18  ;;  %v463_v12 = vsel %vm397_vm3, %v462_v16, %v444_v7  ;;  %v530_v7 = vpop.permute.xlu1 %529 }
  0xaf   : >> { %v449_v25 = vadd.f32 %v448_v20, %v991_v62  ;;  %v571_v26 = vadd.f32 %v570_v23, %v989_v61  ;;  %v584_v27 = vsel %vm395_vm2, %v583_v3, %v1064_v49 }
  0xb0   : >> { %v389_v30 = vmul.f32 %v952_v34, %v387_v24  ;;  %v585_v48 = vsel %vm397_vm3, %v584_v27, %v1080_v8 }
  0xb1   : >> { %v451_v40 = vrot.slane %v449_v25, 7  ;;  %v573_v41 = vrot.slane %v571_v26, 7  ;;  %v586_v57 = vsel %vm399_vm4, %v585_v48, %v571_v26  ;;  %v591_v24 = vpop.permute.xlu2 %590 }
  0xb2   : >> { %v390_v51 = vadd.f32 %v389_v30, %v963_v44  ;;  %v519_v44 = vmul.f32 %v955_v37, %v517_v39  ;;  %v807_v18 = vpop.eup %806 }
  0xb3   : >> { %v453_v34 = vmul.f32 %v971_v47, %v451_v40  ;;  %v575_v53 = vmul.f32 %v975_v50, %v573_v41  ;;  %v600_v40 = vmul.f32 %v807_v18, %v1055_v38 }
  0xb4   : >> { %v404_v37 = vsel %vm403_vm6, %v402_v2, %v390_v51  ;;  %v520_v15 = vadd.f32 %v519_v44, %v961_v43  ;;  %v464_v43 = vsel %vm399_vm4, %v463_v12, %v449_v25  ;;  %v605_v14 = vrot.slane %v390_v51, 7 }
  0xb5   : >> { %v454_v21 = vadd.f32 %v453_v34, %v991_v62  ;;  %v576_v63 = vadd.f32 %v575_v53, %v989_v61  ;;  %v409_v11 = vmul.f32 %v407_v13, %v404_v37 }
  0xb7   : >> { %v456_v56 = vrot.slane %v454_v21, 7  ;;  %v578_v5 = vrot.slane %v576_v63, 7  ;;  %v465_v13 = vsel %vm401_vm5, %v464_v43, %v454_v21  ;;  %v410_v20 = vadd.f32 %v409_v11, %v343_v45 }
  0xb8   : >> { %v587_v8 = vsel %vm401_vm5, %v586_v57, %v576_v63 }
  0xb9   : >> { %v458_v4 = vmul.f32 %v971_v47, %v456_v56  ;;  %v580_v22 = vmul.f32 %v975_v50, %v578_v5  ;;  %v526_v50 = vsel %vm401_vm5, %v525_v36, %v515_v19 }
  0xba   : >> { %v527_v17 = vsel %vm403_vm6, %v526_v50, %v520_v15 }
  0xbb   : >> { %v459_v28 = vadd.f32 %v458_v4, %v991_v62  ;;  %v581_v47 = vadd.f32 %v580_v22, %v989_v61  ;;  %v611_v61 = vrot.slane %v520_v15, 5  ;;  %v532_v29 = vmul.f32 %v530_v7, %v527_v17 }
  0xbd   : >> { %v466_v49 = vsel %vm403_vm6, %v465_v13, %v459_v28  ;;  %v608_v62 = vrot.slane %v459_v28, 6  ;;  %v588_v25 = vsel %vm403_vm6, %v587_v8, %v581_v47  ;;  %v614_v26 = vrot.slane %v581_v47, 4 }
  0xbe   : >> { %v471_v23 = vmul.f32 %v469_v58, %v466_v49  ;;  %v593_v39 = vmul.f32 %v591_v24, %v588_v25 }
  0xbf   : >> { %v616_v19 = vsel %vm391_vm0, %v605_v14, %v608_v62 }
  0xc0   : >> { %v472_v30 = vadd.f32 %v471_v23, %v410_v20  ;;  %v617_v31 = vsel %vm393_vm1, %v616_v19, %v611_v61 }
  0xc1   : >> { %v618_v2 = vsel %vm395_vm2, %v617_v31, %v614_v26  }
  0xc2   : >> { %v533_v33 = vadd.f32 %v532_v29, %v472_v30 }
  0xc4   : >> { %v594_v41 = vadd.f32 %v593_v39, %v533_v33  ;;  %318 = sbr.rel (!%p316_p4) target bundleno = 16 (0x10), region = 95 }
  0xc6   : >> { %v601_v42 = vmul.f32 %v600_v40, %v594_v41 }
  0xc8   : >> { %603 = vst [vmem:[%s602_s17] sm:$0xff] %v601_v42 }
  0xc9 PF: > { %s16_s21 = sadd.s32 1, %s822_s21  }
  0xca   : > { %p13_p5 = scmp.ge.s32.totalorder %s16_s21, 4  }
  0xcc   :  { %15 = sbr.rel (!%p13_p5) target bundleno = 1 (0x1), region = 106 }

// kernel: _lambda_.19
= control target key start
LH: loop header
LB: loop body
LE: loop exit
PB: predicated region body
PF: predicated region fallthrough
CT: control target
= control target key end

     0   :  { %s2997_s18 = smov 0   ;;  %s3896_s0 = inlined_call_operand.vmem [shape: bf16[2,104,128], index: 0, kind: input, shape index: {}]   ;;  %s3897_s1 = inlined_call_operand.vmem [shape: bf16[1152,128], index: 1, kind: input, shape index: {}]   ;;  %s3898_s2 = inlined_call_operand.vmem [shape: f32[1,128], index: 2, kind: input, shape index: {}]   ;;  %s3899_s3 = inlined_call_operand.vmem [shape: bf16[128,128], index: 3, kind: input, shape index: {}]   ;;  %s3900_s4 = inlined_call_operand.vmem [shape: bf16[128,128], index: 4, kind: input, shape index: {}]   ;;  %s3901_s5 = inlined_call_operand.vmem [shape: f32[2,80,128], index: 5, kind: output, shape index: {}]  }
   0x1 LB: > { %s2361_s19 = sadd.s32 4294967295, %s2965_s18   ;;  %p2365_p0 = scmp.ge.s32.totalorder %s2965_s18, 1  ;;  %s2965_s18 = sphi %s2997_s18, %s15_s18  }
   0x2   : > { %p187_p1 = scmp.lt.s32.totalorder %s2965_s18, 3 }
   0x4   : > { %p188_p2 = pnand %p2365_p0, %p187_p1 }
   0x5   : > { %p215_p3 = scmp.lt.s32.totalorder (!%p188_p2), %s2361_s19, 1 }
   0x6   : > { %191 = sbr.rel (%p188_p2) target bundleno = 732 (0x2dc), region = 40 }
   0xb   : > { %v2812_v0 = vld [vmem:[%s3897_s1 + $0x38] sm:$0xff]  ;;  %v2811_v3 = vld [vmem:[%s3897_s1 + $0x30] sm:$0xff]  ;;  %s3919_s19 = smov (!%p215_p3, %s2361_s19), 1  ;;  %v2810_v6 = vld [vmem:[%s3897_s1 + $0x28] sm:$0xff]  ;;  %vm433_vm0 = vsmask.f32 7424 }
   0xc   : > { %v2824_v1 = vld [vmem:[%s3897_s1 + $0x78] sm:$0xff]  ;;  %2912 = vmatpush.bf16.msra.mxu3 %v2812_v0  ;;  %v2823_v4 = vld [vmem:[%s3897_s1 + $0x70] sm:$0xff]  ;;  %334 = vmatpush.bf16.msra.mxu0 %v2812_v0  ;;  %v2822_v7 = vld [vmem:[%s3897_s1 + $0x68] sm:$0xff]  ;;  %s2928_s13 = smul.u32 52, %s3919_s19  ;;  %vm595_vm1 = vcmask 1046528   ;;  %vm1058_vm3 = vcmask 1045504  }
   0xd   : > { %v2832_v2 = vld [vmem:[%s3897_s1 + $0xb8] sm:$0xff]  ;;  %531 = vmatpush.bf16.msra.mxu1 %v2824_v1  ;;  %v2831_v5 = vld [vmem:[%s3897_s1 + $0xb0] sm:$0xff]  ;;  %v2830_v8 = vld [vmem:[%s3897_s1 + $0xa8] sm:$0xff]  ;;  %vm887_vm2 = vsmask.f32 6400  ;;  %vm1521_vm4 = vcmask 1044480  }
   0xe   : > { %660 = vmatpush.bf16.msra.mxu2 %v2832_v2  ;;  %v2809_v9 = vld [vmem:[%s3897_s1 + $0x20] sm:$0xff]  ;;  %s3047_s24 = scalar_lea.vmem %s3896_s0, %s2928_s13  ;;  %v2808_v12 = vld [vmem:[%s3897_s1 + $0x18] sm:$0xff]  ;;  %v2807_v16 = vld [vmem:[%s3897_s1 + $0x10] sm:$0xff]  ;;  %vm1350_vm5 = vsmask.f32 5376  ;;  %s2929_s22 = smul.u32 80, %s3919_s19 }
   0xf   : > { %v2821_v10 = vld [vmem:[%s3897_s1 + $0x60] sm:$0xff]  ;;  %v2820_v13 = vld [vmem:[%s3897_s1 + $0x58] sm:$0xff]  ;;  %v2819_v17 = vld [vmem:[%s3897_s1 + $0x50] sm:$0xff] }
  0x10   : > { %2913 = vmatpush.bf16.msra.mxu3 %v2811_v3  ;;  %335 = vmatpush.bf16.msra.mxu0 %v2811_v3  ;;  %v2829_v11 = vld [vmem:[%s3897_s1 + $0xa0] sm:$0xff]  ;;  %v2828_v14 = vld [vmem:[%s3897_s1 + $0x98] sm:$0xff]  ;;  %v3066_v18 = vld [vmem:[%s3047_s24 + $0x8] sm:$0xff]  ;;  %s224_s26 = scalar_lea.vmem %s3901_s5, %s2929_s22 }
  0x11   : > { %532 = vmatpush.bf16.msra.mxu1 %v2823_v4  ;;  %v2906_v15 = vld [vmem:[%s3047_s24] sm:$0xff]   ;;  %v2827_v20 = vld [vmem:[%s3897_s1 + $0x90] sm:$0xff]  ;;  %v2806_v23 = vld [vmem:[%s3897_s1 + $0x8] sm:$0xff]  ;;  %v442_v27 = vshll.u32 %v3066_v18, 16  ;;  %v597_v36 = vrot.slane %v3066_v18, 1  ;;  %v446_v48 = vshrl.u32 %v3066_v18, 16 }
  0x12   : > { %661 = vmatpush.bf16.msra.mxu2 %v2831_v5  ;;  %v437_v19 = vshll.u32 %v2906_v15, 16  ;;  %v2909_v21 = vld [vmem:[%s3047_s24] sm:$0xf0]  ;;  %v2910_v22 = vld [vmem:[%s3047_s24] sm:$0xe]  ;;  %v2818_v24 = vld [vmem:[%s3897_s1 + $0x48] sm:$0xff] }
  0x13   : > { %v435_v25 = vshrl.u32 %v2906_v15, 16  ;;  %v2826_v28 = vld [vmem:[%s3897_s1 + $0x88] sm:$0xff]  ;;  %v2911_v29 = vor.u32 %v2910_v22, %v2909_v21  ;;  %v2805_v30 = vld [vmem:[%s3897_s1] sm:$0xff]  ;;  %v444_v33 = vrot.slane %v442_v27, 1  ;;  %v2844_v37 = vld [vmem:[%s3897_s1 + $0xf8] sm:$0xff] }
  0x14   : > { %2914 = vmatpush.bf16.msra.mxu3 %v2810_v6  ;;  %336 = vmatpush.bf16.msra.mxu0 %v2810_v6  ;;  %v439_v26 = vrot.slane %v437_v19, 1  ;;  %v2817_v31 = vld [vmem:[%s3897_s1 + $0x40] sm:$0xff]  ;;  %v2802_v38 = vld [vmem:[%s3047_s24 + $0x10] sm:$0xff]  ;;  %v2852_v40 = vld [vmem:[%s3897_s1 + $0x138] sm:$0xff] }
  0x15   : > { %533 = vmatpush.bf16.msra.mxu1 %v2822_v7  ;;  %v2825_v34 = vld [vmem:[%s3897_s1 + $0x80] sm:$0xff]  ;;  %v596_v35 = vrot.slane %v2911_v29, 1  ;;  %v2843_v42 = vld [vmem:[%s3897_s1 + $0xf0] sm:$0xff]  ;;  %v2842_v46 = vld [vmem:[%s3897_s1 + $0xe8] sm:$0xff]  ;;  %v448_v54 = vor.u32 %v446_v48, %v444_v33 }
  0x16   : > { %662 = vmatpush.bf16.msra.mxu2 %v2830_v8  ;;  %v440_v32 = vor.u32 %v439_v26, %v435_v25  ;;  %v2800_v43 = vld [vmem:[%s3047_s24] sm:$0xff]  ;;  %v3107_v44 = vld [vmem:[%s3047_s24 + $0x10] sm:$0xff]  ;;  %v2872_v47 = vld [vmem:[%s3897_s1 + $0x1b8] sm:$0xff] }
  0x17   : > { %v598_v41 = vsel %vm595_vm1, %v596_v35, %v597_v36  ;;  %v2851_v45 = vld [vmem:[%s3897_s1 + $0x130] sm:$0xff]  ;;  %v450_v49 = vshll.u32 %v3107_v44, 16  ;;  %v2850_v50 = vld [vmem:[%s3897_s1 + $0x128] sm:$0xff]  ;;  %v2841_v51 = vld [vmem:[%s3897_s1 + $0xe0] sm:$0xff]  ;;  %v599_v57 = vrot.slane %v3107_v44, 1 }
  0x18   : > { %2915 = vmatpush.bf16.msra.mxu3 %v2809_v9  ;;  %337 = vmatpush.bf16.msra.mxu0 %v2809_v9  ;;  %v445_v39 = vsel %vm433_vm0, %v440_v32, %v444_v33  ;;  %v704_v52 = vld [vmem:[%s3047_s24 + $0x4] sm:$0xe]  ;;  %v3128_v53 = vld [vmem:[%s3047_s24 + $0x8] sm:$0xff]   ;;  %v2840_v58 = vld [vmem:[%s3897_s1 + $0xd8] sm:$0xff] }
  0x19   : > { %534 = vmatpush.bf16.msra.mxu1 %v2821_v10  ;;  %v452_v55 = vrot.slane %v450_v49, 1  ;;  %v2849_v56 = vld [vmem:[%s3897_s1 + $0x120] sm:$0xff]  ;;  %v742_v59 = vunpack.c.l.b16 %v704_v52  ;;  %v743_v60 = vunpack.c.l.b16 %v3128_v53  ;;  %v2803_v61 = vld [vmem:[%s3047_s24 + $0x18] sm:$0xff]  ;;  %v600_v0 = vsel %vm595_vm1, %v597_v36, %v599_v57  ;;  %v2839_v1 = vld [vmem:[%s3897_s1 + $0xd0] sm:$0xff] }
  0x1a   : > { %663 = vmatpush.bf16.msra.mxu2 %v2829_v11  ;;  %v2848_v63 = vld [vmem:[%s3897_s1 + $0x118] sm:$0xff]  ;;  %v2801_v2 = vld [vmem:[%s3047_s24 + $0x8] sm:$0xff]  ;;  %v2847_v7 = vld [vmem:[%s3897_s1 + $0x110] sm:$0xff] }
  0x1b   : > { %v453_v62 = vsel %vm433_vm0, %v448_v54, %v452_v55  ;;  %v3151_v3 = vld [vmem:[%s3047_s24 + $0xc] sm:$0xff]  ;;  %v3155_v4 = vpack.c.b16 %v743_v60, %v742_v59  ;;  %v2860_v5 = vld [vmem:[%s3897_s1 + $0x178] sm:$0xff]  ;;  %v2837_v19 = vld [vmem:[%s3897_s1 + $0xc0] sm:$0xff] }
  0x1c   : > { %2916 = vmatpush.bf16.msra.mxu3 %v2808_v12  ;;  %338 = vmatpush.bf16.msra.mxu0 %v2808_v12  ;;  %v3161_v6 = vld [vmem:[%s3047_s24 + $0x18] sm:$0xff]  ;;  %v2871_v8 = vld [vmem:[%s3897_s1 + $0x1b0] sm:$0xff]  ;;  %v2838_v9 = vld [vmem:[%s3897_s1 + $0xc8] sm:$0xff]  ;;  %v897_v12 = vshrl.u32 %v3151_v3, 16 }
  0x1d   : > { %535 = vmatpush.bf16.msra.mxu1 %v2820_v13  ;;  %v889_v10 = vshrl.u32 %v3155_v4, 16  ;;  %v892_v11 = vshll.u32 %v3155_v4, 16  ;;  %v900_v13 = vshll.u32 %v3151_v3, 16  ;;  %v2870_v15 = vld [vmem:[%s3897_s1 + $0x1a8] sm:$0xff]  ;;  %v2869_v26 = vld [vmem:[%s3897_s1 + $0x1a0] sm:$0xff]  ;;  %v2855_v49 = vld [vmem:[%s3897_s1 + $0x150] sm:$0xff] }
  0x1e   : > { %664 = vmatpush.bf16.msra.mxu2 %v2828_v14  ;;  %v2859_v14 = vld [vmem:[%s3897_s1 + $0x170] sm:$0xff]  ;;  %v2846_v18 = vld [vmem:[%s3897_s1 + $0x108] sm:$0xff]  ;;  %v899_v22 = vrot.slane %v897_v12, 1  ;;  %v2845_v29 = vld [vmem:[%s3897_s1 + $0x100] sm:$0xff]  ;;  %v462_v52 = vshrl.u32 %v3161_v6, 16 }
  0x1f   : > { %v894_v21 = vrot.slane %v892_v11, 2  ;;  %v2858_v25 = vld [vmem:[%s3897_s1 + $0x168] sm:$0xff]  ;;  %v2857_v35 = vld [vmem:[%s3897_s1 + $0x160] sm:$0xff] }
  0x20   : > { %2917 = vmatpush.bf16.msra.mxu3 %v2807_v16  ;;  %339 = vmatpush.bf16.msra.mxu0 %v2807_v16  ;;  %v454_v16 = vshrl.u32 %v3107_v44, 16  ;;  %v2804_v36 = vld [vmem:[%s3047_s24 + $0x20] sm:$0xff]  ;;  %v2887_v44 = vld [vmem:[%s3897_s1 + $0x230] sm:$0xff] }
  0x21   : > { %536 = vmatpush.bf16.msra.mxu1 %v2819_v17  ;;  %v458_v17 = vshll.u32 %v3161_v6, 16  ;;  %v3277_v12 = vld [vmem:[%s3047_s24 + $0x1c] sm:$0xff] }
  0x22   : > { %665 = vmatpush.bf16.msra.mxu2 %v2827_v20  ;;  %v891_v20 = vrot.slane %v889_v10, 1  ;;  %v456_v27 = vor.u32 %v454_v16, %v452_v55  ;;  %v2866_v55 = vld [vmem:[%s3897_s1 + $0x188] sm:$0xff]  ;;  %v918_v16 = vshll.u32 %v3277_v12, 16 }
  0x24   : > { %2918 = vmatpush.bf16.msra.mxu3 %v2806_v23  ;;  %340 = vmatpush.bf16.msra.mxu0 %v2806_v23  ;;  %v902_v23 = vrot.slane %v900_v13, 2  ;;  %v895_v32 = vor.u32 %v894_v21, %v891_v20  ;;  %v920_v20 = vrot.slane %v918_v16, 2 }
  0x25   : > { %537 = vmatpush.bf16.msra.mxu1 %v2818_v24  ;;  %v2880_v24 = vld [vmem:[%s3897_s1 + $0x1f8] sm:$0xff] }
  0x26   : > { %666 = vmatpush.bf16.msra.mxu2 %v2826_v28  ;;  %v460_v28 = vrot.slane %v458_v17, 1  ;;  %v903_v33 = vor.u32 %v902_v23, %v899_v22 }
  0x28   : > { %2919 = vmatpush.bf16.msra.mxu3 %v2805_v30  ;;  %341 = vmatpush.bf16.msra.mxu0 %v2805_v30  ;;  %v601_v30 = vrot.slane %v3161_v6, 1  ;;  %v464_v59 = vor.u32 %v462_v52, %v460_v28  ;;  %v2876_v6 = vld [vmem:[%s3897_s1 + $0x1d8] sm:$0xff] }
  0x29   : > { %538 = vmatpush.bf16.msra.mxu1 %v2817_v31  ;;  %v2888_v31 = vld [vmem:[%s3897_s1 + $0x238] sm:$0xff] }
  0x2a   : > { %667 = vmatpush.bf16.msra.mxu2 %v2825_v34  ;;  %v2879_v34 = vld [vmem:[%s3897_s1 + $0x1f0] sm:$0xff] }
  0x2b   : > { %352 = vmatmul.bf16.vlgmr.msra.gmra.mxu3 %v2802_v38  ;;  %342 = vmatmul.bf16.vlgmr.msra.gmra.mxu0 %v2800_v43  ;;  %v602_v38 = vsel %vm595_vm1, %v599_v57, %v601_v30  ;;  %v3230_v43 = vld [vmem:[%s3047_s24 + $0x20] sm:$0xff] }
  0x2c   : > { %823 = vmatpush.bf16.msrb.mxu3 %v2844_v37  ;;  %539 = vmatmul.bf16.vlgmr.msra.gmra.mxu1 %v445_v39  ;;  %v461_v37 = vsel %vm433_vm0, %v456_v27, %v460_v28  ;;  %v904_v39 = vsel %vm887_vm2, %v895_v32, %v903_v33  ;;  %v466_v54 = vshll.u32 %v3230_v43, 16  ;;  %v470_v17 = vshrl.u32 %v3230_v43, 16  ;;  %v3296_v32 = vld [vmem:[%s3047_s24 + $0x24] sm:$0xff] }
  0x2d   : > { %668 = vmatmul.bf16.vlgmr.msra.gmra.mxu2 %v598_v41  ;;  %994 = vmatpush.bf16.msrb.mxu0 %v2852_v40  ;;  %v3221_v40 = vld [vmem:[%s3047_s24 + $0x14] sm:$0xff] }
  0x2e   : > { %1286 = vmatpush.bf16.msrb.mxu2 %v2872_v47  ;;  %1123 = vmatpush.bf16.msrb.mxu1 %v2860_v5  ;;  %v2856_v41 = vld [vmem:[%s3897_s1 + $0x158] sm:$0xff]  ;;  %v906_v47 = vshrl.u32 %v3221_v40, 16  ;;  %v909_v48 = vshll.u32 %v3221_v40, 16  ;;  %v762_v23 = vrot.slane %v3221_v40, 1 }
  0x30   : > { %824 = vmatpush.bf16.msrb.mxu3 %v2843_v42  ;;  %v2868_v42 = vld [vmem:[%s3897_s1 + $0x198] sm:$0xff]  ;;  %v911_v57 = vrot.slane %v909_v48, 2  ;;  %v867_v48 = vld [vmem:[%s3047_s24 + $0x2c] sm:$0x3] }
  0x31   : > { %995 = vmatpush.bf16.msrb.mxu0 %v2851_v45  ;;  %v2878_v45 = vld [vmem:[%s3897_s1 + $0x1e8] sm:$0xff] }
  0x32   : > { %1287 = vmatpush.bf16.msrb.mxu2 %v2871_v8  ;;  %1124 = vmatpush.bf16.msrb.mxu1 %v2859_v14  ;;  %v2885_v14 = vld [vmem:[%s3897_s1 + $0x220] sm:$0xff] }
  0x34   : > { %825 = vmatpush.bf16.msrb.mxu3 %v2842_v46  ;;  %v2867_v46 = vld [vmem:[%s3897_s1 + $0x190] sm:$0xff] }
  0x35   : > { %996 = vmatpush.bf16.msrb.mxu0 %v2850_v50  ;;  %v2886_v50 = vld [vmem:[%s3897_s1 + $0x228] sm:$0xff] }
  0x36   : > { %1288 = vmatpush.bf16.msrb.mxu2 %v2870_v15  ;;  %1125 = vmatpush.bf16.msrb.mxu1 %v2858_v25  ;;  %v915_v15 = vshrl.u32 %v3277_v12, 16 }
  0x38   : > { %826 = vmatpush.bf16.msrb.mxu3 %v2841_v51  ;;  %v2877_v51 = vld [vmem:[%s3897_s1 + $0x1e0] sm:$0xff] }
  0x39   : > { %997 = vmatpush.bf16.msrb.mxu0 %v2849_v56  ;;  %v908_v56 = vrot.slane %v906_v47, 1 }
  0x3a   : > { %1289 = vmatpush.bf16.msrb.mxu2 %v2869_v26  ;;  %1126 = vmatpush.bf16.msrb.mxu1 %v2857_v35  ;;  %v2875_v35 = vld [vmem:[%s3897_s1 + $0x1d0] sm:$0xff] }
  0x3b   : > { %357 = vmatmul.bf16.gmra.mxu3 %v2803_v61  ;;  %347 = vmatmul.bf16.gmra.mxu0 %v2801_v2  ;;  %v468_v61 = vrot.slane %v466_v54, 1  ;;  %v2865_v2 = vld [vmem:[%s3897_s1 + $0x180] sm:$0xff]  ;;  %v912_v5 = vor.u32 %v911_v57, %v908_v56  ;;  %v885_v54 = vunpack.c.l.b16 %v867_v48 }
  0x3c   : > { %827 = vmatpush.bf16.msrb.mxu3 %v2840_v58  ;;  %544 = vmatmul.bf16.gmra.mxu1 %v453_v62  ;;  %v2854_v58 = vld [vmem:[%s3897_s1 + $0x148] sm:$0xff]  ;;  %v759_v62 = vrot.slane %v3155_v4, 1  ;;  %v3380_v48 = vld [vmem:[%s3898_s2] ss:$0 sm:$0xff] }
  0x3d   : > { %673 = vmatmul.bf16.gmra.mxu2 %v600_v0  ;;  %998 = vmatpush.bf16.msrb.mxu0 %v2848_v63  ;;  %v760_v63 = vrot.slane %v3151_v3, 1  ;;  %v603_v0 = vrot.slane %v3230_v43, 1  ;;  %v469_v8 = vsel %vm433_vm0, %v464_v59, %v468_v61  ;;  %v913_v11 = vsel %vm887_vm2, %v903_v33, %v912_v5 }
  0x3e   : > { %1290 = vmatpush.bf16.msrb.mxu2 %v2868_v42  ;;  %1127 = vmatpush.bf16.msrb.mxu1 %v2856_v41  ;;  %v472_v21 = vor.u32 %v470_v17, %v468_v61  ;;  %v2883_v41 = vld [vmem:[%s3897_s1 + $0x210] sm:$0xff]  ;;  %v2874_v42 = vld [vmem:[%s3897_s1 + $0x1c8] sm:$0xff]  ;;  %v3329_v59 = vpack.c.b16 %v885_v54, %v885_v54  ;;  %v2873_v61 = vld [vmem:[%s3897_s1 + $0x1c0] sm:$0xff] }
  0x3f   : > { %v761_v4 = vsel %vm595_vm1, %v759_v62, %v760_v63  ;;  %v604_v10 = vsel %vm595_vm1, %v601_v30, %v603_v0  ;;  %v763_v27 = vsel %vm595_vm1, %v760_v63, %v762_v23 }
  0x40   : > { %828 = vmatpush.bf16.msrb.mxu3 %v2839_v1  ;;  %v388_v1 = vld [vmem:[%s3047_s24 + $0x28] sm:$0x1]  ;;  %v933_v62 = vshrl.u32 %v3329_v59, 16  ;;  %v936_v63 = vshll.u32 %v3329_v59, 16 }
  0x41   : > { %999 = vmatpush.bf16.msrb.mxu0 %v2847_v7  ;;  %v2853_v7 = vld [vmem:[%s3897_s1 + $0x140] sm:$0xff] }
  0x42   : > { %1291 = vmatpush.bf16.msrb.mxu2 %v2867_v46  ;;  %1128 = vmatpush.bf16.msrb.mxu1 %v2855_v49  ;;  %v764_v49 = vrot.slane %v3277_v12, 1 }
  0x44   : > { %829 = vmatpush.bf16.msrb.mxu3 %v2838_v9  ;;  %v426_v9 = vunpack.c.l.b16 %v388_v1  ;;  %v935_v1 = vrot.slane %v933_v62, 1 }
  0x45   : > { %1000 = vmatpush.bf16.msrb.mxu0 %v2846_v18 }
  0x46   : > { %1292 = vmatpush.bf16.msrb.mxu2 %v2866_v55  ;;  %1129 = vmatpush.bf16.msrb.mxu1 %v2854_v58  ;;  %v432_v13 = vpack.c.b16 %v426_v9, %v426_v9  ;;  %v765_v55 = vsel %vm595_vm1, %v762_v23, %v764_v49  ;;  %v2881_v9 = vld [vmem:[%s3897_s1 + $0x200] sm:$0xff] }
  0x48   : > { %830 = vmatpush.bf16.msrb.mxu3 %v2837_v19  ;;  %v474_v18 = vshll.u32 %v432_v13, 16  ;;  %v917_v19 = vrot.slane %v915_v15, 1 }
  0x49   : > { %1001 = vmatpush.bf16.msrb.mxu0 %v2845_v29  ;;  %v1038_v29 = vld [vmem:[%s3047_s24 + $0x4] sm:$0xc] }
  0x4a   : > { %1293 = vmatpush.bf16.msrb.mxu2 %v2865_v2  ;;  %1130 = vmatpush.bf16.msrb.mxu1 %v2853_v7  ;;  %v476_v22 = vrot.slane %v474_v18, 1  ;;  %v921_v25 = vor.u32 %v920_v20, %v917_v19  ;;  %v1056_v33 = vunpack.c.l.b16 %v1038_v29  ;;  %v938_v2 = vrot.slane %v936_v63, 2  ;;  %v3355_v18 = vld [vmem:[%s3047_s24 + $0x20] sm:$0xff] }
  0x4b   : > { %362 = vmatmul.bf16.gmra.mxu3 %v2804_v36  ;;  %v1062_v7 = vrot.slane %v3221_v40, 2  ;;  %v1501_v40 = vld [vmem:[%s3047_s24 + $0x8] sm:$0x8] }
  0x4c   : > { %1457 = vmatpush.bf16.msra.mxu3 %v2880_v24  ;;  %549 = vmatmul.bf16.gmra.mxu1 %v461_v37  ;;  %v605_v24 = vrot.slane %v432_v13, 1  ;;  %v477_v26 = vsel %vm433_vm0, %v472_v21, %v476_v22  ;;  %v922_v30 = vsel %vm887_vm2, %v912_v5, %v921_v25  ;;  %v1206_v37 = vunpack.c.h.b16 %v3128_v53 }
  0x4d   : > { %1586 = vmatpush.bf16.msra.mxu0 %v2888_v31  ;;  %678 = vmatmul.bf16.gmra.mxu2 %v602_v38  ;;  %v1167_v31 = vld [vmem:[%s3047_s24 + $0x8] sm:$0xc]  ;;  %v924_v38 = vshrl.u32 %v3296_v32, 16  ;;  %v1057_v43 = vpack.c.b16 %v743_v60, %v1056_v33  ;;  %v766_v5 = vrot.slane %v3296_v32, 1  ;;  %v1519_v16 = vunpack.c.l.b16 %v1501_v40 }
  0x4e   : > { %1002 = vmatmul.bf16.vlgmr.msrb.gmra.mxu0 %v904_v39  ;;  %v606_v28 = vsel %vm595_vm1, %v603_v0, %v605_v24  ;;  %v1205_v36 = vunpack.c.l.b16 %v1167_v31  ;;  %v927_v39 = vshll.u32 %v3296_v32, 16  ;;  %v3340_v0 = vld [vmem:[%s3047_s24 + $0x18] sm:$0xff]  ;;  %v1064_v21 = vrot.slane %v3277_v12, 2 }
  0x4f   : > { %v926_v46 = vrot.slane %v924_v38, 1  ;;  %v1520_v19 = vpack.c.b16 %v1206_v37, %v1519_v16  ;;  %v1227_v22 = vrot.slane %v3355_v18, 2  ;;  %v1066_v38 = vrot.slane %v3296_v32, 2 }
  0x50   : > { %1458 = vmatpush.bf16.msra.mxu3 %v2879_v34  ;;  %v2884_v34 = vld [vmem:[%s3897_s1 + $0x218] sm:$0xff]  ;;  %v929_v47 = vrot.slane %v927_v39, 2  ;;  %v1381_v40 = vshll.u32 %v3355_v18, 16 }
  0x51   : > { %1587 = vmatpush.bf16.msra.mxu0 %v2887_v44  ;;  %v3316_v44 = vld [vmem:[%s3047_s24 + $0x10] sm:$0xff]  ;;  %v1522_v23 = vrot.slane %v1520_v19, 3 }
  0x52   : > { %v1223_v53 = vrot.slane %v3316_v44, 2  ;;  %v930_v60 = vor.u32 %v929_v47, %v926_v46  ;;  %v1523_v24 = vrot.slane %v3316_v44, 3  ;;  %v1363_v31 = vshll.u32 %v3316_v44, 16 }
  0x54   : > { %1459 = vmatpush.bf16.msra.mxu3 %v2878_v45  ;;  %v3318_v45 = vpack.c.b16 %v1206_v37, %v1205_v36  ;;  %v931_v58 = vsel %vm887_vm2, %v921_v25, %v930_v60  ;;  %v1365_v36 = vrot.slane %v1363_v31, 3  ;;  %v3369_v37 = vld [vmem:[%s3047_s24 + $0x28] sm:$0xff] }
  0x55   : > { %1588 = vmatpush.bf16.msra.mxu0 %v2886_v50  ;;  %v1059_v50 = vrot.slane %v1057_v43, 2  ;;  %v1525_v43 = vrot.slane %v3340_v0, 3 }
  0x56   : > { %v1222_v52 = vrot.slane %v3318_v45, 2  ;;  %v1352_v12 = vshrl.u32 %v3318_v45, 16  ;;  %v1355_v29 = vshll.u32 %v3318_v45, 16 }
  0x58   : > { %1460 = vmatpush.bf16.msra.mxu3 %v2877_v51  ;;  %v1060_v51 = vrot.slane %v3151_v3, 2  ;;  %v1224_v57 = vsel %vm1058_vm3, %v1222_v52, %v1223_v53  ;;  %v2882_v3 = vld [vmem:[%s3897_s1 + $0x208] sm:$0xff]  ;;  %v1354_v33 = vrot.slane %v1352_v12, 2  ;;  %v1369_v52 = vshrl.u32 %v3340_v0, 16 }
  0x59   : > { %1589 = vmatpush.bf16.msra.mxu0 %v2885_v14  ;;  %v714_v14 = vld [vmem:[%s3047_s24 + $0x2c] sm:$0x1] }
  0x5a   : > { %v1061_v56 = vsel %vm1058_vm3, %v1059_v50, %v1060_v51  ;;  %v752_v15 = vunpack.c.l.b16 %v714_v14  ;;  %v1526_v50 = vsel %vm1521_vm4, %v1523_v24, %v1525_v43 }
  0x5b   : > { %831 = vmatmul.bf16.vlgmr.msrb.gmra.mxu3 %v761_v4  ;;  %v939_v4 = vor.u32 %v938_v2, %v935_v1  ;;  %v1068_v1 = vrot.slane %v3329_v59, 2 }
  0x5c   : > { %554 = vmatmul.bf16.gmra.mxu1 %v469_v8  ;;  %1461 = vmatpush.bf16.msra.mxu3 %v2876_v6  ;;  %v1225_v8 = vrot.slane %v3340_v0, 2  ;;  %v758_v17 = vpack.c.b16 %v752_v15, %v752_v15 }
  0x5d   : > { %683 = vmatmul.bf16.gmra.mxu2 %v604_v10  ;;  %1590 = vmatpush.bf16.msra.mxu0 %v2884_v34  ;;  %v767_v10 = vsel %vm595_vm1, %v764_v49, %v766_v5  ;;  %v940_v6 = vsel %vm887_vm2, %v930_v60, %v939_v4  ;;  %v1357_v34 = vrot.slane %v1355_v29, 3  ;;  %v1177_v49 = vld [vmem:[%s3047_s24 + $0x30] sm:$0x3] }
  0x5e   : > { %1007 = vmatmul.bf16.gmra.mxu0 %v913_v11  ;;  %v1063_v11 = vsel %vm1058_vm3, %v1060_v51, %v1062_v7  ;;  %v1226_v13 = vsel %vm1058_vm3, %v1223_v53, %v1225_v8  ;;  %v768_v20 = vrot.slane %v758_v17, 1  ;;  %v1372_v53 = vshll.u32 %v3340_v0, 16 }
  0x5f   : > { %v1358_v39 = vor.u32 %v1357_v34, %v1354_v33  ;;  %v1215_v54 = vunpack.c.l.b16 %v1177_v49  ;;  %v1527_v0 = vrot.slane %v3355_v18, 3  ;;  %v1387_v33 = vshrl.u32 %v3369_v37, 16 }
  0x60   : > { %1462 = vmatpush.bf16.msra.mxu3 %v2875_v35  ;;  %v769_v25 = vsel %vm595_vm1, %v766_v5, %v768_v20  ;;  %v1390_v34 = vshll.u32 %v3369_v37, 16 }
  0x61   : > { %1591 = vmatpush.bf16.msra.mxu0 %v2883_v41  ;;  %v1221_v62 = vpack.c.b16 %v1215_v54, %v1215_v54  ;;  %v1528_v14 = vsel %vm1521_vm4, %v1525_v43, %v1527_v0 }
  0x63   : > { %v1231_v5 = vrot.slane %v1221_v62, 2 }
  0x64   : > { %1463 = vmatpush.bf16.msra.mxu3 %v2874_v42  ;;  %v1229_v42 = vrot.slane %v3369_v37, 2 }
  0x65   : > { %1592 = vmatpush.bf16.msra.mxu0 %v2882_v3  ;;  %v1374_v3 = vrot.slane %v1372_v53, 3 }
  0x66   : > { %v1230_v47 = vsel %vm1058_vm3, %v1227_v22, %v1229_v42 }
  0x68   : > { %1464 = vmatpush.bf16.msra.mxu3 %v2873_v61 }
  0x69   : > { %1593 = vmatpush.bf16.msra.mxu0 %v2881_v9  ;;  %v1069_v9 = vsel %vm1058_vm3, %v1066_v38, %v1068_v1 }
  0x6b   : > { %836 = vmatmul.bf16.gmra.mxu3 %v763_v27  ;;  %v1228_v27 = vsel %vm1058_vm3, %v1225_v8, %v1227_v22 }
  0x6c   : > { %559 = vmatmul.bf16.gmra.mxu1 %v477_v26  ;;  %v1065_v26 = vsel %vm1058_vm3, %v1062_v7, %v1064_v21 }
  0x6d   : > { %688 = vmatmul.bf16.gmra.mxu2 %v606_v28  ;;  %v1524_v28 = vsel %vm1521_vm4, %v1522_v23, %v1523_v24 }
  0x6e   : > { %1012 = vmatmul.bf16.gmra.mxu0 %v922_v30  ;;  %v1360_v30 = vshrl.u32 %v3316_v44, 16  ;;  %v1067_v44 = vsel %vm1058_vm3, %v1064_v21, %v1066_v38  ;;  %v1383_v21 = vrot.slane %v1381_v40, 3 }
  0x70   : > { %v1362_v35 = vrot.slane %v1360_v30, 2 }
  0x72   : > { %v1366_v41 = vor.u32 %v1365_v36, %v1362_v35  ;;  %v1330_v35 = vld [vmem:[%s3047_s24 + $0x30] sm:$0x7] }
  0x74   : > { %v1367_v46 = vsel %vm1350_vm5, %v1358_v39, %v1366_v41 }
  0x7b   : > { %841 = vmatmul.bf16.gmra.mxu3 %v765_v55 }
  0x7c   : > { %1131 = vmatmul.bf16.vlgmr.msrb.gmra.mxu1 %v1061_v56 }
  0x7d   : > { %1294 = vmatmul.bf16.vlgmr.msrb.gmra.mxu2 %v1224_v57 }
  0x7e   : > { %1017 = vmatmul.bf16.gmra.mxu0 %v931_v58  ;;  %v1371_v58 = vrot.slane %v1369_v52, 2 }
  0x80   : > { %v1375_v2 = vor.u32 %v1374_v3, %v1371_v58  ;;  %v2895_v3 = vld [vmem:[%s3899_s3 + $0x30] sm:$0xff] }
  0x8b   : > { %846 = vmatmul.bf16.gmra.mxu3 %v767_v10  ;;  %v1376_v10 = vsel %vm1350_vm5, %v1366_v41, %v1375_v2 }
  0x8c   : > { %1136 = vmatmul.bf16.gmra.mxu1 %v1063_v11  ;;  %v1232_v11 = vsel %vm1058_vm3, %v1229_v42, %v1231_v5 }
  0x8d   : > { %1299 = vmatmul.bf16.gmra.mxu2 %v1226_v13 }
  0x8e   : > { %1022 = vmatmul.bf16.gmra.mxu0 %v940_v6  ;;  %v1378_v6 = vshrl.u32 %v3355_v18, 16 }
  0x90   : > { %v1380_v20 = vrot.slane %v1378_v6, 2 }
  0x92   : > { %v1384_v24 = vor.u32 %v1383_v21, %v1380_v20 }
  0x94   : > { %v1385_v12 = vsel %vm1350_vm5, %v1375_v2, %v1384_v24 }
  0x9b   : > { %851 = vmatmul.bf16.gmra.mxu3 %v769_v25 }
  0x9c   : > { %1141 = vmatmul.bf16.gmra.mxu1 %v1065_v26  ;;  %v1529_v26 = vrot.slane %v3369_v37, 3  ;;  %v2896_v37 = vld [vmem:[%s3899_s3 + $0x38] sm:$0xff] }
  0x9d   : > { %1304 = vmatmul.bf16.gmra.mxu2 %v1228_v27  ;;  %1719 = vmatpush.bf16.msrb.mxu0 %v2896_v37 }
  0x9e   : > { %1594 = vmatmul.bf16.vlgmr.msra.gmra.mxu0 %v1524_v28  ;;  %v1530_v31 = vsel %vm1521_vm4, %v1527_v0, %v1529_v26  ;;  %2920 = vmatpush.bf16.msra.mxu1 %v2896_v37 }
  0xa1   : > { %1720 = vmatpush.bf16.msrb.mxu0 %v2895_v3 }
  0xa2   : > { %2921 = vmatpush.bf16.msra.mxu1 %v2895_v3 }
  0xa8   : > { %v343_v32 = vpop.f32.mrf.mxu0 }
  0xa9   : > { %v540_v45 = vpop.f32.mrf.mxu1  ;;  %v368_v51 = vadd.f32 %v3380_v48, %v343_v32 }
  0xab   : > { %1465 = vmatmul.bf16.vlgmr.msra.gmra.mxu3 %v1367_v46  ;;  %v565_v60 = vadd.f32 %v540_v45, %v368_v51  ;;  %v1389_v45 = vrot.slane %v1387_v33, 2  ;;  %v1348_v46 = vunpack.c.l.b16 %v1330_v35  ;;  %v2893_v35 = vld [vmem:[%s3899_s3 + $0x20] sm:$0xff] }
  0xac   : > { %1146 = vmatmul.bf16.gmra.mxu1 %v1067_v44  ;;  %v1392_v44 = vrot.slane %v1390_v34, 3 }
  0xad   : > { %1309 = vmatmul.bf16.gmra.mxu2 %v1230_v47 }
  0xae   : > { %1599 = vmatmul.bf16.gmra.mxu0 %v1526_v50  ;;  %v353_v55 = vpop.f32.mrf.mxu3  ;;  %v1393_v49 = vor.u32 %v1392_v44, %v1389_v45  ;;  %v1349_v50 = vpack.c.b16 %v1348_v46, %v1348_v46  ;;  %v2892_v46 = vld [vmem:[%s3899_s3 + $0x18] sm:$0xff] }
  0xaf   : > { %v372_v27 = vadd.f32 %v3380_v48, %v353_v55 }
  0xb0   : > { %v669_v56 = vpop.f32.mrf.mxu2  ;;  %v3391_v63 = vpop.f32.mrf.mxu0  ;;  %v1531_v52 = vrot.slane %v1349_v50, 3  ;;  %v1396_v2 = vshrl.u32 %v1349_v50, 16  ;;  %v1399_v5 = vshll.u32 %v1349_v50, 16 }
  0xb1   : > { %v3387_v57 = vpop.f32.mrf.mxu1  ;;  %v3389_v61 = vadd.f32 %v669_v56, %v565_v60  ;;  %v1394_v56 = vsel %vm1350_vm5, %v1384_v24, %v1393_v49 }
  0xb2   : > { %v1532_v1 = vsel %vm1521_vm4, %v1529_v26, %v1531_v52 }
  0xb6   : > { %v355_v7 = vpop.f32.mrf.mxu3 }
  0xb7   : > { %v373_v38 = vadd.f32 %v3380_v48, %v355_v7  ;;  %v369_v7 = vadd.f32 %v3380_v48, %v3391_v63  ;;  %v2894_v63 = vld [vmem:[%s3899_s3 + $0x28] sm:$0xff] }
  0xb8   : > { %v3395_v8 = vpop.f32.mrf.mxu2  ;;  %v348_v13 = vpop.f32.mrf.mxu0  ;;  %1721 = vmatpush.bf16.msrb.mxu0 %v2894_v63  ;;  %2922 = vmatpush.bf16.msra.mxu1 %v2894_v63 }
  0xb9   : > { %v545_v4 = vpop.f32.mrf.mxu1  ;;  %v370_v59 = vadd.f32 %v3380_v48, %v348_v13  ;;  %v566_v6 = vadd.f32 %v3387_v57, %v369_v7  ;;  %v2889_v7 = vld [vmem:[%s3899_s3] sm:$0xff] }
  0xbb   : > { %1470 = vmatmul.bf16.gmra.mxu3 %v1376_v10  ;;  %v567_v15 = vadd.f32 %v545_v4, %v370_v59  ;;  %v1401_v59 = vrot.slane %v1399_v5, 3  ;;  %v695_v20 = vadd.f32 %v3395_v8, %v566_v6 }
  0xbc   : > { %1151 = vmatmul.bf16.gmra.mxu1 %v1069_v9  ;;  %1722 = vmatpush.bf16.msrb.mxu0 %v2893_v35 }
  0xbd   : > { %1314 = vmatmul.bf16.gmra.mxu2 %v1232_v11  ;;  %2923 = vmatpush.bf16.msra.mxu1 %v2893_v35 }
  0xbe   : > { %1604 = vmatmul.bf16.gmra.mxu0 %v1528_v14  ;;  %v358_v16 = vpop.f32.mrf.mxu3  ;;  %v1398_v14 = vrot.slane %v1396_v2, 2 }
  0xbf   : > { %v374_v53 = vadd.f32 %v3380_v48, %v358_v16 }
  0xc0   : > { %v674_v17 = vpop.f32.mrf.mxu2  ;;  %v3408_v23 = vpop.f32.mrf.mxu0  ;;  %1723 = vmatpush.bf16.msrb.mxu0 %v2892_v46 }
  0xc1   : > { %v3404_v19 = vpop.f32.mrf.mxu1  ;;  %v3406_v22 = vadd.f32 %v674_v17, %v567_v15  ;;  %v1402_v17 = vor.u32 %v1401_v59, %v1398_v14  ;;  %2924 = vmatpush.bf16.msra.mxu1 %v2892_v46 }
  0xc3   : > { %v1403_v57 = vsel %vm1350_vm5, %v1393_v49, %v1402_v17 }
  0xc6   : > { %v360_v25 = vpop.f32.mrf.mxu3 }
  0xc7   : > { %v375_v4 = vadd.f32 %v3380_v48, %v360_v25 }
  0xc8   : > { %v3412_v18 = vpop.f32.mrf.mxu2 }
  0xc9   : > { %v550_v28 = vpop.f32.mrf.mxu1 }
  0xca   : > { %v569_v29 = vadd.f32 %v550_v28, %v372_v27 }
  0xcb   : > { %v1003_v30 = vpop.f32.mrf.mxu0  ;;  %1475 = vmatmul.bf16.gmra.mxu3 %v1385_v12 }
  0xce   : > { %1609 = vmatmul.bf16.gmra.mxu0 %v1530_v31  ;;  %v363_v36 = vpop.f32.mrf.mxu3 }
  0xcf   : > { %v376_v39 = vadd.f32 %v3380_v48, %v363_v36 }
  0xd0   : > { %v679_v41 = vpop.f32.mrf.mxu2 }
  0xd1   : > { %v3421_v42 = vadd.f32 %v679_v41, %v569_v29  ;;  %v552_v43 = vpop.f32.mrf.mxu1  ;;  %v371_v29 = vadd.f32 %v3380_v48, %v3408_v23 }
  0xd2   : > { %v3423_v47 = vadd.f32 %v552_v43, %v373_v38 }
  0xd3   : > { %v1005_v32 = vpop.f32.mrf.mxu0  ;;  %v568_v36 = vadd.f32 %v3404_v19, %v371_v29 }
  0xd6   : > { %v365_v51 = vpop.f32.mrf.mxu3 }
  0xd7   : > { %v377_v60 = vadd.f32 %v3380_v48, %v365_v51  ;;  %v697_v48 = vadd.f32 %v3412_v18, %v568_v36  ;;  %v2891_v18 = vld [vmem:[%s3899_s3 + $0x10] sm:$0xff] }
  0xd8   : > { %v3430_v54 = vpop.f32.mrf.mxu2  ;;  %1724 = vmatpush.bf16.msrb.mxu0 %v2891_v18  ;;  %2925 = vmatpush.bf16.msra.mxu1 %v2891_v18 }
  0xd9   : > { %v555_v55 = vpop.f32.mrf.mxu1  ;;  %v699_v51 = vadd.f32 %v3430_v54, %v3423_v47 }
  0xda   : > { %v571_v58 = vadd.f32 %v555_v55, %v374_v53 }
  0xdb   : > { %v1008_v62 = vpop.f32.mrf.mxu0  ;;  %1480 = vmatmul.bf16.gmra.mxu3 %v1394_v56 }
  0xde   : > { %1614 = vmatmul.bf16.gmra.mxu0 %v1532_v1  ;;  %v832_v0 = vpop.f32.mrf.mxu3 }
  0xdf   : > { %v857_v10 = vadd.f32 %v832_v0, %v3389_v61 }
  0xe0   : > { %v684_v9 = vpop.f32.mrf.mxu2 }
  0xe1   : > { %v700_v11 = vadd.f32 %v684_v9, %v571_v58  ;;  %v557_v13 = vpop.f32.mrf.mxu1  ;;  %v3442_v15 = vadd.f32 %v1003_v30, %v857_v10 }
  0xe2   : > { %v572_v40 = vadd.f32 %v557_v13, %v375_v4 }
  0xe3   : > { %v1010_v16 = vpop.f32.mrf.mxu0 }
  0xe6   : > { %v834_v61 = vpop.f32.mrf.mxu3 }
  0xe7   : > { %v858_v24 = vadd.f32 %v834_v61, %v695_v20 }
  0xe8   : > { %v686_v21 = vpop.f32.mrf.mxu2 }
  0xe9   : > { %v701_v25 = vadd.f32 %v686_v21, %v572_v40  ;;  %v560_v26 = vpop.f32.mrf.mxu1  ;;  %v3449_v28 = vadd.f32 %v1005_v32, %v858_v24 }
  0xea   : > { %v573_v27 = vadd.f32 %v560_v26, %v376_v39 }
  0xeb   : > { %v1013_v12 = vpop.f32.mrf.mxu0  ;;  %1485 = vmatmul.bf16.gmra.mxu3 %v1403_v57 }
  0xee   : > { %v837_v30 = vpop.f32.mrf.mxu3 }
  0xef   : > { %v859_v33 = vadd.f32 %v837_v30, %v3406_v22 }
  0xf0   : > { %v689_v31 = vpop.f32.mrf.mxu2 }
  0xf1   : > { %v702_v8 = vadd.f32 %v689_v31, %v573_v27  ;;  %v562_v34 = vpop.f32.mrf.mxu1  ;;  %v3458_v39 = vadd.f32 %v1008_v62, %v859_v33 }
  0xf2   : > { %v574_v38 = vadd.f32 %v562_v34, %v377_v60 }
  0xf3   : > { %v1015_v41 = vpop.f32.mrf.mxu0 }
  0xf6   : > { %v839_v23 = vpop.f32.mrf.mxu3 }
  0xf7   : > { %v860_v45 = vadd.f32 %v839_v23, %v697_v48 }
  0xf8   : > { %v691_v43 = vpop.f32.mrf.mxu2 }
  0xf9   : > { %v703_v22 = vadd.f32 %v691_v43, %v574_v38  ;;  %v3461_v44 = vadd.f32 %v1010_v16, %v860_v45  ;;  %v1132_v1 = vpop.f32.mrf.mxu1 }
  0xfa   : > { %v1157_v17 = vadd.f32 %v1132_v1, %v3442_v15 }
  0xfb   : > { %v1018_v37 = vpop.f32.mrf.mxu0 }
  0xfe   : > { %v842_v19 = vpop.f32.mrf.mxu3 }
  0xff   : > { %v861_v32 = vadd.f32 %v842_v19, %v3421_v42  ;;  %v2890_v42 = vld [vmem:[%s3899_s3 + $0x8] sm:$0xff] }
 0x100   : > { %1725 = vmatpush.bf16.msrb.mxu0 %v2890_v42  ;;  %2926 = vmatpush.bf16.msra.mxu1 %v2890_v42  ;;  %v1295_v47 = vpop.f32.mrf.mxu2 }
 0x101   : > { %v3467_v49 = vadd.f32 %v1013_v12, %v861_v32  ;;  %v1134_v10 = vpop.f32.mrf.mxu1  ;;  %v1320_v61 = vadd.f32 %v1295_v47, %v1157_v17 }
 0x103   : > { %v1020_v50 = vpop.f32.mrf.mxu0 }
 0x104   : > { %1726 = vmatpush.bf16.msrb.mxu0 %v2889_v7  ;;  %2927 = vmatpush.bf16.msra.mxu1 %v2889_v7 }
 0x106   : > { %v844_v52 = vpop.f32.mrf.mxu3 }
 0x107   : > { %v862_v53 = vadd.f32 %v844_v52, %v699_v51 }
 0x108   : > { %v1297_v13 = vpop.f32.mrf.mxu2 }
 0x109   : > { %v3474_v60 = vadd.f32 %v1015_v41, %v862_v53  ;;  %v1137_v63 = vpop.f32.mrf.mxu1 }
 0x10a   : > { %v1159_v35 = vadd.f32 %v1137_v63, %v3458_v39 }
 0x10b   : > { %v1023_v55 = vpop.f32.mrf.mxu0 }
 0x10e   : > { %v847_v56 = vpop.f32.mrf.mxu3 }
 0x10f   : > { %v863_v58 = vadd.f32 %v847_v56, %v700_v11 }
 0x110   : > { %v1300_v16 = vpop.f32.mrf.mxu2 }
 0x111   : > { %v3479_v3 = vadd.f32 %v1018_v37, %v863_v58  ;;  %v1139_v26 = vpop.f32.mrf.mxu1  ;;  %v1322_v48 = vadd.f32 %v1300_v16, %v1159_v35 }
 0x112   : > { %v1160_v45 = vadd.f32 %v1139_v26, %v3461_v44  ;;  %v2903_v26 = vld [vmem:[%s3900_s4 + $0x30] sm:$0xff] }
 0x113   : > { %v1025_v62 = vpop.f32.mrf.mxu0 }
 0x116   : > { %v849_v2 = vpop.f32.mrf.mxu3 }
 0x117   : > { %v864_v5 = vadd.f32 %v849_v2, %v701_v25  ;;  %v1158_v25 = vadd.f32 %v1134_v10, %v3449_v28 }
 0x118   : > { %v1302_v12 = vpop.f32.mrf.mxu2 }
 0x119   : > { %v3481_v54 = vadd.f32 %v1020_v50, %v864_v5  ;;  %v1321_v57 = vadd.f32 %v1297_v13, %v1158_v25  ;;  %v1142_v38 = vpop.f32.mrf.mxu1 }
 0x11a   : > { %v1161_v53 = vadd.f32 %v1142_v38, %v3467_v49 }
 0x11b   : > { %v1595_v4 = vpop.f32.mrf.mxu0 }
 0x11e   : > { %v852_v0 = vpop.f32.mrf.mxu3 }
 0x11f   : > { %v865_v9 = vadd.f32 %v852_v0, %v702_v8 }
 0x120   : > { %v1305_v43 = vpop.f32.mrf.mxu2 }
 0x121   : > { %v3486_v11 = vadd.f32 %v1023_v55, %v865_v9  ;;  %v1144_v18 = vpop.f32.mrf.mxu1  ;;  %v1324_v58 = vadd.f32 %v1305_v43, %v1161_v53 }
 0x122   : > { %v1162_v5 = vadd.f32 %v1144_v18, %v3474_v60  ;;  %v2904_v60 = vld [vmem:[%s3900_s4 + $0x38] sm:$0xff] }
 0x123   : > { %v1597_v6 = vpop.f32.mrf.mxu0  ;;  %2262 = vmatpush.bf16.msra.mxu2 %v2904_v60 }
 0x126   : > { %v854_v14 = vpop.f32.mrf.mxu3 }
 0x127   : > { %v866_v59 = vadd.f32 %v854_v14, %v703_v22  ;;  %v1323_v22 = vadd.f32 %v1302_v12, %v1160_v45  ;;  %2263 = vmatpush.bf16.msra.mxu2 %v2903_v26 }
 0x128   : > { %v1307_v39 = vpop.f32.mrf.mxu2 }
 0x129   : > { %v3488_v40 = vadd.f32 %v1025_v62, %v866_v59  ;;  %v1147_v44 = vpop.f32.mrf.mxu1  ;;  %v1325_v7 = vadd.f32 %v1307_v39, %v1162_v5 }
 0x12b   : > { %v1600_v24 = vpop.f32.mrf.mxu0 }
 0x12e   : > { %v1466_v20 = vpop.f32.mrf.mxu3 }
 0x12f   : > { %v1491_v21 = vadd.f32 %v1466_v20, %v1320_v61 }
 0x130   : > { %v1310_v47 = vpop.f32.mrf.mxu2 }
 0x131   : > { %v1620_v27 = vadd.f32 %v1595_v4, %v1491_v21  ;;  %v1149_v59 = vpop.f32.mrf.mxu1 }
 0x132   : > { %v1164_v25 = vadd.f32 %v1149_v59, %v3481_v54 }
 0x133   : > { %v1630_v31 = vmax.f32 %v1620_v27, 0.0  ;;  %v1602_v34 = vpop.f32.mrf.mxu0 }
 0x135   : > { %v1640_v36 = vmin.f32 %v1630_v31, 6.0 }
 0x136   : > { %v1468_v29 = vpop.f32.mrf.mxu3 }
 0x137   : > { %v1492_v30 = vadd.f32 %v1468_v29, %v1321_v57 }
 0x138   : > { %v1312_v17 = vpop.f32.mrf.mxu2 }
 0x139   : > { %v1621_v33 = vadd.f32 %v1597_v6, %v1492_v30  ;;  %v1163_v6 = vadd.f32 %v1147_v44, %v3479_v3  ;;  %v1327_v57 = vadd.f32 %v1312_v17, %v1164_v25  ;;  %v1152_v12 = vpop.f32.mrf.mxu1 }
 0x13a   : > { %v1165_v35 = vadd.f32 %v1152_v12, %v3486_v11 }
 0x13b   : > { %v1631_v8 = vmax.f32 %v1621_v33, 0.0  ;;  %v1605_v19 = vpop.f32.mrf.mxu0  ;;  %v1326_v61 = vadd.f32 %v1310_v47, %v1163_v6 }
 0x13d   : > { %v1641_v15 = vmin.f32 %v1631_v8, 6.0 }
 0x13e   : > { %v1471_v41 = vpop.f32.mrf.mxu3 }
 0x13f   : > { %v1650_v23 = vpack.c.bf16 %v1641_v15, %v1640_v36  ;;  %v1493_v28 = vadd.f32 %v1471_v41, %v1322_v48 }
 0x140   : > { %v1315_v31 = vpop.f32.mrf.mxu2 }
 0x141   : > { %1727 = vmatmul.bf16.vlgmr.msrb.gmra.mxu0 %v1650_v23  ;;  %v1622_v46 = vadd.f32 %v1600_v24, %v1493_v28  ;;  %v1328_v41 = vadd.f32 %v1315_v31, %v1165_v35  ;;  %v1154_v23 = vpop.f32.mrf.mxu1 }
 0x142   : > { %v1166_v45 = vadd.f32 %v1154_v23, %v3488_v40 }
 0x143   : > { %v1632_v50 = vmax.f32 %v1622_v46, 0.0  ;;  %v1607_v1 = vpop.f32.mrf.mxu0 }
 0x145   : > { %v1642_v42 = vmin.f32 %v1632_v50, 6.0 }
 0x146   : > { %v1473_v37 = vpop.f32.mrf.mxu3 }
 0x147   : > { %v1494_v32 = vadd.f32 %v1473_v37, %v1323_v22 }
 0x148   : > { %v1317_v28 = vpop.f32.mrf.mxu2 }
 0x149   : > { %v1623_v51 = vadd.f32 %v1602_v34, %v1494_v32  ;;  %v1329_v22 = vadd.f32 %v1317_v28, %v1166_v45 }
 0x14b   : > { %v1633_v52 = vmax.f32 %v1623_v51, 0.0  ;;  %v1610_v14 = vpop.f32.mrf.mxu0 }
 0x14d   : > { %v1643_v55 = vmin.f32 %v1633_v52, 6.0 }
 0x14e   : > { %v1476_v56 = vpop.f32.mrf.mxu3 }
 0x14f   : > { %v1651_v62 = vpack.c.bf16 %v1643_v55, %v1642_v42  ;;  %v1495_v2 = vadd.f32 %v1476_v56, %v1324_v58  ;;  %v2902_v56 = vld [vmem:[%s3900_s4 + $0x28] sm:$0xff] }
 0x150   : > { %2264 = vmatpush.bf16.msra.mxu2 %v2902_v56 }
 0x151   : > { %1732 = vmatmul.bf16.vlgmr.msra.gmra.mxu1 %v1651_v62  ;;  %v1624_v0 = vadd.f32 %v1605_v19, %v1495_v2 }
 0x153   : > { %v1634_v10 = vmax.f32 %v1624_v0, 0.0  ;;  %v1612_v3 = vpop.f32.mrf.mxu0 }
 0x155   : > { %v1644_v63 = vmin.f32 %v1634_v10, 6.0 }
 0x156   : > { %v1478_v4 = vpop.f32.mrf.mxu3 }
 0x157   : > { %v1496_v9 = vadd.f32 %v1478_v4, %v1325_v7  ;;  %v2901_v7 = vld [vmem:[%s3900_s4 + $0x20] sm:$0xff] }
 0x158   : > { %2265 = vmatpush.bf16.msra.mxu2 %v2901_v7 }
 0x159   : > { %v1625_v13 = vadd.f32 %v1607_v1, %v1496_v9 }
 0x15b   : > { %v1635_v49 = vmax.f32 %v1625_v13, 0.0  ;;  %v1615_v15 = vpop.f32.mrf.mxu0 }
 0x15d   : > { %v1645_v16 = vmin.f32 %v1635_v49, 6.0 }
 0x15e   : > { %v1481_v20 = vpop.f32.mrf.mxu3 }
 0x15f   : > { %v1652_v21 = vpack.c.bf16 %v1645_v16, %v1644_v63  ;;  %v1497_v24 = vadd.f32 %v1481_v20, %v1326_v61 }
 0x161   : > { %1737 = vmatmul.bf16.gmra.mxu1 %v1652_v21  ;;  %v1626_v27 = vadd.f32 %v1610_v14, %v1497_v24  ;;  %v2900_v21 = vld [vmem:[%s3900_s4 + $0x18] sm:$0xff] }
 0x162   : > { %2266 = vmatpush.bf16.msra.mxu2 %v2900_v21 }
 0x163   : > { %v1636_v33 = vmax.f32 %v1626_v27, 0.0  ;;  %v1617_v32 = vpop.f32.mrf.mxu0 }
 0x165   : > { %v1646_v36 = vmin.f32 %v1636_v33, 6.0 }
 0x166   : > { %v1483_v29 = vpop.f32.mrf.mxu3 }
 0x167   : > { %v1498_v30 = vadd.f32 %v1483_v29, %v1327_v57 }
 0x169   : > { %v1627_v8 = vadd.f32 %v1612_v3, %v1498_v30 }
 0x16b   : > { %v1637_v34 = vmax.f32 %v1627_v8, 0.0 }
 0x16d   : > { %v1647_v54 = vmin.f32 %v1637_v34, 6.0 }
 0x16e   : > { %v1486_v38 = vpop.f32.mrf.mxu3 }
 0x16f   : > { %v1653_v48 = vpack.c.bf16 %v1647_v54, %v1646_v36  ;;  %v1499_v43 = vadd.f32 %v1486_v38, %v1328_v41  ;;  %v2899_v41 = vld [vmem:[%s3900_s4 + $0x10] sm:$0xff] }
 0x170   : > { %2267 = vmatpush.bf16.msra.mxu2 %v2899_v41 }
 0x171   : > { %1742 = vmatmul.bf16.gmra.mxu1 %v1653_v48  ;;  %v1628_v46 = vadd.f32 %v1615_v15, %v1499_v43 }
 0x173   : > { %v1638_v18 = vmax.f32 %v1628_v46, 0.0 }
 0x175   : > { %v1648_v51 = vmin.f32 %v1638_v18, 6.0  ;;  %v2898_v18 = vld [vmem:[%s3900_s4 + $0x8] sm:$0xff] }
 0x176   : > { %v1488_v37 = vpop.f32.mrf.mxu3  ;;  %2268 = vmatpush.bf16.msra.mxu2 %v2898_v18 }
 0x177   : > { %v1500_v19 = vadd.f32 %v1488_v37, %v1329_v22 }
 0x179   : > { %v1629_v50 = vadd.f32 %v1617_v32, %v1500_v19 }
 0x17b   : > { %v1639_v11 = vmax.f32 %v1629_v50, 0.0 }
 0x17d   : > { %v1649_v39 = vmin.f32 %v1639_v11, 6.0 }
 0x17f   : > { %v1654_v52 = vpack.c.bf16 %v1649_v39, %v1648_v51 }
 0x181   : > { %1747 = vmatmul.bf16.gmra.mxu1 %v1654_v52 }
 0x1be   : > { %v3506_v53 = vpop.f32.mrf.mxu0 }
 0x1bf   : > { %v3509_v42 = vmul.f32 0.70710677, %v3506_v53 }
 0x1c1   : > { %v1773_v40 = vmul.f32 %v3509_v42, %v3509_v42 }
 0x1c3   : > { %v3513_v55 = vmin.f32 %v1773_v40, 16.0 }
 0x1c5   : > { %v1775_v58 = vmul.f32 2.1237322e-06, %v3513_v55  ;;  %v1786_v62 = vmul.f32 3.8918573e-05, %v3513_v55 }
 0x1c6   : > { %v3520_v1 = vpop.f32.mrf.mxu0 }
 0x1c7   : > { %v1776_v2 = vadd.f32 0.00028619796, %v1775_v58  ;;  %v1787_v44 = vadd.f32 0.001143296, %v1786_v62  ;;  %v3523_v5 = vmul.f32 0.70710677, %v3520_v1 }
 0x1c9   : > { %v1788_v47 = vmul.f32 %v1787_v44, %v3513_v55  ;;  %v1777_v0 = vmul.f32 %v1776_v2, %v3513_v55  ;;  %v1813_v4 = vmul.f32 %v3523_v5, %v3523_v5 }
 0x1cb   : > { %v1789_v9 = vadd.f32 0.014752088, %v1788_v47  ;;  %v3532_v10 = vmin.f32 %v1813_v4, 16.0  ;;  %v1778_v14 = vadd.f32 0.0036580483, %v1777_v0 }
 0x1cd   : > { %v1790_v13 = vmul.f32 %v1789_v9, %v3513_v55  ;;  %v1815_v49 = vmul.f32 2.1237322e-06, %v3532_v10  ;;  %v1826_v59 = vmul.f32 3.8918573e-05, %v3532_v10  ;;  %v1779_v24 = vmul.f32 %v1778_v14, %v3513_v55 }
 0x1ce   : > { %v3537_v6 = vpop.f32.mrf.mxu1 }
 0x1cf   : > { %v1791_v63 = vadd.f32 0.112945676, %v1790_v13  ;;  %v1816_v16 = vadd.f32 0.00028619796, %v1815_v49  ;;  %v1827_v17 = vadd.f32 0.001143296, %v1826_v59 }
 0x1d0   : > { %v3540_v20 = vmul.f32 0.70710677, %v3537_v6  ;;  %v1780_v30 = vadd.f32 0.05243302, %v1779_v24 }
 0x1d1   : > { %v1792_v61 = vmul.f32 %v1791_v63, %v3513_v55  ;;  %v1817_v60 = vmul.f32 %v1816_v16, %v3532_v10  ;;  %v1828_v25 = vmul.f32 %v1827_v17, %v3532_v10 }
 0x1d2   : > { %v1853_v26 = vmul.f32 %v3540_v20, %v3540_v20  ;;  %v1781_v48 = vmul.f32 %v1780_v30, %v3513_v55 }
 0x1d3   : > { %v1793_v3 = vadd.f32 0.4994258, %v1792_v61  ;;  %v1818_v57 = vadd.f32 0.0036580483, %v1817_v60  ;;  %v1829_v27 = vadd.f32 0.014752088, %v1828_v25 }
 0x1d4   : > { %v3551_v12 = vmin.f32 %v1853_v26, 16.0  ;;  %v1782_v11 = vadd.f32 0.18741608, %v1781_v48 }
 0x1d5   : > { %v1794_v29 = vmul.f32 %v1793_v3, %v3513_v55  ;;  %v1830_v31 = vmul.f32 %v1829_v27, %v3532_v10  ;;  %v1819_v34 = vmul.f32 %v1818_v57, %v3532_v10  ;;  %v2897_v3 = vld [vmem:[%s3900_s4] sm:$0xff] }
 0x1d6   : > { %v3555_v33 = vpop.f32.mrf.mxu1  ;;  %v1866_v35 = vmul.f32 3.8918573e-05, %v3551_v12  ;;  %v1855_v15 = vmul.f32 2.1237322e-06, %v3551_v12  ;;  %v1783_v7 = vmul.f32 %v1782_v11, %v3513_v55  ;;  %2269 = vmatpush.bf16.msra.mxu2 %v2897_v3 }
 0x1d7   : > { %v1795_v8 = vadd.f32 1.0, %v1794_v29  ;;  %v3560_v36 = vmul.f32 0.70710677, %v3555_v33  ;;  %v1831_v54 = vadd.f32 0.112945676, %v1830_v31 }
 0x1d8   : > { %v1820_v23 = vadd.f32 0.05243302, %v1819_v34  ;;  %v1867_v43 = vadd.f32 0.001143296, %v1866_v35  ;;  %v1856_v22 = vadd.f32 0.00028619796, %v1855_v15 }
 0x1d9   : > { %2939 = vrcp.f32 %v1795_v8  ;;  %v1832_v38 = vmul.f32 %v1831_v54, %v3532_v10  ;;  %v1893_v28 = vmul.f32 %v3560_v36, %v3560_v36  ;;  %v1807_v0 = vand.u32 2147483648, %v1795_v8 }
 0x1da   : > { %v1868_v46 = vmul.f32 %v1867_v43, %v3551_v12  ;;  %v1821_v51 = vmul.f32 %v1820_v23, %v3532_v10  ;;  %v1857_v58 = vmul.f32 %v1856_v22, %v3551_v12  ;;  %vm1801_vm7 = vweird.f32 %v1795_v8 }
 0x1db   : > { %v1833_v45 = vadd.f32 0.4994258, %v1832_v38  ;;  %v3571_v37 = vmin.f32 %v1893_v28, 16.0  ;;  %v1805_v49 = vand.u32 2147483647, %v1795_v8  ;;  %v1808_v60 = vor.u32 1.1754944e-38, %v1807_v0 }
 0x1dc   : > { %v1869_v39 = vadd.f32 0.014752088, %v1868_v46  ;;  %v1822_v4 = vadd.f32 0.18741608, %v1821_v51  ;;  %v1858_v59 = vadd.f32 0.0036580483, %v1857_v58 }
 0x1dd   : > { %v1834_v19 = vmul.f32 %v1833_v45, %v3532_v10  ;;  %v1906_v52 = vmul.f32 3.8918573e-05, %v3571_v37  ;;  %v1895_v47 = vmul.f32 2.1237322e-06, %v3571_v37  ;;  %v1784_v55 = vadd.f32 1.1283791, %v1783_v7 }
 0x1de   : > { %v3574_v32 = vpop.f32.mrf.mxu1  ;;  %v1870_v62 = vmul.f32 %v1869_v39, %v3551_v12  ;;  %v1823_v25 = vmul.f32 %v1822_v4, %v3532_v10  ;;  %vm1806_vm9 = vcmp.eq.f32.partialorder %v1805_v49, 8.507059e+37  ;;  %v1859_v10 = vmul.f32 %v1858_v59, %v3551_v12 }
 0x1df   : > { %v2940_v50 = vpop.eup %2939  ;;  %v3581_v56 = vadd.f32 1.0, %v1834_v19  ;;  %v1907_v2 = vadd.f32 0.001143296, %v1906_v52  ;;  %v1896_v17 = vadd.f32 0.00028619796, %v1895_v47  ;;  %v1785_v38 = vmul.f32 %v1784_v55, %v3509_v42 }
 0x1e0   : > { %v1797_v40 = vmul.f32 %v2940_v50, %v1795_v8  ;;  %v1871_v9 = vadd.f32 0.112945676, %v1870_v62  ;;  %vm1802_vm6 = vweird.f32 %v2940_v50  ;;  %v3591_v21 = vmul.f32 0.70710677, %v3574_v32 }
 0x1e1   : > { %2941 = vrcp.f32 %v3581_v56  ;;  %v1908_v14 = vmul.f32 %v1907_v2, %v3571_v37  ;;  %vm1803_vm8 = vmor %vm1801_vm7, %vm1802_vm6  ;;  %v1897_v54 = vmul.f32 %v1896_v17, %v3571_v37  ;;  %v1824_v41 = vadd.f32 1.1283791, %v1823_v25 }
 0x1e2   : > { %v1798_v44 = vsub.f32 1.0, %v1797_v40  ;;  %v1872_v63 = vmul.f32 %v1871_v9, %v3551_v12  ;;  %v1933_v30 = vmul.f32 %v3591_v21, %v3591_v21  ;;  %v1845_v43 = vand.u32 2147483647, %v3581_v56 }
 0x1e3   : > { %v1909_v61 = vadd.f32 0.014752088, %v1908_v14  ;;  %v1847_v28 = vand.u32 2147483648, %v3581_v56  ;;  %v1898_v11 = vadd.f32 0.0036580483, %v1897_v54  ;;  %v1825_v51 = vmul.f32 %v1824_v41, %v3523_v5 }
 0x1e4   : > { %v1799_v13 = vmul.f32 %v2940_v50, %v1798_v44  ;;  %v1873_v26 = vadd.f32 0.4994258, %v1872_v63  ;;  %v3610_v23 = vmin.f32 %v1933_v30, 16.0  ;;  %vm1841_vm11 = vweird.f32 %v3581_v56 }
 0x1e5   : > { %v1910_v29 = vmul.f32 %v1909_v61, %v3571_v37  ;;  %v1848_v40 = vor.u32 1.1754944e-38, %v1847_v28  ;;  %vm1846_vm13 = vcmp.eq.f32.partialorder %v1845_v43, 8.507059e+37  ;;  %v1899_v5 = vmul.f32 %v1898_v11, %v3571_v37 }
 0x1e6   : > { %v1800_v16 = vadd.f32 %v2940_v50, %v1799_v13  ;;  %v3593_v24 = vpop.f32.mrf.mxu1  ;;  %v1874_v35 = vmul.f32 %v1873_v26, %v3551_v12  ;;  %v1946_v18 = vmul.f32 3.8918573e-05, %v3610_v23  ;;  %v1935_v58 = vmul.f32 2.1237322e-06, %v3610_v23 }
 0x1e7   : > { %v2942_v57 = vpop.eup %2941  ;;  %v3603_v31 = vmul.f32 0.70710677, %v3593_v24  ;;  %v1911_v15 = vadd.f32 0.112945676, %v1910_v29  ;;  %v1753_v61 = vmul.f32 0.5, %v3506_v53 }
 0x1e8   : > { %v1804_v27 = vsel %vm1803_vm8, %v2940_v50, %v1800_v16  ;;  %v1837_v8 = vmul.f32 %v2942_v57, %v3581_v56  ;;  %vm1842_vm10 = vweird.f32 %v2942_v57  ;;  %v1860_v50 = vadd.f32 0.05243302, %v1859_v10 }
 0x1e9   : > { %v1809_v34 = vsel %vm1806_vm9, %v1808_v60, %v1804_v27  ;;  %v1912_v45 = vmul.f32 %v1911_v15, %v3571_v37  ;;  %v1973_v22 = vmul.f32 %v3603_v31, %v3603_v31  ;;  %v3618_v42 = vadd.f32 1.0, %v1874_v35  ;;  %vm1843_vm12 = vmor %vm1841_vm11, %vm1842_vm10 }
 0x1ea   : > { %v1838_v48 = vsub.f32 1.0, %v1837_v8  ;;  %v1810_v46 = vmul.f32 %v1809_v34, %v1785_v38  ;;  %v1947_v62 = vadd.f32 0.001143296, %v1946_v18  ;;  %v1861_v13 = vmul.f32 %v1860_v50, %v3551_v12 }
 0x1eb   : > { %v1913_v52 = vadd.f32 0.4994258, %v1912_v45  ;;  %v3623_v2 = vmin.f32 %v1973_v22, 16.0  ;;  %2943 = vrcp.f32 %v3618_v42  ;;  %v1936_v14 = vadd.f32 0.00028619796, %v1935_v58 }
 0x1ec   : > { %v1839_v19 = vmul.f32 %v2942_v57, %v1838_v48  ;;  %v2756_v44 = vclamps-f32 %v1810_v46, 1.0  ;;  %v1948_v56 = vmul.f32 %v1947_v62, %v3610_v23  ;;  %v1900_v55 = vadd.f32 0.05243302, %v1899_v5 }
 0x1ed   : > { %v1914_v7 = vmul.f32 %v1913_v52, %v3571_v37  ;;  %v1986_v59 = vmul.f32 3.8918573e-05, %v3623_v2  ;;  %v1754_v60 = vmul.f32 0.5, %v3520_v1  ;;  %v1975_v3 = vmul.f32 2.1237322e-06, %v3623_v2 }
 0x1ee   : > { %v1840_v39 = vadd.f32 %v2942_v57, %v1839_v19  ;;  %v3626_v0 = vpop.f32.mrf.mxu1  ;;  %v1949_v49 = vadd.f32 0.014752088, %v1948_v56  ;;  %v2173_v63 = vadd.f32 1.0, %v2756_v44  ;;  %v1862_v27 = vadd.f32 0.18741608, %v1861_v13 }
 0x1ef   : > { %v3633_v17 = vadd.f32 1.0, %v1914_v7  ;;  %v1937_v29 = vmul.f32 %v1936_v14, %v3610_v23  ;;  %v1987_v30 = vadd.f32 0.001143296, %v1986_v59  ;;  %v1901_v53 = vmul.f32 %v1900_v55, %v3571_v37 }
 0x1f0   : > { %v1844_v47 = vsel %vm1843_vm12, %v2942_v57, %v1840_v39  ;;  %v1950_v26 = vmul.f32 %v1949_v49, %v3610_v23  ;;  %v2183_v8 = vmul.f32 %v2173_v63, %v1753_v61  ;;  %v3646_v35 = vmul.f32 0.70710677, %v3626_v0 }
 0x1f1   : > { %v1849_v4 = vsel %vm1846_vm13, %v1848_v40, %v1844_v47  ;;  %v3639_v57 = vpop.eup %2943  ;;  %2945 = vrcp.f32 %v3633_v17  ;;  %v1988_v1 = vmul.f32 %v1987_v30, %v3623_v2  ;;  %v1976_v41 = vadd.f32 0.00028619796, %v1975_v3 }
 0x1f2   : > { %v1850_v9 = vmul.f32 %v1849_v4, %v1825_v51  ;;  %v1951_v34 = vadd.f32 0.112945676, %v1950_v26  ;;  %v1877_v15 = vmul.f32 %v3639_v57, %v3618_v42  ;;  %v1938_v43 = vadd.f32 0.0036580483, %v1937_v29 }
 0x1f3   : > { %v1989_v28 = vadd.f32 0.014752088, %v1988_v1  ;;  %v2013_v45 = vmul.f32 %v3646_v35, %v3646_v35  ;;  %v1863_v22 = vmul.f32 %v1862_v27, %v3551_v12  ;;  %v1902_v46 = vadd.f32 0.18741608, %v1901_v53 }
 0x1f4   : > { %v2757_v16 = vclamps-f32 %v1850_v9, 1.0  ;;  %v1952_v38 = vmul.f32 %v1951_v34, %v3610_v23  ;;  %v1878_v11 = vsub.f32 1.0, %v1877_v15  ;;  %v1977_v51 = vmul.f32 %v1976_v41, %v3623_v2 }
 0x1f5   : > { %v1990_v18 = vmul.f32 %v1989_v28, %v3623_v2  ;;  %v3660_v39 = vmin.f32 %v2013_v45, 16.0  ;;  %v1939_v52 = vmul.f32 %v1938_v43, %v3610_v23  ;;  %v1864_v12 = vadd.f32 1.1283791, %v1863_v22 }
 0x1f6   : > { %v2174_v25 = vadd.f32 1.0, %v2757_v16  ;;  %v3651_v48 = vpop.f32.mrf.mxu1  ;;  %v1953_v19 = vadd.f32 0.4994258, %v1952_v38  ;;  %v1903_v47 = vmul.f32 %v1902_v46, %v3571_v37  ;;  %v3675_v56 = vmul.f32 0.5, %v3537_v6 }
 0x1f7   : > { %v3657_v50 = vpop.eup %2945  ;;  %v1991_v58 = vadd.f32 0.112945676, %v1990_v18  ;;  %v3665_v62 = vmul.f32 0.70710677, %v3651_v48  ;;  %v2026_v44 = vmul.f32 3.8918573e-05, %v3660_v39  ;;  %v1879_v9 = vmul.f32 %v3639_v57, %v1878_v11 }
 0x1f8   : > { %v2184_v10 = vmul.f32 %v2174_v25, %v1754_v60  ;;  %v1954_v40 = vmul.f32 %v1953_v19, %v3610_v23  ;;  %v1917_v7 = vmul.f32 %v3657_v50, %v3633_v17  ;;  %v1978_v13 = vadd.f32 0.0036580483, %v1977_v51 }
 0x1f9   : > { %v1992_v5 = vmul.f32 %v1991_v58, %v3623_v2  ;;  %v2027_v14 = vadd.f32 0.001143296, %v2026_v44  ;;  %v1885_v49 = vand.u32 2147483647, %v3618_v42  ;;  %v1940_v59 = vadd.f32 0.05243302, %v1939_v52 }
 0x1fa   : > { %v2193_v54 = vpack.c.bf16 %v2184_v10, %v2183_v8  ;;  %v3671_v4 = vadd.f32 1.0, %v1954_v40  ;;  %v2053_v37 = vmul.f32 %v3665_v62, %v3665_v62  ;;  %v1865_v63 = vmul.f32 %v1864_v12, %v3540_v20 }
 0x1fb   : > { %v1887_v16 = vand.u32 2147483648, %v3618_v42  ;;  %v1993_v61 = vadd.f32 0.4994258, %v1992_v5  ;;  %v2015_v6 = vmul.f32 2.1237322e-06, %v3660_v39  ;;  %vm1881_vm14 = vweird.f32 %v3618_v42 }
 0x1fc   : > { %2270 = vmatmul.bf16.vlgmr.msra.gmra.mxu2 %v2193_v54  ;;  %2947 = vrcp.f32 %v3671_v4  ;;  %v1904_v60 = vadd.f32 1.1283791, %v1903_v47  ;;  %v1918_v25 = vsub.f32 1.0, %v1917_v7  ;;  %v2028_v26 = vmul.f32 %v2027_v14, %v3660_v39 }
 0x1fd   : > { %v1880_v3 = vadd.f32 %v3639_v57, %v1879_v9  ;;  %vm1882_vm15 = vweird.f32 %v3639_v57  ;;  %v1979_v27 = vmul.f32 %v1978_v13, %v3623_v2  ;;  %v1994_v20 = vmul.f32 %v1993_v61, %v3623_v2 }
 0x1fe   : > { %v3685_v55 = vpop.f32.mrf.mxu1  ;;  %v1941_v29 = vmul.f32 %v1940_v59, %v3610_v23  ;;  %v2029_v30 = vadd.f32 0.014752088, %v2028_v26  ;;  %v3694_v8 = vmin.f32 %v2053_v37, 16.0  ;;  %vm3699_vm0 = vcmp.eq.f32.partialorder %v1885_v49, 8.507059e+37  ;;  %vm3709_vm1 = vmor %vm1881_vm14, %vm1882_vm15 }
 0x1ff   : > { %v3697_v10 = vmul.f32 0.70710677, %v3685_v55  ;;  %v1888_v53 = vor.u32 1.1754944e-38, %v1887_v16  ;;  %v3703_v1 = vadd.f32 1.0, %v1994_v20  ;;  %v2016_v54 = vadd.f32 0.00028619796, %v2015_v6 }
 0x200   : > { %v1919_v41 = vmul.f32 %v3657_v50, %v1918_v25  ;;  %v2030_v43 = vmul.f32 %v2029_v30, %v3660_v39  ;;  %v2066_v28 = vmul.f32 3.8918573e-05, %v3694_v8  ;;  %v1884_v22 = vsel %vm3709_vm1, %v3639_v57, %v1880_v3 }
 0x201   : > { %v2093_v45 = vmul.f32 %v3697_v10, %v3697_v10  ;;  %v1980_v46 = vadd.f32 0.05243302, %v1979_v27  ;;  %2949 = vrcp.f32 %v3703_v1  ;;  %v2055_v42 = vmul.f32 2.1237322e-06, %v3694_v8 }
 0x202   : > { %v3705_v15 = vpop.eup %2947  ;;  %v1905_v19 = vmul.f32 %v1904_v60, %v3560_v36  ;;  %v1925_v18 = vand.u32 2147483647, %v3633_v17  ;;  %v1927_v11 = vand.u32 2147483648, %v3633_v17  ;;  %v1942_v51 = vadd.f32 0.18741608, %v1941_v29 }
 0x203   : > { %vm1922_vm2 = vweird.f32 %v3657_v50  ;;  %v1957_v52 = vmul.f32 %v3705_v15, %v3671_v4  ;;  %v2017_v40 = vmul.f32 %v2016_v54, %v3660_v39  ;;  %v2031_v57 = vadd.f32 0.112945676, %v2030_v43 }
 0x204   : > { %v1889_v58 = vsel %vm3699_vm0, %v1888_v53, %v1884_v22  ;;  %v1920_v12 = vadd.f32 %v3657_v50, %v1919_v41  ;;  %v2067_v44 = vadd.f32 0.001143296, %v2066_v28  ;;  %v3733_v36 = vmin.f32 %v2093_v45, 16.0 }
 0x205   : > { %vm1921_vm3 = vweird.f32 %v3633_v17  ;;  %v1981_v47 = vmul.f32 %v1980_v46, %v3623_v2  ;;  %v2032_v7 = vmul.f32 %v2031_v57, %v3660_v39  ;;  %v2056_v5 = vadd.f32 0.00028619796, %v2055_v42 }
 0x206   : > { %vm3738_vm4 = vcmp.eq.f32.partialorder %v1925_v18, 8.507059e+37  ;;  %v1928_v13 = vor.u32 1.1754944e-38, %v1927_v11  ;;  %v1943_v14 = vmul.f32 %v1942_v51, %v3610_v23  ;;  %v2068_v49 = vmul.f32 %v2067_v44, %v3694_v8  ;;  %vm3750_vm5 = vmor %vm1921_vm3, %vm1922_vm2  ;;  %v3771_v41 = vpop.f32.mrf.mxu1 }
 0x207   : > { %v3744_v59 = vpop.eup %2949  ;;  %v3746_v37 = vmul.f32 %v1889_v58, %v1865_v63  ;;  %v1958_v16 = vsub.f32 1.0, %v1957_v52  ;;  %v2018_v61 = vadd.f32 0.0036580483, %v2017_v40  ;;  %v2033_v6 = vadd.f32 0.4994258, %v2032_v7 }
 0x208   : > { %v1924_v60 = vsel %vm3750_vm5, %v3657_v50, %v1920_v12  ;;  %v1997_v23 = vmul.f32 %v3744_v59, %v3703_v1  ;;  %v2069_v25 = vadd.f32 0.014752088, %v2068_v49  ;;  %v2106_v63 = vmul.f32 3.8918573e-05, %v3733_v36 }
 0x209   : > { %v1965_v26 = vand.u32 2147483647, %v3671_v4  ;;  %v1982_v3 = vadd.f32 0.18741608, %v1981_v47  ;;  %v2034_v27 = vmul.f32 %v2033_v6, %v3660_v39  ;;  %v2057_v20 = vmul.f32 %v2056_v5, %v3694_v8 }
 0x20a   : > { %v1944_v29 = vadd.f32 1.1283791, %v1943_v14  ;;  %vm1961_vm6 = vweird.f32 %v3671_v4  ;;  %v1998_v30 = vsub.f32 1.0, %v1997_v23  ;;  %v2070_v34 = vmul.f32 %v2069_v25, %v3694_v8 }
 0x20b   : > { %v1929_v50 = vsel %vm3738_vm4, %v1928_v13, %v1924_v60  ;;  %v1959_v53 = vmul.f32 %v3705_v15, %v1958_v16  ;;  %v2019_v54 = vmul.f32 %v2018_v61, %v3660_v39  ;;  %v3769_v38 = vadd.f32 1.0, %v2034_v27 }
 0x20c   : > { %v1967_v43 = vand.u32 2147483648, %v3671_v4  ;;  %v1999_v28 = vmul.f32 %v3744_v59, %v1998_v30  ;;  %v2071_v45 = vadd.f32 0.112945676, %v2070_v34  ;;  %v2107_v22 = vadd.f32 0.001143296, %v2106_v63 }
 0x20d   : > { %vm3775_vm7 = vcmp.eq.f32.partialorder %v1965_v26, 8.507059e+37  ;;  %v1983_v42 = vmul.f32 %v1982_v3, %v3623_v2  ;;  %2951 = vrcp.f32 %v3769_v38  ;;  %v2058_v18 = vadd.f32 0.0036580483, %v2057_v20 }
 0x20e   : > { %v1930_v11 = vmul.f32 %v1929_v50, %v1905_v19  ;;  %vm1962_vm8 = vweird.f32 %v3705_v15  ;;  %v2072_v51 = vmul.f32 %v2071_v45, %v3694_v8  ;;  %v3784_v52 = vmul.f32 0.70710677, %v3771_v41 }
 0x20f   : > { %v1960_v40 = vadd.f32 %v3705_v15, %v1959_v53  ;;  %v2007_v57 = vand.u32 2147483648, %v3703_v1  ;;  %v2020_v58 = vadd.f32 0.05243302, %v2019_v54  ;;  %v2108_v12 = vmul.f32 %v2107_v22, %v3733_v36  ;;  %vm3797_vm10 = vmor %vm1961_vm6, %vm1962_vm8 }
 0x210   : > { %v2000_v2 = vadd.f32 %v3744_v59, %v1999_v28  ;;  %vm2002_vm9 = vweird.f32 %v3744_v59  ;;  %v2073_v44 = vadd.f32 0.4994258, %v2072_v51  ;;  %v2095_v19 = vmul.f32 2.1237322e-06, %v3733_v36 }
 0x211   : > { %v1968_v47 = vor.u32 1.1754944e-38, %v1967_v43  ;;  %v1984_v7 = vadd.f32 1.1283791, %v1983_v42  ;;  %v2059_v5 = vmul.f32 %v2058_v18, %v3694_v8  ;;  %v2109_v9 = vadd.f32 0.014752088, %v2108_v12 }
 0x212   : > { %vm2001_vm11 = vweird.f32 %v3703_v1  ;;  %v2005_v14 = vand.u32 2147483647, %v3703_v1  ;;  %v2074_v49 = vmul.f32 %v2073_v44, %v3694_v8  ;;  %v2133_v17 = vmul.f32 %v3784_v52, %v3784_v52 }
 0x213   : > { %v3806_v16 = vpop.eup %2951  ;;  %v1964_v61 = vsel %vm3797_vm10, %v3705_v15, %v1960_v40  ;;  %vm3811_vm12 = vmor %vm2001_vm11, %vm2002_vm9  ;;  %v2110_v6 = vmul.f32 %v2109_v9, %v3733_v36  ;;  %v2758_v60 = vclamps-f32 %v3746_v37, 1.0  ;;  %v2759_v1 = vclamps-f32 %v1930_v11, 1.0 }
 0x214   : > { %v2004_v23 = vsel %vm3811_vm12, %v3744_v59, %v2000_v2  ;;  %v2008_v25 = vor.u32 1.1754944e-38, %v2007_v57  ;;  %v2021_v63 = vmul.f32 %v2020_v58, %v3660_v39  ;;  %v2096_v26 = vadd.f32 0.00028619796, %v2095_v19 }
 0x215   : > { %v2060_v3 = vadd.f32 0.05243302, %v2059_v5  ;;  %v3821_v27 = vadd.f32 1.0, %v2074_v49  ;;  %v2111_v15 = vadd.f32 0.112945676, %v2110_v6  ;;  %v3823_v20 = vmin.f32 %v2133_v17, 16.0 }
 0x216   : > { %v1756_v30 = vmul.f32 0.5, %v3555_v33  ;;  %v1969_v37 = vsel %vm3775_vm7, %v1968_v47, %v1964_v61  ;;  %vm2006_vm13 = vcmp.eq.f32.partialorder %v2005_v14, 8.507059e+37  ;;  %v2037_v34 = vmul.f32 %v3806_v16, %v3769_v38 }
 0x217   : > { %v2009_v59 = vsel %vm2006_vm13, %v2008_v25, %v2004_v23  ;;  %2953 = vrcp.f32 %v3821_v27  ;;  %v2175_v50 = vadd.f32 1.0, %v2758_v60  ;;  %v2176_v53 = vadd.f32 1.0, %v2759_v1 }
 0x218   : > { %v1945_v54 = vmul.f32 %v1944_v29, %v3591_v21  ;;  %v1985_v43 = vmul.f32 %v1984_v7, %v3603_v31  ;;  %v2022_v28 = vadd.f32 0.18741608, %v2021_v63  ;;  %v2112_v45 = vmul.f32 %v2111_v15, %v3733_v36 }
 0x219   : > { %v2061_v33 = vmul.f32 %v2060_v3, %v3694_v8  ;;  %v2097_v22 = vmul.f32 %v2096_v26, %v3733_v36  ;;  %v2135_v46 = vmul.f32 2.1237322e-06, %v3823_v20  ;;  %v2146_v42 = vmul.f32 3.8918573e-05, %v3823_v20 }
 0x21a   : > { %v1970_v18 = vmul.f32 %v1969_v37, %v1945_v54  ;;  %v2010_v11 = vmul.f32 %v2009_v59, %v1985_v43  ;;  %v2038_v51 = vsub.f32 1.0, %v2037_v34  ;;  %v2113_v40 = vadd.f32 0.4994258, %v2112_v45 }
 0x21b   : > { %v2136_v57 = vadd.f32 0.00028619796, %v2135_v46  ;;  %v2147_v58 = vadd.f32 0.001143296, %v2146_v42  ;;  %v2185_v21 = vmul.f32 %v2175_v50, %v3675_v56  ;;  %v2186_v31 = vmul.f32 %v2176_v53, %v1756_v30 }
 0x21c   : > { %v1757_v29 = vmul.f32 0.5, %v3574_v32  ;;  %v1758_v12 = vmul.f32 0.5, %v3593_v24  ;;  %v2114_v2 = vmul.f32 %v2113_v40, %v3733_v36  ;;  %v2062_v19 = vadd.f32 0.18741608, %v2061_v33 }
 0x21d   : > { %v2954_v44 = vpop.eup %2953  ;;  %v2137_v47 = vmul.f32 %v2136_v57, %v3823_v20  ;;  %v2148_v7 = vmul.f32 %v2147_v58, %v3823_v20  ;;  %v2194_v5 = vpack.c.bf16 %v2186_v31, %v2185_v21  ;;  %v2023_v9 = vmul.f32 %v2022_v28, %v3660_v39 }
 0x21e   : > { %v2039_v13 = vmul.f32 %v3806_v16, %v2038_v51  ;;  %v2077_v56 = vmul.f32 %v2954_v44, %v3821_v27  ;;  %v3847_v14 = vadd.f32 1.0, %v2114_v2  ;;  %v2760_v32 = vclamps-f32 %v1970_v18, 1.0 }
 0x21f   : > { %v2761_v49 = vclamps-f32 %v2010_v11, 1.0  ;;  %v2098_v24 = vadd.f32 0.0036580483, %v2097_v22  ;;  %v2149_v17 = vadd.f32 0.014752088, %v2148_v7  ;;  %2275 = vmatmul.bf16.gmra.mxu2 %v2194_v5  ;;  %vm2041_vm14 = vweird.f32 %v3769_v38 }
 0x220   : > { %v2047_v61 = vand.u32 2147483648, %v3769_v38  ;;  %v2078_v4 = vsub.f32 1.0, %v2077_v56  ;;  %2955 = vrcp.f32 %v3847_v14  ;;  %vm2042_vm15 = vweird.f32 %v3806_v16 }
 0x221   : > { %v2063_v39 = vmul.f32 %v2062_v19, %v3694_v8  ;;  %v2138_v6 = vadd.f32 0.0036580483, %v2137_v47  ;;  %v2150_v60 = vmul.f32 %v2149_v17, %v3823_v20  ;;  %v2040_v1 = vadd.f32 %v3806_v16, %v2039_v13  ;;  %vm3861_vm1 = vmor %vm2041_vm14, %vm2042_vm15 }
 0x222   : > { %v2079_v23 = vmul.f32 %v2954_v44, %v2078_v4  ;;  %vm2082_vm0 = vweird.f32 %v2954_v44  ;;  %v2087_v25 = vand.u32 2147483648, %v3821_v27  ;;  %v2178_v63 = vadd.f32 1.0, %v2761_v49 }
 0x223   : > { %v2085_v26 = vand.u32 2147483647, %v3821_v27  ;;  %v2099_v3 = vmul.f32 %v2098_v24, %v3733_v36  ;;  %v2151_v15 = vadd.f32 0.112945676, %v2150_v60  ;;  %v2024_v30 = vadd.f32 1.1283791, %v2023_v9 }
 0x224   : > { %v2045_v37 = vand.u32 2147483647, %v3769_v38  ;;  %v2080_v34 = vadd.f32 %v2954_v44, %v2079_v23  ;;  %vm2081_vm2 = vweird.f32 %v3821_v27  ;;  %v2177_v59 = vadd.f32 1.0, %v2760_v32 }
 0x225   : > { %v2064_v50 = vadd.f32 1.1283791, %v2063_v39  ;;  %vm2083_vm3 = vmor %vm2081_vm2, %vm2082_vm0  ;;  %v2139_v53 = vmul.f32 %v2138_v6, %v3823_v20  ;;  %v2152_v54 = vmul.f32 %v2151_v15, %v3823_v20  ;;  %v2044_v28 = vsel %vm3861_vm1, %v3806_v16, %v2040_v1 }
 0x226   : > { %v2956_v43 = vpop.eup %2955  ;;  %v2048_v45 = vor.u32 1.1754944e-38, %v2047_v61  ;;  %v2084_v33 = vsel %vm2083_vm3, %v2954_v44, %v2080_v34  ;;  %v2088_v22 = vor.u32 1.1754944e-38, %v2087_v25  ;;  %v2188_v46 = vmul.f32 %v2178_v63, %v1758_v12 }
 0x227   : > { %vm2086_vm4 = vcmp.eq.f32.partialorder %v2085_v26, 8.507059e+37  ;;  %v2100_v38 = vadd.f32 0.05243302, %v2099_v3  ;;  %v2117_v27 = vmul.f32 %v2956_v43, %v3847_v14  ;;  %vm2046_vm5 = vcmp.eq.f32.partialorder %v2045_v37, 8.507059e+37 }
 0x228   : > { %v2089_v42 = vsel %vm2086_vm4, %v2088_v22, %v2084_v33  ;;  %v2153_v18 = vadd.f32 0.4994258, %v2152_v54  ;;  %v2187_v11 = vmul.f32 %v2177_v59, %v1757_v29  ;;  %v2049_v51 = vsel %vm2046_vm5, %v2048_v45, %v2044_v28 }
 0x229   : > { %v2065_v40 = vmul.f32 %v2064_v50, %v3665_v62  ;;  %v2140_v57 = vadd.f32 0.05243302, %v2139_v53  ;;  %v2025_v58 = vmul.f32 %v2024_v30, %v3646_v35  ;;  %v2101_v31 = vmul.f32 %v2100_v38, %v3733_v36 }
 0x22a   : > { %v2154_v16 = vmul.f32 %v2153_v18, %v3823_v20  ;;  %v2118_v12 = vsub.f32 1.0, %v2117_v27  ;;  %v2195_v2 = vpack.c.bf16 %v2188_v46, %v2187_v11  ;;  %vm2122_vm6 = vweird.f32 %v2956_v43 }
 0x22b   : > { %v2090_v21 = vmul.f32 %v2089_v42, %v2065_v40  ;;  %v2050_v44 = vmul.f32 %v2049_v51, %v2025_v58  ;;  %v2141_v47 = vmul.f32 %v2140_v57, %v3823_v20  ;;  %v2102_v29 = vadd.f32 0.18741608, %v2101_v31 }
 0x22c   : > { %v2155_v19 = vadd.f32 1.0, %v2154_v16  ;;  %v2119_v5 = vmul.f32 %v2956_v43, %v2118_v12  ;;  %v2125_v24 = vand.u32 2147483647, %v3847_v14  ;;  %v2127_v17 = vand.u32 2147483648, %v3847_v14 }
 0x22d   : > { %v2763_v7 = vclamps-f32 %v2090_v21, 1.0  ;;  %v2762_v62 = vclamps-f32 %v2050_v44, 1.0  ;;  %v2142_v9 = vadd.f32 0.18741608, %v2141_v47  ;;  %v2103_v35 = vmul.f32 %v2102_v29, %v3733_v36 }
 0x22e   : > { %2957 = vrcp.f32 %v2155_v19  ;;  %v2120_v56 = vadd.f32 %v2956_v43, %v2119_v5  ;;  %v1760_v61 = vmul.f32 0.5, %v3651_v48  ;;  %vm2121_vm7 = vweird.f32 %v3847_v14 }
 0x22f   : > { %2280 = vmatmul.bf16.gmra.mxu2 %v2195_v2  ;;  %v2180_v13 = vadd.f32 1.0, %v2763_v7  ;;  %v2179_v49 = vadd.f32 1.0, %v2762_v62  ;;  %v2143_v4 = vmul.f32 %v2142_v9, %v3823_v20  ;;  %v1759_v6 = vmul.f32 0.5, %v3626_v0  ;;  %vm2123_vm8 = vmor %vm2121_vm7, %vm2122_vm6 }
 0x230   : > { %v2104_v36 = vadd.f32 1.1283791, %v2103_v35  ;;  %v2124_v1 = vsel %vm2123_vm8, %v2956_v43, %v2120_v56  ;;  %vm2126_vm9 = vcmp.eq.f32.partialorder %v2125_v24, 8.507059e+37  ;;  %v2128_v63 = vor.u32 1.1754944e-38, %v2127_v17 }
 0x231   : > { %v2190_v60 = vmul.f32 %v2180_v13, %v1760_v61  ;;  %v2189_v25 = vmul.f32 %v2179_v49, %v1759_v6  ;;  %v2167_v26 = vand.u32 2147483648, %v2155_v19  ;;  %v2144_v3 = vadd.f32 1.1283791, %v2143_v4 }
 0x232   : > { %v2165_v48 = vand.u32 2147483647, %v2155_v19  ;;  %v2129_v30 = vsel %vm2126_vm9, %v2128_v63, %v2124_v1  ;;  %v2105_v14 = vmul.f32 %v2104_v36, %v3697_v10  ;;  %vm2161_vm11 = vweird.f32 %v2155_v19 }
 0x233   : > { %v2196_v8 = vpack.c.bf16 %v2190_v60, %v2189_v25  ;;  %v2168_v0 = vor.u32 1.1754944e-38, %v2167_v26  ;;  %v2145_v34 = vmul.f32 %v2144_v3, %v3784_v52  ;;  %v1762_v10 = vmul.f32 0.5, %v3771_v41 }
 0x234   : > { %v2958_v32 = vpop.eup %2957  ;;  %v2130_v37 = vmul.f32 %v2129_v30, %v2105_v14  ;;  %vm2166_vm13 = vcmp.eq.f32.partialorder %v2165_v48, 8.507059e+37  ;;  %v1761_v33 = vmul.f32 0.5, %v3685_v55 }
 0x235   : > { %v2157_v39 = vmul.f32 %v2958_v32, %v2155_v19  ;;  %vm2162_vm10 = vweird.f32 %v2958_v32 }
 0x236   : > { %vm2163_vm12 = vmor %vm2161_vm11, %vm2162_vm10  ;;  %v2764_v54 = vclamps-f32 %v2130_v37, 1.0 }
 0x237   : > { %v2158_v23 = vsub.f32 1.0, %v2157_v39 }
 0x238   : > { %v2181_v45 = vadd.f32 1.0, %v2764_v54 }
 0x239   : > { %v2159_v15 = vmul.f32 %v2958_v32, %v2158_v23 }
 0x23a   : > { %v2191_v46 = vmul.f32 %v2181_v45, %v1761_v33 }
 0x23b   : > { %v2160_v20 = vadd.f32 %v2958_v32, %v2159_v15 }
 0x23d   : > { %v2164_v59 = vsel %vm2163_vm12, %v2958_v32, %v2160_v20 }
 0x23e   : > { %v2169_v50 = vsel %vm2166_vm13, %v2168_v0, %v2164_v59 }
 0x23f   : > { %v2170_v53 = vmul.f32 %v2169_v50, %v2145_v34  ;;  %2285 = vmatmul.bf16.gmra.mxu2 %v2196_v8 }
 0x241   : > { %v2765_v43 = vclamps-f32 %v2170_v53, 1.0 }
 0x243   : > { %v2182_v28 = vadd.f32 1.0, %v2765_v43 }
 0x245   : > { %v2192_v22 = vmul.f32 %v2182_v28, %v1762_v10 }
 0x247   : > { %v2197_v38 = vpack.c.bf16 %v2192_v22, %v2191_v46 }
 0x24f   : > { %2290 = vmatmul.bf16.gmra.mxu2 %v2197_v38 }
 0x27f   : > { %v2271_v52 = vpop.f32.mrf.mxu2 }
 0x280   : > { %2296 = vst [vmem:[%s224_s26] sm:$0xff] %v2271_v52 }
 0x287   : > { %v2273_v27 = vpop.f32.mrf.mxu2 }
 0x288   : > { %2297 = vst [vmem:[%s224_s26 + $0x8] sm:$0xff] %v2273_v27 }
 0x2a2   : > { %v2276_v42 = vpop.f32.mrf.mxu2 }
 0x2a3   : > { %2298 = vst [vmem:[%s224_s26 + $0x10] sm:$0xff] %v2276_v42 }
 0x2aa   : > { %v2278_v18 = vpop.f32.mrf.mxu2 }
 0x2ab   : > { %2299 = vst [vmem:[%s224_s26 + $0x18] sm:$0xff] %v2278_v18 }
 0x2b2   : > { %v2281_v41 = vpop.f32.mrf.mxu2 }
 0x2b3   : > { %2300 = vst [vmem:[%s224_s26 + $0x20] sm:$0xff] %v2281_v41 }
 0x2ba   : > { %v2283_v55 = vpop.f32.mrf.mxu2 }
 0x2bb   : > { %2301 = vst [vmem:[%s224_s26 + $0x28] sm:$0xff] %v2283_v55 }
 0x2c2   : > { %v2286_v11 = vpop.f32.mrf.mxu2 }
 0x2c3   : > { %2302 = vst [vmem:[%s224_s26 + $0x30] sm:$0xff] %v2286_v11 }
 0x2ca   : > { %v2288_v51 = vpop.f32.mrf.mxu2 }
 0x2cb   : > { %2303 = vst [vmem:[%s224_s26 + $0x38] sm:$0xff] %v2288_v51 }
 0x2d2   : > { %v2291_v40 = vpop.f32.mrf.mxu2 }
 0x2d3   : > { %2304 = vst [vmem:[%s224_s26 + $0x40] sm:$0xff] %v2291_v40 }
 0x2da   : > { %v2293_v57 = vpop.f32.mrf.mxu2 }
 0x2db   : > { %2305 = vst [vmem:[%s224_s26 + $0x48] sm:$0xff] %v2293_v57 }
 0x2dc PF: > { %s15_s18 = sadd.s32 1, %s2965_s18  }
 0x2dd   : > { %p12_p4 = scmp.ge.s32.totalorder %s15_s18, 4  }
 0x2df   :  { %14 = sbr.rel (!%p12_p4) target bundleno = 1 (0x1), region = 70 }

</bundles_post_ra>
